<compile_context>
chip_gen: v5e
topology: v5e:2x2
jax: 0.10.0
libtpu: 0.0.40
codegen_flags: <defaults>
</compile_context>

<pallas_src>
import jax
import jax.numpy as jnp
from jax.experimental import pallas as pl
from jax.experimental.pallas import tpu as pltpu

# Shapes hardcoded by the module (reshape constants + weight shape [2, 64, 3, 128]).
M, J, I, H, W_SP = 128, 2, 64, 28, 28
C_IN = J * I            # 128
C_OUT = 128
KH = 3
HW = H * W_SP           # 784
# TODO(synk): shift_direction is a random +/-1 in the torch module; fixed to +1 here.
# (Both +1 and -1 code paths are implemented; set SHIFT = -1 for the other realization.)
SHIFT = 1
B_TILE = 8              # batches per grid step -> 16 grid steps (>= 8 per core on v7x)
VMEM_LIMIT = 48 * 1024 * 1024   # actual use ~17 MB; stays well inside v7x's 64 MiB VMEM


# ---------------------------------------------------------------------------
# pltpu.roll direction probe.
# We need jnp.roll semantics (out[i] = in[(i - s) mod n]).  A tiny probe kernel decides
# the convention at runtime; if pltpu.roll is unavailable / behaves unexpectedly we fall
# back to jnp.roll (slice + concat lowering), which is slower but always correct.
# ---------------------------------------------------------------------------
_ROLL_IMPL = "jnp"


def _roll_probe_kernel(x_ref, o_ref):
    o_ref[...] = pltpu.roll(x_ref[...], 1, axis=1)


def detect_roll_convention():
    global _ROLL_IMPL
    try:
        vals = (jax.lax.broadcasted_iota(jnp.int32, (C_IN, HW), 1) % 8).astype(jnp.bfloat16)
        out = pl.pallas_call(
            _roll_probe_kernel,
            out_shape=jax.ShapeDtypeStruct((C_IN, HW), jnp.bfloat16),
        )(vals)
        first = float(out[0, 0])
        if first == float((HW - 1) % 8):   # matches jnp.roll convention
            _ROLL_IMPL = "pltpu"
        elif first == 1.0:                 # opposite convention
            _ROLL_IMPL = "pltpu_neg"
        else:
            _ROLL_IMPL = "jnp"
    except Exception:
        _ROLL_IMPL = "jnp"


def _lane_roll(x, shift):
    """Roll along the last (lane) axis with jnp.roll semantics."""
    n = x.shape[-1]
    s = shift % n
    if s == 0:
        return x
    if _ROLL_IMPL == "pltpu":
        return pltpu.roll(x, s, axis=x.ndim - 1)
    if _ROLL_IMPL == "pltpu_neg":
        return pltpu.roll(x, n - s, axis=x.ndim - 1)
    return jnp.roll(x, s, axis=-1)


# ---------------------------------------------------------------------------
# Kernel
# ---------------------------------------------------------------------------
def _fused_kernel(x_ref, w_ref, o_ref):
    # x_ref: (B_TILE, C_IN, HW)  float32  -- NCHW with (H, W) flattened onto lanes
    # w_ref: (KH, C_OUT, C_IN)   bfloat16 -- channel-permuted weight (see forward())
    # o_ref: (B_TILE, C_OUT, HW) float32  -- NCHW with (H, W) flattened onto lanes
    w_pos = jax.lax.broadcasted_iota(jnp.int32, (1, HW), 1) % W_SP  # width index per lane

    def body(b, carry):
        xb = x_ref[b].astype(jnp.bfloat16)          # (C_IN, HW)
        x_low, x_high = xb[:I, :], xb[I:, :]        # original channels [0,64), [64,128)
        zeros = jnp.zeros((C_IN, HW), dtype=jnp.bfloat16)

        if SHIFT == 1:
            # channels >= 64 take the +1 roll along h (= +28 lanes); the +1 roll along w
            # is folded into the conv-tap shifts below (within-row circular shifts).
            z = jnp.concatenate([x_low, _lane_roll(x_high, W_SP)], axis=0)
            # tap k=1: offset (w-1) mod 28 within each row, no mask
            t1 = jnp.where(w_pos == 0, _lane_roll(z, 1 - W_SP), _lane_roll(z, 1))
            # tap k=0: offset (w-2) mod 28, zero where w == 0 (conv zero padding)
            t0 = jnp.where(w_pos >= 1, _lane_roll(t1, 1), zeros)
            # tap k=2: offset w, zero where w == 27
            t2 = jnp.where(w_pos <= W_SP - 2, z, zeros)
        else:  # SHIFT == -1
            z = jnp.concatenate([_lane_roll(x_low, -W_SP), x_high], axis=0)
            t0 = jnp.where(w_pos >= 1, z, zeros)
            t1 = jnp.where(w_pos == W_SP - 1, _lane_roll(z, W_SP - 1), _lane_roll(z, -1))
            t2 = jnp.where(w_pos <= W_SP - 2, _lane_roll(t1, -1), zeros)

        acc = jnp.dot(w_ref[0], t0, preferred_element_type=jnp.float32)
        acc = acc + jnp.dot(w_ref[1], t1, preferred_element_type=jnp.float32)
        acc = acc + jnp.dot(w_ref[2], t2, preferred_element_type=jnp.float32)
        o_ref[b] = acc
        return carry

    jax.lax.fori_loop(0, B_TILE, body, 0)


def _pallas_forward(x_flat, w_mat):
    return pl.pallas_call(
        _fused_kernel,
        out_shape=jax.ShapeDtypeStruct((M, C_OUT, HW), jnp.float32),
        grid_spec=pltpu.PrefetchScalarGridSpec(
            num_scalar_prefetch=0,
            grid=(M // B_TILE,),
            in_specs=[
                pl.BlockSpec((B_TILE, C_IN, HW), lambda i: (i, 0, 0)),
                pl.BlockSpec((KH, C_OUT, C_IN), lambda i: (0, 0, 0)),
            ],
            out_specs=pl.BlockSpec((B_TILE, C_OUT, HW), lambda i: (i, 0, 0)),
        ),
        compiler_params=pltpu.CompilerParams(
            dimension_semantics=("parallel",),
            vmem_limit_bytes=VMEM_LIMIT,
        ),
    )(x_flat, w_mat)


@jax.jit
def forward(x, w):
    # x: (M, C_IN, H, W) float32 NCHW ; w: (J, I, KH, C_OUT) float32
    x_flat = x.reshape(M, C_IN, HW)                      # free reshape (no data movement)
    # Kernel channel order c: [0,64) <- original channels [0,64) and they feed the j=1
    # weights; [64,128) <- original channels [64,128) feeding the j=0 weights (this is
    # the (h, j)-roll's channel-half swap, absorbed into the tiny weight tensor).
    w_mat = jnp.concatenate([w[1], w[0]], axis=0)        # (C_IN, KH, C_OUT) = (c, k, l)
    w_mat = jnp.transpose(w_mat, (1, 2, 0)).astype(jnp.bfloat16)  # (KH, C_OUT, C_IN)
    out = _pallas_forward(x_flat, w_mat)                 # (M, C_OUT, HW)
    return out.reshape(M, C_OUT, H, W_SP)                # NCHW output, free reshape


# ---------------------------------------------------------------------------
# Pure-JAX reference (direct transcription of the torch graph)
# ---------------------------------------------------------------------------
@jax.jit
def reference(x, w):
    t = x.reshape(M, J, I, H, W_SP)
    t = jnp.transpose(t, (0, 2, 3, 1, 4)).reshape(M, I, H * J, W_SP)
    t = jnp.roll(t, SHIFT, axis=2).reshape(M, I, H, J, W_SP)
    t = jnp.roll(t, SHIFT, axis=4)
    tp = jnp.pad(t, ((0, 0), (0, 0), (0, 0), (0, 0), (1, 1)))
    t2 = jnp.stack([tp[..., k:k + W_SP] for k in range(KH)], axis=4)  # (M, I, H, J, KH, W)
    t2 = jnp.transpose(t2, (0, 1, 2, 3, 5, 4))                        # m i n j o k
    t3 = jnp.einsum('minjok,jikl->mnol', t2, w,
                    precision=jax.lax.Precision.HIGHEST)
    return jnp.transpose(t3, (0, 3, 1, 2))


if __name__ == "__main__":
    detect_roll_convention()

    key = jax.random.PRNGKey(0)
    kx, kw = jax.random.split(key)
    # Shapes are dictated by the module's hardcoded reshapes / weight shape.
    x = jax.random.normal(kx, (M, C_IN, H, W_SP), dtype=jnp.float32)
    w = jax.random.normal(kw, (J, I, KH, C_OUT), dtype=jnp.float32)

    y = forward(x, w)
    jax.block_until_ready(y)
    assert y.shape == (M, C_OUT, H, W_SP)

    # Primary check: reference run on the same bf16-quantized operands the kernel uses
    # (bf16 x bf16 products are exact in f32; only accumulation order differs).
    xq = x.astype(jnp.bfloat16).astype(jnp.float32)
    wq = w.astype(jnp.bfloat16).astype(jnp.float32)
    y_ref_q = reference(xq, wq)
    if not bool(jnp.allclose(y, y_ref_q, rtol=1e-3, atol=1e-2)):
        raise AssertionError(
            "mismatch vs bf16-quantized reference, max abs err = "
            f"{float(jnp.max(jnp.abs(y - y_ref_q)))}")

    # Loose sanity check against the full-f32 reference (error budget = bf16 rounding
    # of the matmul operands only).
    y_ref = reference(x, w)
    if not bool(jnp.allclose(y, y_ref, rtol=5e-2, atol=1.0)):
        raise AssertionError(
            "mismatch vs f32 reference, max abs err = "
            f"{float(jnp.max(jnp.abs(y - y_ref)))}")

    print("KERNEL_OK")
</pallas_src>

<mosaic_0001>
module attributes {stable_mosaic.version = 11 : i64} {
  func.func @_roll_probe_kernel(%arg0: memref<128x784xbf16, #tpu.memory_space<vmem>>, %arg1: memref<128x784xbf16, #tpu.memory_space<vmem>>) attributes {dimension_semantics = [], scalar_prefetch = 0 : i64, scratch_operands = 0 : i64, tpu.core_type = #tpu.core_type<tc>} {
    %c0 = arith.constant 0 : index
    %c0_0 = arith.constant 0 : index
    %0 = vector.load %arg0[%c0, %c0_0] : memref<128x784xbf16, #tpu.memory_space<vmem>>, vector<128x784xbf16>
    %c1_i32 = arith.constant 1 : i32
    %1 = tpu.dynamic_rotate %0 by %c1_i32 dim 1 : vector<128x784xbf16>, i32 -> vector<128x784xbf16>
    %c0_1 = arith.constant 0 : index
    %c0_2 = arith.constant 0 : index
    %2 = vector.load %arg1[%c0_1, %c0_2] : memref<128x784xbf16, #tpu.memory_space<vmem>>, vector<128x784xbf16>
    tpu.vector_store %arg1[%c0_1, %c0_2], %1 {strides = array<i32>} : memref<128x784xbf16, #tpu.memory_space<vmem>>, vector<128x784xbf16>,
    return
  }
}

module attributes {stable_mosaic.version = 11 : i64} {
  func.func @_fused_kernel(%arg0: i32, %arg1: memref<8x128x784xf32, #tpu.memory_space<vmem>>, %arg2: memref<3x128x128xbf16, #tpu.memory_space<vmem>>, %arg3: memref<8x128x784xf32, #tpu.memory_space<vmem>>) attributes {dimension_semantics = [#tpu.dimension_semantics<parallel>], iteration_bounds = array<i64: 16>, scalar_prefetch = 0 : i64, scratch_operands = 0 : i64, tpu.core_type = #tpu.core_type<tc>, window_params = [{transform_indices = @transform_0, window_bounds = array<i64: 8, 128, 784>}, {pipeline_mode = #tpu.pipeline_mode<synchronous>, transform_indices = @transform_1, window_bounds = array<i64: 3, 128, 128>}, {transform_indices = @transform_2, window_bounds = array<i64: 8, 128, 784>}]} {
    %0 = tpu.iota {dimensions = array<i32: 1>} : vector<1x784xi32>
    %c28_i32 = arith.constant 28 : i32
    %c0_i32 = arith.constant 0 : i32
    %1 = arith.cmpi eq, %c28_i32, %c0_i32 : i32
    %c1_i32 = arith.constant 1 : i32
    %2 = arith.select %1, %c1_i32, %c28_i32 : i32
    %3 = vector.broadcast %2 : i32 to vector<1x784xi32>
    %4 = arith.remsi %0, %3 : vector<1x784xi32>
    %c0_i32_0 = arith.constant 0 : i32
    %5 = vector.broadcast %c0_i32_0 : i32 to vector<1x784xi32>
    %6 = arith.cmpi ne, %4, %5 : vector<1x784xi32>
    %c0_i32_1 = arith.constant 0 : i32
    %7 = vector.broadcast %c0_i32_1 : i32 to vector<1x784xi32>
    %8 = arith.cmpi slt, %4, %7 : vector<1x784xi32>
    %c0_i32_2 = arith.constant 0 : i32
    %9 = arith.cmpi slt, %2, %c0_i32_2 : i32
    %10 = vector.broadcast %9 : i1 to vector<1x784xi1>
    %11 = vector.broadcast %10 : vector<1x784xi1> to vector<1x784xi1>
    %12 = arith.xori %8, %11 : vector<1x784xi1>
    %13 = arith.andi %12, %6 : vector<1x784xi1>
    %14 = vector.broadcast %2 : i32 to vector<1x784xi32>
    %15 = arith.addi %4, %14 : vector<1x784xi32>
    %16 = arith.select %13, %15, %4 : vector<1x784xi1>, vector<1x784xi32>
    %c0_i32_3 = arith.constant 0 : i32
    %c8_i32 = arith.constant 8 : i32
    %17 = arith.addi %c0_i32_3, %c8_i32 : i32
    %c1_i32_4 = arith.constant 1 : i32
    scf.for %arg4 = %c0_i32_3 to %17 step %c1_i32_4  : i32 {
      %18 = arith.index_cast %arg4 : i32 to index
      %c0 = arith.constant 0 : index
      %c0_6 = arith.constant 0 : index
      %19 = vector.load %arg1[%18, %c0, %c0_6] : memref<8x128x784xf32, #tpu.memory_space<vmem>>, vector<1x128x784xf32>
      %20 = vector.shape_cast %19 : vector<1x128x784xf32> to vector<128x784xf32>
      %21 = arith.truncf %20 : vector<128x784xf32> to vector<128x784xbf16>
      %22 = vector.extract_strided_slice %21 {offsets = [0, 0], sizes = [64, 784], strides = [1, 1]} : vector<128x784xbf16> to vector<64x784xbf16>
      %23 = vector.extract_strided_slice %21 {offsets = [64, 0], sizes = [64, 784], strides = [1, 1]} : vector<128x784xbf16> to vector<64x784xbf16>
      %cst = arith.constant 0.000000e+00 : bf16
      %24 = vector.broadcast %cst : bf16 to vector<128x784xbf16>
      %25 = vector.extract_strided_slice %23 {offsets = [0, 756], sizes = [64, 28], strides = [1, 1]} : vector<64x784xbf16> to vector<64x28xbf16>
      %26 = vector.extract_strided_slice %23 {offsets = [0, 0], sizes = [64, 756], strides = [1, 1]} : vector<64x784xbf16> to vector<64x756xbf16>
      %27 = tpu.concatenate %25, %26 in 1 : vector<64x28xbf16>, vector<64x756xbf16> -> vector<64x784xbf16>
      %28 = tpu.concatenate %22, %27 in 0 : vector<64x784xbf16>, vector<64x784xbf16> -> vector<128x784xbf16>
      %c0_i32_7 = arith.constant 0 : i32
      %29 = vector.broadcast %c0_i32_7 : i32 to vector<1x784xi32>
      %30 = arith.cmpi eq, %16, %29 : vector<1x784xi32>
      %31 = vector.extract_strided_slice %28 {offsets = [0, 27], sizes = [128, 757], strides = [1, 1]} : vector<128x784xbf16> to vector<128x757xbf16>
      %32 = vector.extract_strided_slice %28 {offsets = [0, 0], sizes = [128, 27], strides = [1, 1]} : vector<128x784xbf16> to vector<128x27xbf16>
      %33 = tpu.concatenate %31, %32 in 1 : vector<128x757xbf16>, vector<128x27xbf16> -> vector<128x784xbf16>
      %34 = vector.extract_strided_slice %28 {offsets = [0, 783], sizes = [128, 1], strides = [1, 1]} : vector<128x784xbf16> to vector<128x1xbf16>
      %35 = vector.extract_strided_slice %28 {offsets = [0, 0], sizes = [128, 783], strides = [1, 1]} : vector<128x784xbf16> to vector<128x783xbf16>
      %36 = tpu.concatenate %34, %35 in 1 : vector<128x1xbf16>, vector<128x783xbf16> -> vector<128x784xbf16>
      %37 = vector.shape_cast %30 : vector<1x784xi1> to vector<1x784xi1>
      %38 = vector.broadcast %37 : vector<1x784xi1> to vector<128x784xi1>
      %39 = arith.select %38, %33, %36 : vector<128x784xi1>, vector<128x784xbf16>
      %c1_i32_8 = arith.constant 1 : i32
      %40 = vector.broadcast %c1_i32_8 : i32 to vector<1x784xi32>
      %41 = arith.cmpi sge, %16, %40 : vector<1x784xi32>
      %42 = vector.extract_strided_slice %39 {offsets = [0, 783], sizes = [128, 1], strides = [1, 1]} : vector<128x784xbf16> to vector<128x1xbf16>
      %43 = vector.extract_strided_slice %39 {offsets = [0, 0], sizes = [128, 783], strides = [1, 1]} : vector<128x784xbf16> to vector<128x783xbf16>
      %44 = tpu.concatenate %42, %43 in 1 : vector<128x1xbf16>, vector<128x783xbf16> -> vector<128x784xbf16>
      %45 = vector.shape_cast %41 : vector<1x784xi1> to vector<1x784xi1>
      %46 = vector.broadcast %45 : vector<1x784xi1> to vector<128x784xi1>
      %47 = arith.select %46, %44, %24 : vector<128x784xi1>, vector<128x784xbf16>
      %c26_i32 = arith.constant 26 : i32
      %48 = vector.broadcast %c26_i32 : i32 to vector<1x784xi32>
      %49 = arith.cmpi sle, %16, %48 : vector<1x784xi32>
      %50 = vector.shape_cast %49 : vector<1x784xi1> to vector<1x784xi1>
      %51 = vector.broadcast %50 : vector<1x784xi1> to vector<128x784xi1>
      %52 = arith.select %51, %28, %24 : vector<128x784xi1>, vector<128x784xbf16>
      %c0_9 = arith.constant 0 : index
      %c0_10 = arith.constant 0 : index
      %c0_11 = arith.constant 0 : index
      %53 = vector.load %arg2[%c0_9, %c0_10, %c0_11] : memref<3x128x128xbf16, #tpu.memory_space<vmem>>, vector<1x128x128xbf16>
      %54 = vector.shape_cast %53 : vector<1x128x128xbf16> to vector<128x128xbf16>
      %cst_12 = arith.constant dense<0.000000e+00> : vector<128x784xf32>
      %55 = tpu.matmul %54, %47, %cst_12 {dimension_numbers = #tpu.dot_dimension_numbers<[1], [0], [0], [1], [0, 0, 1, 1], [], []>} : vector<128x128xbf16>, vector<128x784xbf16>, vector<128x784xf32> -> vector<128x784xf32>
      %c1 = arith.constant 1 : index
      %c0_13 = arith.constant 0 : index
      %c0_14 = arith.constant 0 : index
      %56 = vector.load %arg2[%c1, %c0_13, %c0_14] : memref<3x128x128xbf16, #tpu.memory_space<vmem>>, vector<1x128x128xbf16>
      %57 = vector.shape_cast %56 : vector<1x128x128xbf16> to vector<128x128xbf16>
      %cst_15 = arith.constant dense<0.000000e+00> : vector<128x784xf32>
      %58 = tpu.matmul %57, %39, %cst_15 {dimension_numbers = #tpu.dot_dimension_numbers<[1], [0], [0], [1], [0, 0, 1, 1], [], []>} : vector<128x128xbf16>, vector<128x784xbf16>, vector<128x784xf32> -> vector<128x784xf32>
      %59 = arith.addf %55, %58 : vector<128x784xf32>
      %c2 = arith.constant 2 : index
      %c0_16 = arith.constant 0 : index
      %c0_17 = arith.constant 0 : index
      %60 = vector.load %arg2[%c2, %c0_16, %c0_17] : memref<3x128x128xbf16, #tpu.memory_space<vmem>>, vector<1x128x128xbf16>
      %61 = vector.shape_cast %60 : vector<1x128x128xbf16> to vector<128x128xbf16>
      %cst_18 = arith.constant dense<0.000000e+00> : vector<128x784xf32>
      %62 = tpu.matmul %61, %52, %cst_18 {dimension_numbers = #tpu.dot_dimension_numbers<[1], [0], [0], [1], [0, 0, 1, 1], [], []>} : vector<128x128xbf16>, vector<128x784xbf16>, vector<128x784xf32> -> vector<128x784xf32>
      %63 = arith.addf %59, %62 : vector<128x784xf32>
      %64 = arith.index_cast %arg4 : i32 to index
      %c0_19 = arith.constant 0 : index
      %c0_20 = arith.constant 0 : index
      %65 = vector.load %arg3[%64, %c0_19, %c0_20] : memref<8x128x784xf32, #tpu.memory_space<vmem>>, vector<1x128x784xf32>
      %66 = vector.shape_cast %65 : vector<1x128x784xf32> to vector<128x784xf32>
      %67 = vector.shape_cast %63 : vector<128x784xf32> to vector<1x128x784xf32>
      tpu.vector_store %arg3[%64, %c0_19, %c0_20], %67 {strides = array<i32>} : memref<8x128x784xf32, #tpu.memory_space<vmem>>, vector<1x128x784xf32>,
    }
    %c8_i32_5 = arith.constant 8 : i32
    return
  }
  func.func @transform_0(%arg0: i32) -> (i32, i32, i32) {
    %c0_i32 = arith.constant 0 : i32
    %c0_i32_0 = arith.constant 0 : i32
    %c0_i32_1 = arith.constant 0 : i32
    return %arg0, %c0_i32, %c0_i32_0 : i32, i32, i32
  }
  func.func @transform_1(%arg0: i32) -> (i32, i32, i32) {
    %c0_i32 = arith.constant 0 : i32
    %c0_i32_0 = arith.constant 0 : i32
    %c0_i32_1 = arith.constant 0 : i32
    %c0_i32_2 = arith.constant 0 : i32
    return %c0_i32, %c0_i32_0, %c0_i32_1 : i32, i32, i32
  }
  func.func @transform_2(%arg0: i32) -> (i32, i32, i32) {
    %c0_i32 = arith.constant 0 : i32
    %c0_i32_0 = arith.constant 0 : i32
    %c0_i32_1 = arith.constant 0 : i32
    return %arg0, %c0_i32, %c0_i32_0 : i32, i32, i32
  }
}

</mosaic_0001>

<bundles_post_ra>
// kernel: forward.1
= control target key start
LH: loop header
LB: loop body
LE: loop exit
PB: predicated region body
PF: predicated region fallthrough
CT: control target
= control target key end

     0   :  { %7 = vsyncpa [#allocation3], 0  ;;  %s7529_s0 = inlined_call_operand.hbm [shape: f32[128,128,784], index: 0, kind: input, shape index: {}]   ;;  %s7530_s1 = inlined_call_operand.vmem [shape: bf16[3,128,128], index: 1, kind: input, shape index: {}]   ;;  %s7531_s2 = inlined_call_operand.vmem [shape: f32[128,128,784], index: 2, kind: output, shape index: {}]  }
   0x1   :  { %9 = vsyncpa [#allocation3 + $0x1], 0  ;;  %s4157_s9 = smov 0   ;;  %s4159_s10 = smov 0  }
   0x2   :  { %s4161_s11 = smov 0   ;;  %s4163_s12 = smov 0  }
   0x3 LB: > { %s3800_s13 = sadd.s32 4294967295, %s4126_s12   ;;  %s4177_s14 = sadd.s32 1, %s4126_s12   ;;  %s4126_s12 = sphi %s4163_s12, %s8217_s12   ;;  %s4122_s11 = sphi %s4161_s11, %s8216_s11   ;;  %s4118_s10 = sphi %s4159_s10, %s8215_s10   ;;  %s4114_s9 = sphi %s4157_s9, %s8214_s9  }
   0x4   : > { %s19_s15 = ssub.s32 %s4126_s12, %s4177_s14  ;;  %s22_s16 = sadd.s32 1, %s4122_s11 }
   0x5   : > { %p20_p0 = scmp.eq.s32.totalorder %s19_s15, 0  ;;  %p29_p1 = scmp.ne.s32.totalorder %s4122_s11, %s4118_s10 }
   0x6   : > { %p30_p2 = scmp.eq.s32.totalorder %s4126_s12, 0  ;;  %p35_p3 = scmp.ne.s32.totalorder %s4118_s10, %s4114_s9 }
   0x7   : > { %s4187_s17 = scalar_select %p20_p0, %s4122_s11, %s22_s16  }
   0x8   : > { %p31_p4 = por %p30_p2, %p29_p1  ;;  %p36_p5 = scmp.eq.s32.totalorder %s3800_s13, 0 }
   0x9   : > { %p4002_p6 = scmp.lt.s32.totalorder %s4126_s12, 16  ;;  %s109_s19 = sand.u32 1, %s4122_s11  }
   0xa   : > { %p4192_p7 = por %p36_p5, %p35_p3  ;;  %s3992_s20 = smul.u32 7168, %s109_s19 }
   0xb   : > { %s3993_s21 = smul.u32 7168, %s4126_s12  ;;  %p4198_p8 = pnand %p4002_p6, %p31_p4 }
   0xc   : > { %s113_s26 = scalar_lea.vmem [#allocation2], %s3992_s20  ;;  %p3807_p9 = scmp.ge.s32.totalorder %s4126_s12, 1 }
   0xd   : > { %s119_s25 = scalar_lea.hbm %s7529_s0, %s3993_s21  ;;  %s122_s27 = sshll.u32 %s113_s26, 4  ;;  %s123_s27 = int_to_ptr.vmem [resolvable:$true] %s122_s27 }
   0xe   : > { %s120_s28 = sshll.u32 %s119_s25, 4  ;;  %s110_s29 = scalar_lea.sflag [#allocation3], %s109_s19  ;;  %s121_s28 = int_to_ptr.hbm [resolvable:$true] %s120_s28 }
   0xf   : > { %s4058_s30 = sshra.s32 %s121_s28, 4  ;;  %p4062_p11 = pneg %p4198_p8  ;;  %s4059_s30 = int_to_ptr.hbm [resolvable:$true] %s4058_s30 }
  0x10   : > { %s4060_s3 = scalar_lea.hbm %s4059_s30, 7168  ;;  %s4065_s6 = scalar_lea.hbm %s7529_s0, 114688 }
  0x11   : > { %p4061_p10 = scmp.ne.s32.totalorder %s4059_s30, %s4060_s3  ;;  %p4066_p0 = scmp.lt.s32.totalorder %s4059_s30, %s7529_s0 }
  0x12   : > { %p4067_p1 = scmp.lt.s32.totalorder %s4065_s6, %s4060_s3 }
  0x13   : > { %p4063_p12 = pnand %p4062_p11, %p4061_p10 }
  0x14   : > { %p4068_p2 = por %p4067_p1, %p4066_p0 }
  0x15   : > { %p4064_p13 = pneg %p4063_p12 }
  0x17   : > { %p4069_p3 = pnand %p4068_p2, %p4064_p13 }
  0x19   : > { %4072 = shalt.err (!%p4069_p3)
}
  0x1a   : > { %s4132_s9 = smov 896   ;;  %s4133_s15 = smov 56  }
  0x1b   : > { %4001 = dma.hbm_to_vmem [thread:$0]  (!%p4198_p8), %s121_s28, 114688, %s123_s27, %s110_s29, %s4132_s9, %s4132_s9, %s4133_s15  }
  0x1c   : > { %p130_p4 = scmp.lt.s32.totalorder %s4126_s12, 17 }
  0x1e   : > { %p131_p5 = pnand %p3807_p9, %p130_p4 }
  0x1f   : > { %s136_s16 = sand.u32 (!%p131_p5), 1, %s4118_s10  }
  0x20   : > { %134 = sbr.rel (%p131_p5) target bundleno = 1477 (0x5c5), region = 28  ;;  %s137_s20 = scalar_lea.sflag (!%p131_p5), [#allocation3], %s136_s16 }
  0x21   : > { %s4220_s19 = smul.u32 (!%p131_p5), 7168, %s136_s16 }
  0x23   : > { %s140_s21 = scalar_lea.vmem (!%p131_p5), [#allocation2], %s4220_s19 }
  0x25   : > { %4109 = dma.done.wait (%p4192_p7), %s137_s20, 114688  }
  0x26   : > { %4111 = vsyncadd (%p4192_p7), %s137_s20, 4294852608  ;;  %s3808_s22 = sshll.u32 %s3800_s13, 3  ;;  %v174_v0 = vlaneseq  ;;  %v4134_v33 = vmov 0   ;;  %s4353_s24 = smov 0  }
  0x27   : > { %p165_p6 = scmp.lt.s32.totalorder %s3808_s22, 127 }
  0x28   : > { %v4229_v1 = vand.u32 127, %v174_v0 }
  0x29   : > { %s8219_s22 = smov (!%p165_p6, %s3808_s22), 127 }
  0x2a   : > { %v4232_v2 = vadd.s32 128, %v4229_v1  ;;  %v4235_v3 = vadd.s32 256, %v4229_v1  ;;  %v4238_v4 = vadd.s32 384, %v4229_v1  ;;  %v4241_v5 = vadd.s32 512, %v4229_v1  ;;  %s3995_s18 = smul.u32 896, %s8219_s22 }
  0x2b   : > { %v4244_v6 = vadd.s32 640, %v4229_v1  ;;  %v4247_v7 = vadd.s32 768, %v4229_v1  ;;  %v185_v8 = vand.u32 65535, %v4229_v1  ;;  %v186_v9 = vshrl.u32 %v4229_v1, 16 }
  0x2c   : > { %v217_v10 = vand.u32 65535, %v4232_v2  ;;  %v218_v11 = vshrl.u32 %v4232_v2, 16  ;;  %v249_v12 = vand.u32 65535, %v4235_v3  ;;  %v250_v13 = vshrl.u32 %v4235_v3, 16  ;;  %s4258_s23 = scalar_lea.vmem %s7531_s2, %s3995_s18 }
  0x2d   : > { %v188_v14 = vmul.u32 9362, %v185_v8  ;;  %v189_v15 = vmul.u32 37449, %v185_v8  ;;  %v190_v16 = vmul.u32 9362, %v186_v9  ;;  %v191_v17 = vmul.u32 37449, %v186_v9 }
  0x2e   : > { %v220_v18 = vmul.u32 9362, %v217_v10  ;;  %v221_v19 = vmul.u32 37449, %v217_v10  ;;  %v222_v20 = vmul.u32 9362, %v218_v11  ;;  %v223_v21 = vmul.u32 37449, %v218_v11 }
  0x2f   : > { %v192_v22 = vshll.u32 %v189_v15, 16  ;;  %v193_v23 = vshrl.u32 %v189_v15, 16  ;;  %v194_v24 = vshll.u32 %v190_v16, 16  ;;  %v195_v25 = vshrl.u32 %v190_v16, 16 }
  0x30   : > { %v224_v26 = vshll.u32 %v221_v19, 16  ;;  %v225_v27 = vshrl.u32 %v221_v19, 16  ;;  %v226_v28 = vshll.u32 %v222_v20, 16  ;;  %v227_v29 = vshrl.u32 %v222_v20, 16 }
  0x31   : > { %vm196_vm0 = vc.u32 %v188_v14, %v192_v22  ;;  %v198_v30 = vadd.s32 %v192_v22, %v188_v14  ;;  %v252_v31 = vmul.u32 9362, %v249_v12  ;;  %v253_v32 = vmul.u32 37449, %v249_v12 }
  0x32   : > { %v197_v34 = vsel %vm196_vm0, 1, %v4134_v33  ;;  %vm228_vm1 = vc.u32 %v220_v18, %v224_v26  ;;  %v230_v35 = vadd.s32 %v224_v26, %v220_v18  ;;  %v254_v36 = vmul.u32 9362, %v250_v13 }
  0x33   : > { %v199_v37 = vadd.s32 %v197_v34, %v191_v17  ;;  %vm200_vm2 = vc.u32 %v198_v30, %v194_v24  ;;  %v202_v38 = vadd.s32 %v198_v30, %v194_v24  ;;  %v229_v39 = vsel %vm228_vm1, 1, %v4134_v33 }
  0x34   : > { %v201_v40 = vsel %vm200_vm2, 1, %v4134_v33  ;;  %v231_v41 = vadd.s32 %v229_v39, %v223_v21  ;;  %vm232_vm3 = vc.u32 %v230_v35, %v226_v28  ;;  %v234_v42 = vadd.s32 %v230_v35, %v226_v28 }
  0x35   : > { %v203_v43 = vadd.s32 %v201_v40, %v199_v37  ;;  %vm206_vm4 = vc.u32 %v202_v38, 2454267026  ;;  %v233_v44 = vsel %vm232_vm3, 1, %v4134_v33  ;;  %v255_v45 = vmul.u32 37449, %v250_v13 }
  0x36   : > { %v207_v46 = vsel %vm206_vm4, 1, %v4134_v33  ;;  %v235_v47 = vadd.s32 %v233_v44, %v231_v41  ;;  %vm238_vm5 = vc.u32 %v234_v42, 2454267026  ;;  %v256_v48 = vshll.u32 %v253_v32, 16 }
  0x37   : > { %v204_v49 = vadd.s32 %v203_v43, %v193_v23  ;;  %v239_v50 = vsel %vm238_vm5, 1, %v4134_v33  ;;  %v257_v51 = vshrl.u32 %v253_v32, 16  ;;  %v258_v52 = vshll.u32 %v254_v36, 16 }
  0x38   : > { %v236_v53 = vadd.s32 %v235_v47, %v225_v27  ;;  %v259_v54 = vshrl.u32 %v254_v36, 16  ;;  %vm260_vm6 = vc.u32 %v252_v31, %v256_v48  ;;  %v262_v55 = vadd.s32 %v256_v48, %v252_v31 }
  0x39   : > { %v205_v56 = vadd.s32 %v204_v49, %v195_v25  ;;  %v261_v57 = vsel %vm260_vm6, 1, %v4134_v33  ;;  %v281_v58 = vand.u32 65535, %v4238_v4  ;;  %v282_v59 = vshrl.u32 %v4238_v4, 16 }
  0x3a   : > { %v237_v60 = vadd.s32 %v236_v53, %v227_v29  ;;  %v263_v61 = vadd.s32 %v261_v57, %v255_v45  ;;  %vm264_vm7 = vc.u32 %v262_v55, %v258_v52  ;;  %v266_v62 = vadd.s32 %v262_v55, %v258_v52 }
  0x3b   : > { %v208_v63 = vadd.s32 %v207_v46, %v205_v56  ;;  %v265_v0 = vsel %vm264_vm7, 1, %v4134_v33  ;;  %v284_v8 = vmul.u32 9362, %v281_v58  ;;  %v285_v9 = vmul.u32 37449, %v281_v58 }
  0x3c   : > { %v240_v10 = vadd.s32 %v239_v50, %v237_v60  ;;  %v267_v11 = vadd.s32 %v265_v0, %v263_v61  ;;  %vm270_vm8 = vc.u32 %v266_v62, 2454267026  ;;  %v286_v12 = vmul.u32 9362, %v282_v59 }
  0x3d   : > { %v209_v13 = vshrl.u32 %v208_v63, 4  ;;  %v271_v14 = vsel %vm270_vm8, 1, %v4134_v33  ;;  %v287_v15 = vmul.u32 37449, %v282_v59  ;;  %v288_v16 = vshll.u32 %v285_v9, 16 }
  0x3e   : > { %v241_v17 = vshrl.u32 %v240_v10, 4  ;;  %v268_v18 = vadd.s32 %v267_v11, %v257_v51  ;;  %v289_v19 = vshrl.u32 %v285_v9, 16  ;;  %v290_v20 = vshll.u32 %v286_v12, 16 }
  0x3f   : > { %v210_v21 = vmul.u32 28, %v209_v13  ;;  %v291_v22 = vshrl.u32 %v286_v12, 16  ;;  %vm292_vm9 = vc.u32 %v284_v8, %v288_v16  ;;  %v294_v23 = vadd.s32 %v288_v16, %v284_v8 }
  0x40   : > { %v242_v24 = vmul.u32 28, %v241_v17  ;;  %v269_v25 = vadd.s32 %v268_v18, %v259_v54  ;;  %v293_v26 = vsel %vm292_vm9, 1, %v4134_v33  ;;  %v313_v27 = vand.u32 65535, %v4241_v5 }
  0x41   : > { %v4274_v28 = vsub.s32 %v4229_v1, %v210_v21  ;;  %v295_v29 = vadd.s32 %v293_v26, %v287_v15  ;;  %vm296_vm10 = vc.u32 %v294_v23, %v290_v20  ;;  %v298_v30 = vadd.s32 %v294_v23, %v290_v20 }
  0x42   : > { %v4277_v31 = vsub.s32 %v4232_v2, %v242_v24  ;;  %v272_v32 = vadd.s32 %v271_v14, %v269_v25  ;;  %v297_v34 = vsel %vm296_vm10, 1, %v4134_v33  ;;  %v314_v35 = vshrl.u32 %v4241_v5, 16 }
  0x43   : > { %v299_v36 = vadd.s32 %v297_v34, %v295_v29  ;;  %vm302_vm11 = vc.u32 %v298_v30, 2454267026  ;;  %v316_v37 = vmul.u32 9362, %v313_v27  ;;  %v317_v38 = vmul.u32 37449, %v313_v27 }
  0x44   : > { %v273_v39 = vshrl.u32 %v272_v32, 4  ;;  %v303_v40 = vsel %vm302_vm11, 1, %v4134_v33  ;;  %v318_v1 = vmul.u32 9362, %v314_v35  ;;  %v319_v41 = vmul.u32 37449, %v314_v35 }
  0x45   : > { %v300_v42 = vadd.s32 %v299_v36, %v289_v19  ;;  %v320_v43 = vshll.u32 %v317_v38, 16  ;;  %v321_v44 = vshrl.u32 %v317_v38, 16  ;;  %v345_v2 = vand.u32 65535, %v4244_v6 }
  0x46   : > { %v274_v45 = vmul.u32 28, %v273_v39  ;;  %v322_v46 = vshll.u32 %v318_v1, 16  ;;  %v323_v47 = vshrl.u32 %v318_v1, 16  ;;  %v346_v48 = vshrl.u32 %v4244_v6, 16 }
  0x47   : > { %v301_v49 = vadd.s32 %v300_v42, %v291_v22  ;;  %vm324_vm12 = vc.u32 %v316_v37, %v320_v43  ;;  %v326_v50 = vadd.s32 %v320_v43, %v316_v37  ;;  %v348_v51 = vmul.u32 9362, %v345_v2 }
  0x48   : > { %v4285_v52 = vsub.s32 %v4235_v3, %v274_v45  ;;  %v325_v53 = vsel %vm324_vm12, 1, %v4134_v33  ;;  %v349_v54 = vmul.u32 37449, %v345_v2  ;;  %v350_v55 = vmul.u32 9362, %v346_v48 }
  0x49   : > { %v304_v56 = vadd.s32 %v303_v40, %v301_v49  ;;  %v327_v57 = vadd.s32 %v325_v53, %v319_v41  ;;  %vm328_vm13 = vc.u32 %v326_v50, %v322_v46  ;;  %v330_v58 = vadd.s32 %v326_v50, %v322_v46 }
  0x4a   : > { %v329_v59 = vsel %vm328_vm13, 1, %v4134_v33  ;;  %v351_v60 = vmul.u32 37449, %v346_v48  ;;  %v352_v61 = vshll.u32 %v349_v54, 16  ;;  %v353_v62 = vshrl.u32 %v349_v54, 16 }
  0x4b   : > { %v305_v63 = vshrl.u32 %v304_v56, 4  ;;  %v331_v0 = vadd.s32 %v329_v59, %v327_v57  ;;  %vm334_vm14 = vc.u32 %v330_v58, 2454267026  ;;  %v354_v8 = vshll.u32 %v350_v55, 16 }
  0x4c   : > { %v335_v3 = vsel %vm334_vm14, 1, %v4134_v33  ;;  %v355_v9 = vshrl.u32 %v350_v55, 16  ;;  %vm356_vm15 = vc.u32 %v348_v51, %v352_v61  ;;  %v358_v10 = vadd.s32 %v352_v61, %v348_v51 }
  0x4d   : > { %v306_v11 = vmul.u32 28, %v305_v63  ;;  %v332_v12 = vadd.s32 %v331_v0, %v321_v44  ;;  %v357_v13 = vsel %vm356_vm15, 1, %v4134_v33  ;;  %v377_v14 = vand.u32 65535, %v4247_v7 }
  0x4e   : > { %v359_v15 = vadd.s32 %v357_v13, %v351_v60  ;;  %vm360_vm0 = vc.u32 %v358_v10, %v354_v8  ;;  %v362_v16 = vadd.s32 %v358_v10, %v354_v8  ;;  %v378_v17 = vshrl.u32 %v4247_v7, 16 }
  0x4f   : > { %v307_v18 = vsub.s32 %v4238_v4, %v306_v11  ;;  %v333_v19 = vadd.s32 %v332_v12, %v323_v47  ;;  %v361_v20 = vsel %vm360_vm0, 1, %v4134_v33  ;;  %v380_v21 = vmul.u32 9362, %v377_v14 }
  0x50   : > { %v363_v22 = vadd.s32 %v361_v20, %v359_v15  ;;  %vm366_vm1 = vc.u32 %v362_v16, 2454267026  ;;  %v381_v23 = vmul.u32 37449, %v377_v14  ;;  %v382_v24 = vmul.u32 9362, %v378_v17 }
  0x51   : > { %v336_v25 = vadd.s32 %v335_v3, %v333_v19  ;;  %v367_v26 = vsel %vm366_vm1, 1, %v4134_v33  ;;  %v383_v27 = vmul.u32 37449, %v378_v17  ;;  %vm406_vm2 = vcmp.ne.s32.totalorder %v4274_v28, 0 }
  0x52   : > { %v364_v29 = vadd.s32 %v363_v22, %v353_v62  ;;  %v384_v30 = vshll.u32 %v381_v23, 16  ;;  %v385_v32 = vshrl.u32 %v381_v23, 16  ;;  %v386_v34 = vshll.u32 %v382_v24, 16 }
  0x53   : > { %v337_v35 = vshrl.u32 %v336_v25, 4  ;;  %v387_v4 = vshrl.u32 %v382_v24, 16  ;;  %vm407_vm3 = vcmp.ne.s32.totalorder %v4277_v31, 0  ;;  %vm408_vm4 = vcmp.ne.s32.totalorder %v4285_v52, 0 }
  0x54   : > { %v365_v36 = vadd.s32 %v364_v29, %v355_v9  ;;  %vm388_vm5 = vc.u32 %v380_v21, %v384_v30  ;;  %v390_v37 = vadd.s32 %v384_v30, %v380_v21  ;;  %vm409_vm6 = vcmp.ne.s32.totalorder %v307_v18, 0 }
  0x55   : > { %v338_v38 = vmul.u32 28, %v337_v35  ;;  %v389_v39 = vsel %vm388_vm5, 1, %v4134_v33  ;;  %vm413_vm7 = vcmp.lt.s32.totalorder %v4274_v28, 0  ;;  %vm414_vm8 = vcmp.lt.s32.totalorder %v4277_v31, 0 }
  0x56   : > { %v368_v40 = vadd.s32 %v367_v26, %v365_v36  ;;  %v391_v1 = vadd.s32 %v389_v39, %v383_v27  ;;  %vm392_vm9 = vc.u32 %v390_v37, %v386_v34  ;;  %v394_v41 = vadd.s32 %v390_v37, %v386_v34  ;;  %vm4304_vm10 = vmand %vm413_vm7, %vm406_vm2 }
  0x57   : > { %v339_v43 = vsub.s32 %v4241_v5, %v338_v38  ;;  %v393_v44 = vsel %vm392_vm9, 1, %v4134_v33  ;;  %vm415_vm11 = vcmp.lt.s32.totalorder %v4285_v52, 0  ;;  %vm416_vm12 = vcmp.lt.s32.totalorder %v307_v18, 0  ;;  %vm4313_vm13 = vmand %vm414_vm8, %vm407_vm3 }
  0x58   : > { %v369_v45 = vshrl.u32 %v368_v40, 4  ;;  %v395_v46 = vadd.s32 %v393_v44, %v391_v1  ;;  %vm398_vm14 = vc.u32 %v394_v41, 2454267026  ;;  %vm4319_vm15 = vmand %vm415_vm11, %vm408_vm4  ;;  %v427_v5 = vadd.s32 28, %v4274_v28 }
  0x59   : > { %vm410_vm0 = vcmp.ne.s32.totalorder %v339_v43, 0  ;;  %vm417_vm1 = vcmp.lt.s32.totalorder %v339_v43, 0  ;;  %vm423_vm2 = vmand %vm416_vm12, %vm409_vm6  ;;  %v428_v48 = vadd.s32 28, %v4277_v31  ;;  %v429_v51 = vadd.s32 28, %v4285_v52 }
  0x5a   : > { %v370_v49 = vmul.u32 28, %v369_v45  ;;  %v396_v50 = vadd.s32 %v395_v46, %v385_v32  ;;  %vm424_vm3 = vmand %vm417_vm1, %vm410_vm0  ;;  %v430_v53 = vadd.s32 28, %v307_v18  ;;  %v399_v54 = vsel %vm398_vm14, 1, %v4134_v33 }
  0x5b   : > { %v431_v55 = vadd.s32 28, %v339_v43  ;;  %v4331_v56 = vsel %vm4304_vm10, %v427_v5, %v4274_v28  ;;  %v4336_v57 = vsel %vm4313_vm13, %v428_v48, %v4277_v31  ;;  %v4342_v60 = vsel %vm4319_vm15, %v429_v51, %v4285_v52 }
  0x5c   : > { %7647 = vst [vmem:[#allocation5_spill] sm:$0xff] %v4331_v56  ;;  %v371_v58 = vsub.s32 %v4244_v6, %v370_v49  ;;  %v397_v59 = vadd.s32 %v396_v50, %v387_v4  ;;  %v4344_v33 = vsel %vm423_vm2, %v430_v53, %v307_v18 }
  0x5d   : > { %7648 = vst [vmem:[#allocation6_spill] sm:$0xff] %v4336_v57  ;;  %v4346_v61 = vsel %vm424_vm3, %v431_v55, %v339_v43 }
  0x5e   : > { %7649 = vst [vmem:[#allocation7_spill] sm:$0xff] %v4342_v60  ;;  %v400_v62 = vadd.s32 %v399_v54, %v397_v59  ;;  %vm411_vm4 = vcmp.ne.s32.totalorder %v371_v58, 0  ;;  %vm418_vm5 = vcmp.lt.s32.totalorder %v371_v58, 0  ;;  %v432_v28 = vadd.s32 28, %v371_v58 }
  0x5f   : > { %7650 = vst [vmem:[#allocation8_spill] sm:$0xff] %v4344_v33  ;;  %vm425_vm6 = vmand %vm418_vm5, %vm411_vm4 }
  0x60   : > { %7651 = vst [vmem:[#allocation9_spill] sm:$0xff] %v4346_v61  ;;  %v401_v63 = vshrl.u32 %v400_v62, 4  ;;  %v4348_v31 = vsel %vm425_vm6, %v432_v28, %v371_v58 }
  0x61   : > { %7652 = vst [vmem:[#allocation10_spill] sm:$0xff] %v4348_v31 }
  0x62   : > { %v402_v0 = vmul.u32 28, %v401_v63 }
  0x64   : > { %v403_v6 = vsub.s32 %v4247_v7, %v402_v0 }
  0x66   : > { %vm412_vm7 = vcmp.ne.s32.totalorder %v403_v6, 0  ;;  %vm419_vm8 = vcmp.lt.s32.totalorder %v403_v6, 0  ;;  %v433_v8 = vadd.s32 28, %v403_v6 }
  0x67   : > { %vm426_vm9 = vmand %vm419_vm8, %vm412_vm7 }
  0x68   : > { %v4351_v52 = vsel %vm426_vm9, %v433_v8, %v403_v6 }
  0x69   : > { %7653 = vst [vmem:[#allocation11_spill] sm:$0xff] %v4351_v52 }
  0x6a LB: >> { %s3942_s25 = smul.u32 896, %s4130_s24  ;;  %s4135_s27 = smov 28   ;;  %vm811_vm10 = vcmask 228352   ;;  %vm682_vm11 = vcmask 97280   ;;  %v7680_v56 = vld [vmem:[#allocation5_spill] sm:$0xff]  ;;  %v7681_v57 = vld [vmem:[#allocation6_spill] sm:$0xff]  ;;  %s4130_s24 = sphi %s4353_s24, %s446_s24  }
  0x6b   : >> { %s4136_s28 = smov 12   ;;  %s4137_s29 = smov 101   ;;  %vm1017_vm12 = vcmp.eq.s32.totalorder %v7680_v56, 0  ;;  %vm1018_vm13 = vcmp.eq.s32.totalorder %v7681_v57, 0  ;;  %vm1140_vm1 = vcmask 826368   ;;  %vm1414_vm2 = vcmask 7168  }
  0x6c   : >> { %s4363_s26 = scalar_lea.vmem %s140_s21, %s3942_s25 [#allocation2]  ;;  %s4138_s30 = smov 113   ;;  %vm1558_vm14 = vmpackc.low %vm1018_vm13, %vm1017_vm12  ;;  %v7713_v60 = vld [vmem:[#allocation7_spill] sm:$0xff]  ;;  %v7714_v33 = vld [vmem:[#allocation8_spill] sm:$0xff] }
  0x6d   : >> { %v552_v7 = vld [vmem:[%s4363_s26 + $0x330] sm:$0xff]  ;;  %v553_v3 = vld [vmem:[%s4363_s26 + $0x338] sm:$0xff]  ;;  %v559_v9 = vld [vmem:[%s4363_s26 + $0x368] sm:$0xff]  ;;  %s4139_s3 = smov 1   ;;  %vm1019_vm4 = vcmp.eq.s32.totalorder %v7713_v60, 0  ;;  %vm1020_vm5 = vcmp.eq.s32.totalorder %v7714_v33, 0 }
  0x6e   : >> { %v560_v10 = vld [vmem:[%s4363_s26 + $0x370] sm:$0xff]  ;;  %v4369_v11 = vpack.c.bf16 %v553_v3, %v552_v7  ;;  %v549_v13 = vld [vmem:[%s4363_s26 + $0x318] sm:$0xff]  ;;  %v555_v15 = vld [vmem:[%s4363_s26 + $0x348] sm:$0xff]  ;;  %v7717_v60 = vmov 0   ;;  %s4141_s4 = smov 117   ;;  %s446_s24 = sadd.s32 1, %s4130_s24  }
  0x6f   : >> { %v548_v12 = vld [vmem:[%s4363_s26 + $0x310] sm:$0xff]  ;;  %v4373_v14 = vpack.c.bf16 %v560_v10, %v559_v9  ;;  %v554_v18 = vld [vmem:[%s4363_s26 + $0x340] sm:$0xff]  ;;  %v561_v21 = vld [vmem:[%s4363_s26 + $0x378] sm:$0xff]  ;;  %p443_p7 = scmp.ge.s32.totalorder %s446_s24, 8  }
  0x70   : >> { %v556_v16 = vld [vmem:[%s4363_s26 + $0x350] sm:$0xff]  ;;  %v618_v17 = vpack.c.bf16 %v549_v13, %v548_v12  ;;  %v654_v19 = vunpack.c.h.b16 %v4369_v11  ;;  %v538_v22 = vld [vmem:[%s4363_s26 + $0x2c0] sm:$0xff]  ;;  %v539_v23 = vld [vmem:[%s4363_s26 + $0x2c8] sm:$0xff]  ;;  %v621_v26 = vpack.c.bf16 %v554_v18, %v554_v18  ;;  %v625_v27 = vpack.c.bf16 %v561_v21, %v561_v21 }
  0x71   : >> { %v622_v20 = vpack.c.bf16 %v556_v16, %v555_v15  ;;  %v656_v24 = vunpack.c.h.b16 %v4373_v14  ;;  %v545_v29 = vld [vmem:[%s4363_s26 + $0x2f8] sm:$0xff]  ;;  %v546_v30 = vld [vmem:[%s4363_s26 + $0x300] sm:$0xff]  ;;  %v4385_v34 = vpack.c.bf16 %v539_v23, %v538_v22  ;;  %v540_v37 = vld [vmem:[%s4363_s26 + $0x2d0] sm:$0xff] }
  0x72   : >> { %v733_v25 = vunpack.c.l.b16 %v618_v17  ;;  %v4387_v4 = vpack.c.bf16 %v546_v30, %v545_v29  ;;  %v655_v38 = vunpack.c.l.b16 %v621_v26  ;;  %v657_v39 = vunpack.c.l.b16 %v625_v27  ;;  %v547_v41 = vld [vmem:[%s4363_s26 + $0x308] sm:$0xff]  ;;  %v534_v42 = vld [vmem:[%s4363_s26 + $0x2a0] sm:$0xff]  ;;  %v541_v45 = vld [vmem:[%s4363_s26 + $0x2d8] sm:$0xff] }
  0x73   : >> { %v738_v32 = vunpack.c.l.b16 %v622_v20  ;;  %v664_v35 = vpack.c.b16 %v656_v24, %v654_v19  ;;  %v650_v40 = vunpack.c.h.b16 %v4385_v34  ;;  %v734_v43 = vunpack.c.h.b16 %v618_v17  ;;  %v535_v2 = vld [vmem:[%s4363_s26 + $0x2a8] sm:$0xff]  ;;  %v542_v46 = vld [vmem:[%s4363_s26 + $0x2e0] sm:$0xff]  ;;  %v533_v0 = vld [vmem:[%s4363_s26 + $0x298] sm:$0xff] }
  0x74   : >> { %v652_v1 = vunpack.c.h.b16 %v4387_v4  ;;  %v739_v44 = vunpack.c.h.b16 %v622_v20  ;;  %v613_v47 = vpack.c.bf16 %v540_v37, %v540_v37  ;;  %v617_v5 = vpack.c.bf16 %v547_v41, %v547_v41  ;;  %v526_v63 = vld [vmem:[%s4363_s26 + $0x260] sm:$0xff]  ;;  %v524_v6 = vld [vmem:[%s4363_s26 + $0x250] sm:$0xff]  ;;  %v525_v8 = vld [vmem:[%s4363_s26 + $0x258] sm:$0xff] }
  0x75   : >> { %v758_v36 = vpack.c.b16 %v738_v32, %v733_v25  ;;  %809 = vrot.lane.b32.xlu2 %v664_v35, %s4135_s27  ;;  %678 = vrot.lane.b32.xlu0 %v664_v35, %s4136_s28  ;;  %v665_v48 = vpack.c.b16 %v657_v39, %v655_v38  ;;  %v610_v50 = vpack.c.bf16 %v535_v2, %v534_v42  ;;  %v531_v7 = vld [vmem:[%s4363_s26 + $0x288] sm:$0xff]  ;;  %v532_v3 = vld [vmem:[%s4363_s26 + $0x290] sm:$0xff]  ;;  %vm1559_vm6 = vmpackc.low %vm1020_vm5, %vm1019_vm4 }
  0x76   : >> { %v662_v49 = vpack.c.b16 %v652_v1, %v650_v40  ;;  %v614_v51 = vpack.c.bf16 %v542_v46, %v541_v45  ;;  %v759_v53 = vpack.c.b16 %v739_v44, %v734_v43  ;;  %v651_v54 = vunpack.c.l.b16 %v613_v47  ;;  %v520_v20 = vld [vmem:[%s4363_s26 + $0x230] sm:$0xff]  ;;  %v521_v23 = vld [vmem:[%s4363_s26 + $0x238] sm:$0xff]  ;;  %v527_v24 = vld [vmem:[%s4363_s26 + $0x268] sm:$0xff] }
  0x77   : >> { %799 = vrot.lane.b32.xlu1 %v758_v36, %s4135_s27  ;;  %v653_v55 = vunpack.c.l.b16 %v617_v5  ;;  %v724_v58 = vunpack.c.h.b16 %v610_v50  ;;  %v723_v62 = vunpack.c.l.b16 %v610_v50  ;;  %v605_v12 = vpack.c.bf16 %v526_v63, %v526_v63  ;;  %v528_v25 = vld [vmem:[%s4363_s26 + $0x270] sm:$0xff]  ;;  %v510_v32 = vld [vmem:[%s4363_s26 + $0x1e0] sm:$0xff]  ;;  %v511_v35 = vld [vmem:[%s4363_s26 + $0x1e8] sm:$0xff] }
  0x78   : >> { %v729_v59 = vunpack.c.h.b16 %v614_v51  ;;  %v728_v28 = vunpack.c.l.b16 %v614_v51  ;;  %v609_v13 = vpack.c.bf16 %v533_v0, %v533_v0  ;;  %v4409_v16 = vpack.c.bf16 %v525_v8, %v524_v6  ;;  %v517_v36 = vld [vmem:[%s4363_s26 + $0x218] sm:$0xff]  ;;  %v518_v39 = vld [vmem:[%s4363_s26 + $0x220] sm:$0xff]  ;;  %v507_v42 = vld [vmem:[%s4363_s26 + $0x1c8] sm:$0xff] }
  0x79   : >> { %v663_v9 = vpack.c.b16 %v653_v55, %v651_v54  ;;  %v4411_v17 = vpack.c.bf16 %v532_v3, %v531_v7  ;;  %v647_v18 = vunpack.c.l.b16 %v605_v12  ;;  %v602_v27 = vpack.c.bf16 %v521_v23, %v520_v20  ;;  %v506_v40 = vld [vmem:[%s4363_s26 + $0x1c0] sm:$0xff]  ;;  %v513_v43 = vld [vmem:[%s4363_s26 + $0x1f8] sm:$0xff]  ;;  %v512_v2 = vld [vmem:[%s4363_s26 + $0x1f0] sm:$0xff] }
  0x7a   : >> { %v754_v10 = vpack.c.b16 %v729_v59, %v724_v58  ;;  %v753_v15 = vpack.c.b16 %v728_v28, %v723_v62  ;;  %v649_v19 = vunpack.c.l.b16 %v609_v13  ;;  %v646_v21 = vunpack.c.h.b16 %v4409_v16  ;;  %v514_v44 = vld [vmem:[%s4363_s26 + $0x200] sm:$0xff]  ;;  %v519_v45 = vld [vmem:[%s4363_s26 + $0x228] sm:$0xff]  ;;  %v557_v6 = vld [vmem:[%s4363_s26 + $0x358] sm:$0xff] }
  0x7b   : >> { %v648_v22 = vunpack.c.h.b16 %v4411_v17  ;;  %v606_v29 = vpack.c.bf16 %v528_v25, %v527_v24  ;;  %v713_v37 = vunpack.c.l.b16 %v602_v27  ;;  %v714_v1 = vunpack.c.h.b16 %v602_v27  ;;  %v550_v62 = vld [vmem:[%s4363_s26 + $0x320] sm:$0xff]  ;;  %v551_v0 = vld [vmem:[%s4363_s26 + $0x328] sm:$0xff]  ;;  %v536_v20 = vld [vmem:[%s4363_s26 + $0x2b0] sm:$0xff] }
  0x7c   : >> { %v661_v26 = vpack.c.b16 %v649_v19, %v647_v18  ;;  %v4435_v46 = vpack.c.bf16 %v511_v35, %v510_v32  ;;  %v4437_v5 = vpack.c.bf16 %v518_v39, %v517_v36  ;;  %v597_v51 = vpack.c.bf16 %v512_v2, %v512_v2  ;;  %v558_v8 = vld [vmem:[%s4363_s26 + $0x360] sm:$0xff]  ;;  %v544_v23 = vld [vmem:[%s4363_s26 + $0x2f0] sm:$0xff]  ;;  %v523_v39 = vld [vmem:[%s4363_s26 + $0x248] sm:$0xff] }
  0x7d   : >> { %680 = vrot.lane.b32.xlu0 %v665_v48, %s4136_s28  ;;  %674 = vrot.lane.b32.xlu2 %v662_v49, %s4136_s28  ;;  %v660_v30 = vpack.c.b16 %v648_v22, %v646_v21  ;;  %v718_v38 = vunpack.c.l.b16 %v606_v29  ;;  %v719_v41 = vunpack.c.h.b16 %v606_v29  ;;  %v594_v48 = vpack.c.bf16 %v507_v42, %v506_v40  ;;  %v537_v21 = vld [vmem:[%s4363_s26 + $0x2b8] sm:$0xff]  ;;  %v543_v22 = vld [vmem:[%s4363_s26 + $0x2e8] sm:$0xff]  ;;  %v7732_v61 = vld [vmem:[#allocation9_spill] sm:$0xff] }
  0x7e   : >> { %v642_v54 = vunpack.c.h.b16 %v4435_v46  ;;  %v644_v55 = vunpack.c.h.b16 %v4437_v5  ;;  %v643_v28 = vunpack.c.l.b16 %v597_v51  ;;  %v615_v27 = vpack.c.bf16 %v544_v23, %v543_v22  ;;  %v522_v36 = vld [vmem:[%s4363_s26 + $0x240] sm:$0xff]  ;;  %v529_v40 = vld [vmem:[%s4363_s26 + $0x278] sm:$0xff]  ;;  %v496_v57 = vld [vmem:[%s4363_s26 + $0x170] sm:$0xff] }
  0x7f   : >> { %801 = vrot.lane.b32.xlu1 %v759_v53, %s4135_s27  ;;  %v748_v47 = vpack.c.b16 %v718_v38, %v713_v37  ;;  %v749_v50 = vpack.c.b16 %v719_v41, %v714_v1  ;;  %v601_v53 = vpack.c.bf16 %v519_v45, %v519_v45  ;;  %v703_v58 = vunpack.c.l.b16 %v594_v48  ;;  %v530_v1 = vld [vmem:[%s4363_s26 + $0x280] sm:$0xff]  ;;  %v7733_v31 = vld [vmem:[#allocation10_spill] sm:$0xff] }
  0x80   : >> { %v658_v7 = vpack.c.b16 %v644_v55, %v642_v54  ;;  %v704_v13 = vunpack.c.h.b16 %v594_v48  ;;  %v730_v35 = vunpack.c.l.b16 %v615_v27  ;;  %v737_v37 = vunpack.c.l.b16 %v4369_v11 }
  0x81   : >> { %v645_v63 = vunpack.c.l.b16 %v601_v53  ;;  %v742_v38 = vunpack.c.l.b16 %v4373_v14  ;;  %v727_v11 = vunpack.c.l.b16 %v4385_v34  ;;  %v732_v14 = vunpack.c.l.b16 %v4387_v4 }
  0x82   : >> { %v717_v34 = vunpack.c.l.b16 %v4409_v16  ;;  %v722_v4 = vunpack.c.l.b16 %v4411_v17 }
  0x83   : >> { %v659_v12 = vpack.c.b16 %v645_v63, %v643_v28  ;;  %v762_v2 = vpack.c.b16 %v742_v38, %v737_v37  ;;  %v757_v53 = vpack.c.b16 %v732_v14, %v727_v11  ;;  %v509_v28 = vld [vmem:[%s4363_s26 + $0x1d8] sm:$0xff]  ;;  %v515_v63 = vld [vmem:[%s4363_s26 + $0x208] sm:$0xff] }
  0x85   : >> { %676 = vrot.lane.b32.xlu0 %v663_v9, %s4136_s28  ;;  %789 = vrot.lane.b32.xlu2 %v754_v10, %s4135_s27  ;;  %v619_v9 = vpack.c.bf16 %v551_v0, %v550_v62  ;;  %v623_v10 = vpack.c.bf16 %v558_v8, %v557_v6  ;;  %v508_v62 = vld [vmem:[%s4363_s26 + $0x1d0] sm:$0xff] }
  0x86   : >> { %v516_v0 = vld [vmem:[%s4363_s26 + $0x210] sm:$0xff] }
  0x87   : >> { %787 = vrot.lane.b32.xlu1 %v753_v15, %s4135_s27  ;;  %v735_v18 = vunpack.c.l.b16 %v619_v9  ;;  %v740_v19 = vunpack.c.l.b16 %v623_v10  ;;  %v736_v29 = vunpack.c.h.b16 %v619_v9 }
  0x89   : >> { %v760_v25 = vpack.c.b16 %v740_v19, %v735_v18  ;;  %v500_v19 = vld [vmem:[%s4363_s26 + $0x190] sm:$0xff] }
  0x8d   : >> { %797 = vrot.lane.b32.xlu0 %v662_v49, %s4135_s27  ;;  %672 = vrot.lane.b32.xlu2 %v661_v26, %s4136_s28  ;;  %v598_v49 = vpack.c.bf16 %v514_v44, %v513_v43  ;;  %v611_v26 = vpack.c.bf16 %v537_v21, %v536_v20  ;;  %v603_v43 = vpack.c.bf16 %v523_v39, %v522_v36 }
  0x8e   : >> { %v607_v44 = vpack.c.bf16 %v530_v1, %v529_v40 }
  0x8f   : >> { %670 = vrot.lane.b32.xlu1 %v660_v30, %s4136_s28  ;;  %v708_v59 = vunpack.c.l.b16 %v598_v49  ;;  %v709_v15 = vunpack.c.h.b16 %v598_v49  ;;  %v725_v32 = vunpack.c.l.b16 %v611_v26  ;;  %v726_v45 = vunpack.c.h.b16 %v611_v26 }
  0x90   : >> { %v715_v48 = vunpack.c.l.b16 %v603_v43  ;;  %v720_v49 = vunpack.c.l.b16 %v607_v44  ;;  %v716_v54 = vunpack.c.h.b16 %v603_v43  ;;  %v721_v55 = vunpack.c.h.b16 %v607_v44 }
  0x91   : >> { %v743_v3 = vpack.c.b16 %v708_v59, %v703_v58  ;;  %v744_v24 = vpack.c.b16 %v709_v15, %v704_v13  ;;  %v755_v42 = vpack.c.b16 %v730_v35, %v725_v32  ;;  %v707_v58 = vunpack.c.l.b16 %v4435_v46  ;;  %v493_v13 = vld [vmem:[%s4363_s26 + $0x158] sm:$0xff]  ;;  %v499_v15 = vld [vmem:[%s4363_s26 + $0x188] sm:$0xff] }
  0x92   : >> { %v750_v51 = vpack.c.b16 %v720_v49, %v715_v48  ;;  %v712_v59 = vunpack.c.l.b16 %v4437_v5  ;;  %v751_v6 = vpack.c.b16 %v721_v55, %v716_v54  ;;  %v599_v46 = vpack.c.bf16 %v516_v0, %v515_v63  ;;  %v505_v32 = vld [vmem:[%s4363_s26 + $0x1b8] sm:$0xff] }
  0x93   : >> { %v590_v21 = vpack.c.bf16 %v500_v19, %v499_v15  ;;  %v593_v36 = vpack.c.bf16 %v505_v32, %v505_v32  ;;  %v484_v19 = vld [vmem:[%s4363_s26 + $0x110] sm:$0xff] }
  0x94   : >> { %v747_v8 = vpack.c.b16 %v712_v59, %v707_v58  ;;  %v710_v16 = vunpack.c.l.b16 %v599_v46  ;;  %v711_v9 = vunpack.c.h.b16 %v599_v46  ;;  %v478_v46 = vld [vmem:[%s4363_s26 + $0xe0] sm:$0xff] }
  0x95   : >> { %785 = vrot.lane.b32.xlu2 %v660_v30, %s4135_s27  ;;  %775 = vrot.lane.b32.xlu0 %v748_v47, %s4135_s27  ;;  %v741_v30 = vunpack.c.h.b16 %v623_v10  ;;  %v731_v47 = vunpack.c.h.b16 %v615_v27  ;;  %v954_v23 = vunpack.c.l.b16 %v590_v21  ;;  %v960_v38 = vunpack.c.l.b16 %v593_v36 }
  0x97   : >> { %777 = vrot.lane.b32.xlu1 %v749_v50, %s4135_s27  ;;  %v761_v41 = vpack.c.b16 %v741_v30, %v736_v29  ;;  %v756_v50 = vpack.c.b16 %v731_v47, %v726_v45  ;;  %v498_v30 = vld [vmem:[%s4363_s26 + $0x180] sm:$0xff] }
  0x98   : >> { %v589_v35 = vpack.c.bf16 %v498_v30, %v498_v30 }
  0x9a   : >> { %v953_v37 = vunpack.c.l.b16 %v589_v35 }
  0x9c   : >> { %v4503_v40 = vpack.c.b16 %v960_v38, %v953_v37 }
  0x9d   : >> { %666 = vrot.lane.b32.xlu0 %v658_v7, %s4136_s28  ;;  %763 = vrot.lane.b32.xlu2 %v743_v3, %s4135_s27  ;;  %v752_v3 = vpack.c.b16 %v722_v4, %v717_v34 }
  0x9f   : >> { %668 = vrot.lane.b32.xlu1 %v659_v12, %s4136_s28  ;;  %v492_v12 = vld [vmem:[%s4363_s26 + $0x150] sm:$0xff] }
  0xa0   : >> { %v586_v20 = vpack.c.bf16 %v493_v13, %v492_v12 }
  0xa2   : >> { %v947_v22 = vunpack.c.l.b16 %v586_v20 }
  0xa4   : >> { %v4489_v26 = vpack.c.b16 %v954_v23, %v947_v22  ;;  %v465_v22 = vld [vmem:[%s4363_s26 + $0x78] sm:$0xff]  ;;  %v471_v23 = vld [vmem:[%s4363_s26 + $0xa8] sm:$0xff] }
  0xa5   : >> { %765 = vrot.lane.b32.xlu0 %v744_v24, %s4135_s27  ;;  %803 = vrot.lane.b32.xlu2 %v760_v25, %s4135_s27  ;;  %v948_v24 = vunpack.c.h.b16 %v586_v20  ;;  %v955_v25 = vunpack.c.h.b16 %v590_v21  ;;  %v491_v20 = vld [vmem:[%s4363_s26 + $0x148] sm:$0xff]  ;;  %v464_v21 = vld [vmem:[%s4363_s26 + $0x70] sm:$0xff] }
  0xa6   : >> { %7654 = vst [vmem:[#allocation12_spill] sm:$0xff] %v4489_v26  ;;  %v585_v30 = vpack.c.bf16 %v491_v20, %v491_v20  ;;  %v570_v35 = vpack.c.bf16 %v465_v22, %v464_v21 }
  0xa7   : >> { %773 = vrot.lane.b32.xlu1 %v658_v7, %s4135_s27  ;;  %v595_v7 = vpack.c.bf16 %v509_v28, %v508_v62  ;;  %v4491_v27 = vpack.c.b16 %v955_v25, %v948_v24  ;;  %v472_v24 = vld [vmem:[%s4363_s26 + $0xb0] sm:$0xff]  ;;  %v581_v25 = vpack.c.bf16 %v484_v19, %v484_v19 }
  0xa8   : >> { %v574_v36 = vpack.c.bf16 %v472_v24, %v471_v23 }
  0xa9   : >> { %v705_v5 = vunpack.c.l.b16 %v595_v7  ;;  %v706_v17 = vunpack.c.h.b16 %v595_v7  ;;  %7655 = vst [vmem:[#allocation13_spill] sm:$0xff] %v4491_v27 }
  0xab   : >> { %v745_v10 = vpack.c.b16 %v710_v16, %v705_v5  ;;  %v746_v18 = vpack.c.b16 %v711_v9, %v706_v17  ;;  %v485_v5 = vld [vmem:[%s4363_s26 + $0x118] sm:$0xff]  ;;  %v486_v16 = vld [vmem:[%s4363_s26 + $0x120] sm:$0xff] }
  0xac   : >> { %v582_v9 = vpack.c.bf16 %v486_v16, %v485_v5  ;;  %v456_v5 = vld [vmem:[%s4363_s26 + $0x30] sm:$0xff]  ;;  %v463_v16 = vld [vmem:[%s4363_s26 + $0x68] sm:$0xff] }
  0xad   : >> { %805 = vrot.lane.b32.xlu0 %v761_v41, %s4135_s27  ;;  %791 = vrot.lane.b32.xlu2 %v755_v42, %s4135_s27  ;;  %v565_v20 = vpack.c.bf16 %v456_v5, %v456_v5  ;;  %v569_v21 = vpack.c.bf16 %v463_v16, %v463_v16 }
  0xae   : >> { %v940_v38 = vunpack.c.l.b16 %v582_v9 }
  0xaf   : >> { %807 = vrot.lane.b32.xlu1 %v762_v2, %s4135_s27 }
  0xb5   : >> { %793 = vrot.lane.b32.xlu0 %v756_v50, %s4135_s27  ;;  %779 = vrot.lane.b32.xlu2 %v750_v51, %s4135_s27 }
  0xb7   : >> { %795 = vrot.lane.b32.xlu1 %v757_v53, %s4135_s27 }
  0xbd   : >> { %781 = vrot.lane.b32.xlu0 %v751_v6, %s4135_s27  ;;  %771 = vrot.lane.b32.xlu2 %v747_v8, %s4135_s27 }
  0xbf   : >> { %783 = vrot.lane.b32.xlu1 %v752_v3, %s4135_s27  ;;  %v479_v3 = vld [vmem:[%s4363_s26 + $0xe8] sm:$0xff] }
  0xc0   : >> { %v578_v17 = vpack.c.bf16 %v479_v3, %v478_v46  ;;  %v457_v46 = vld [vmem:[%s4363_s26 + $0x38] sm:$0xff]  ;;  %v458_v3 = vld [vmem:[%s4363_s26 + $0x40] sm:$0xff] }
  0xc2   : >> { %v934_v15 = vunpack.c.h.b16 %v578_v17  ;;  %v933_v37 = vunpack.c.l.b16 %v578_v17 }
  0xc5   : >> { %767 = vrot.lane.b32.xlu0 %v745_v10, %s4135_s27  ;;  %1292 = vrot.lane.b32.xlu2 %v4503_v40, %s4138_s30 }
  0xc7   : >> { %769 = vrot.lane.b32.xlu1 %v746_v18, %s4135_s27  ;;  %v941_v18 = vunpack.c.h.b16 %v582_v9 }
  0xc9   : >> { %v4593_v32 = vpack.c.b16 %v941_v18, %v934_v15  ;;  %v566_v18 = vpack.c.bf16 %v458_v3, %v457_v46 }
  0xcb   : >> { %7668 = vst [vmem:[#allocation26_spill] sm:$0xff] %v4593_v32 }
  0xcd   : >> { %1070 = vrot.lane.b32.xlu0 %v4489_v26, %s4137_s29 }
  0xcf   : >> { %1072 = vrot.lane.b32.xlu1 %v4491_v27, %s4137_s29  ;;  %v4497_v29 = vpop.permute.xlu2 %809 }
  0xd0   : >> { %7656 = vst [vmem:[#allocation14_spill] sm:$0xff] %v4497_v29 }
  0xd7   : >> { %1300 = vrot.lane.b32.xlu1 %v4497_v29, %s4138_s30  ;;  %v675_v39 = vpop.permute.xlu2 %674 }
  0xdf   : >> { %v4507_v1 = vpop.permute.xlu2 %789 }
  0xe7   : >> { %v679_v41 = vpop.permute.xlu0 %678  ;;  %v673_v42 = vpop.permute.xlu2 %672 }
  0xe9   : >> { %v800_v43 = vpop.permute.xlu1 %799 }
  0xef   : >> { %v681_v44 = vpop.permute.xlu0 %680  ;;  %v4509_v2 = vpop.permute.xlu2 %785 }
  0xf0   : >> { %7657 = vst [vmem:[#allocation15_spill] sm:$0xff] %v4509_v2  ;;  %1296 = vrot.lane.b32.xlu0 %v4509_v2, %s4138_s30  ;;  %v686_v54 = vsel %vm682_vm11, %v679_v41, %v681_v44  ;;  %v946_v41 = vunpack.c.l.b16 %v585_v30 }
  0xf1   : >> { %v4511_v45 = vpop.permute.xlu1 %801  ;;  %v4535_v59 = vsel %vm811_vm10, %v686_v54, %v800_v43  ;;  %v920_v54 = vunpack.c.h.b16 %v570_v35 }
  0xf2   : >> { %v4517_v48 = vsel %vm811_vm10, %v800_v43, %v4511_v45  ;;  %7661 = vst [vmem:[#allocation19_spill] sm:$0xff] %v4535_v59  ;;  %v926_v43 = vunpack.c.l.b16 %v574_v36 }
  0xf3   : >> { %7658 = vst [vmem:[#allocation16_spill] sm:$0xff] %v4517_v48 }
  0xf7   : >> { %v677_v47 = vpop.permute.xlu0 %676  ;;  %v764_v62 = vpop.permute.xlu2 %763 }
  0xf8   : >> { %1128 = vrot.lane.b32.xlu0 %v4517_v48, %s4137_s29  ;;  %v685_v63 = vsel %vm682_vm11, %v675_v39, %v677_v47  ;;  %v939_v39 = vunpack.c.l.b16 %v581_v25  ;;  %v4603_v47 = vpack.c.b16 %v940_v38, %v933_v37  ;;  %v912_v25 = vunpack.c.l.b16 %v566_v18 }
  0xf9   : >> { %v788_v49 = vpop.permute.xlu1 %787 }
  0xfa   : >> { %v4557_v6 = vsel %vm811_vm10, %v788_v49, %v4507_v1  ;;  %v4560_v8 = vsel %vm811_vm10, %v685_v63, %v788_v49  ;;  %7669 = vst [vmem:[#allocation27_spill] sm:$0xff] %v4603_v47  ;;  %v4605_v49 = vpack.c.b16 %v946_v41, %v939_v39  ;;  %v450_v63 = vld [vmem:[%s4363_s26] sm:$0xff] }
  0xfb   : >> { %7664 = vst [vmem:[#allocation22_spill] sm:$0xff] %v4557_v6 }
  0xfc   : >> { %7665 = vst [vmem:[#allocation23_spill] sm:$0xff] %v4560_v8 }
  0xff   : >> { %v4521_v11 = vpop.permute.xlu0 %797  ;;  %v4583_v13 = vpop.permute.xlu2 %803 }
 0x100   : >> { %7659 = vst [vmem:[#allocation17_spill] sm:$0xff] %v4521_v11  ;;  %1298 = vrot.lane.b32.xlu2 %v4521_v11, %s4138_s30  ;;  %v4678_v16 = vsel %vm811_vm10, %v4511_v45, %v4583_v13 }
 0x101   : >> { %v671_v14 = vpop.permute.xlu1 %670  ;;  %7678 = vst [vmem:[#allocation36_spill] sm:$0xff] %v4678_v16 }
 0x102   : >> { %v684_v10 = vsel %vm682_vm11, %v671_v14, %v673_v42  ;;  %v919_v42 = vunpack.c.l.b16 %v570_v35  ;;  %v911_v35 = vunpack.c.l.b16 %v565_v20 }
 0x104   : >> { %v4607_v14 = vpack.c.b16 %v926_v43, %v919_v42 }
 0x106   : >> { %7670 = vst [vmem:[#allocation28_spill] sm:$0xff] %v4607_v14 }
 0x107   : >> { %v776_v50 = vpop.permute.xlu0 %775  ;;  %v4601_v44 = vpop.permute.xlu2 %791 }
 0x108   : >> { %v4577_v12 = vsel %vm811_vm10, %v684_v10, %v776_v50 }
 0x109   : >> { %v4525_v51 = vpop.permute.xlu1 %777  ;;  %7667 = vst [vmem:[#allocation25_spill] sm:$0xff] %v4577_v12 }
 0x10a   : >> { %v4529_v53 = vsel %vm811_vm10, %v776_v50, %v4525_v51 }
 0x10b   : >> { %7660 = vst [vmem:[#allocation18_spill] sm:$0xff] %v4529_v53  ;;  %1100 = vrot.lane.b32.xlu2 %v4529_v53, %s4137_s29 }
 0x10f   : >> { %v667_v55 = vpop.permute.xlu0 %666  ;;  %v4625_v19 = vpop.permute.xlu2 %779 }
 0x111   : >> { %v669_v58 = vpop.permute.xlu1 %668 }
 0x112   : >> { %v683_v0 = vsel %vm682_vm11, %v667_v55, %v669_v58  ;;  %v927_v55 = vunpack.c.h.b16 %v574_v36  ;;  %v470_v58 = vld [vmem:[%s4363_s26 + $0xa0] sm:$0xff]  ;;  %v918_v36 = vunpack.c.l.b16 %v569_v21  ;;  %v4714_v21 = vsel %vm811_vm10, %v4507_v1, %v4601_v44 }
 0x113   : >> { %1126 = vrot.lane.b32.xlu2 %v4535_v59, %s4137_s29  ;;  %v4565_v7 = vsel %vm811_vm10, %v683_v0, %v764_v62  ;;  %v451_v0 = vld [vmem:[%s4363_s26 + $0x8] sm:$0xff]  ;;  %v573_v9 = vpack.c.bf16 %v470_v58, %v470_v58  ;;  %7682 = vst [vmem:[#allocation38_spill] sm:$0xff] %v4714_v21 }
 0x114   : >> { %7666 = vst [vmem:[#allocation24_spill] sm:$0xff] %v4565_v7  ;;  %v4623_v17 = vpack.c.b16 %v927_v55, %v920_v54  ;;  %v562_v15 = vpack.c.bf16 %v451_v0, %v450_v63  ;;  %v4639_v41 = vpack.c.b16 %v918_v36, %v911_v35  ;;  %v913_v54 = vunpack.c.h.b16 %v566_v18 }
 0x115   : >> { %v925_v22 = vunpack.c.l.b16 %v573_v9 }
 0x116   : >> { %7671 = vst [vmem:[#allocation29_spill] sm:$0xff] %v4623_v17  ;;  %v905_v24 = vunpack.c.l.b16 %v562_v15  ;;  %v906_v43 = vunpack.c.h.b16 %v562_v15  ;;  %v7532_v15 = vmov 0  }
 0x117   : >> { %v4539_v34 = vpop.permute.xlu0 %765  ;;  %7674 = vst [vmem:[#allocation32_spill] sm:$0xff] %v4639_v41  ;;  %v4641_v42 = vpop.permute.xlu2 %771  ;;  %v4707_v18 = vsel %vm1558_vm14, 65537, %v7532_v15  ;;  %v4730_v35 = vunpack.c.l.b16 %v7532_v15 }
 0x118   : >> { %v4545_v28 = vsel %vm811_vm10, %v764_v62, %v4539_v34  ;;  %v477_v62 = vld [vmem:[%s4363_s26 + $0xd8] sm:$0xff]  ;;  %v4637_v39 = vpack.c.b16 %v912_v25, %v905_v24  ;;  %v4651_v58 = vpack.c.b16 %v913_v54, %v906_v43 }
 0x119   : >> { %v4541_v4 = vpop.permute.xlu1 %773  ;;  %7663 = vst [vmem:[#allocation21_spill] sm:$0xff] %v4545_v28  ;;  %1086 = vrot.lane.b32.xlu0 %v4545_v28, %s4137_s29  ;;  %v577_v10 = vpack.c.bf16 %v477_v62, %v477_v62 }
 0x11a   : >> { %7662 = vst [vmem:[#allocation20_spill] sm:$0xff] %v4541_v4  ;;  %1294 = vrot.lane.b32.xlu1 %v4541_v4, %s4138_s30 }
 0x11b   : >> { %1400 = vrot.lane.b32.xlu2 %v4535_v59, %s4139_s3  ;;  %v932_v23 = vunpack.c.l.b16 %v577_v10  ;;  %7673 = vst [vmem:[#allocation31_spill] sm:$0xff] %v4637_v39 }
 0x11c   : >> { %7675 = vst [vmem:[#allocation33_spill] sm:$0xff] %v4651_v58 }
 0x11d   : >> { %v4635_v38 = vpack.c.b16 %v932_v23, %v925_v22  ;;  %v1566_v23 = vperm.slane %v4707_v18, 0 }
 0x11f   : >> { %v806_v50 = vpop.permute.xlu0 %805  ;;  %7672 = vst [vmem:[#allocation30_spill] sm:$0xff] %v4635_v38  ;;  %v4659_v0 = vpop.permute.xlu2 %1292  ;;  %v1573_v1 = vunpack.c.l.b16 %v1566_v23 }
 0x120   : >> { %v4657_v63 = vsel %vm811_vm10, %v4583_v13, %v806_v50 }
 0x121   : >> { %1112 = vrot.lane.b32.xlu0 %v4560_v8, %s4137_s29  ;;  %v4633_v37 = vpop.permute.xlu1 %807  ;;  %7676 = vst [vmem:[#allocation34_spill] sm:$0xff] %v4657_v63  ;;  %vm1577_vm15 = vcmp.ne.s32.totalorder %v1573_v1, %v4730_v35 }
 0x122   : >> { %1114 = vrot.lane.b32.xlu1 %v4557_v6, %s4137_s29  ;;  %v4671_v3 = vsel %vm811_vm10, %v806_v50, %v4633_v37 }
 0x123   : >> { %1084 = vrot.lane.b32.xlu2 %v4565_v7, %s4137_s29  ;;  %7677 = vst [vmem:[#allocation35_spill] sm:$0xff] %v4671_v3 }
 0x127   : >> { %v794_v30 = vpop.permute.xlu0 %793 }
 0x128   : >> { %v4692_v10 = vsel %vm811_vm10, %v4601_v44, %v794_v30  ;;  %v1574_v44 = vunpack.c.h.b16 %v1566_v23 }
 0x129   : >> { %1386 = vrot.lane.b32.xlu0 %v4560_v8, %s4139_s3  ;;  %v4653_v62 = vpop.permute.xlu1 %795  ;;  %7679 = vst [vmem:[#allocation37_spill] sm:$0xff] %v4692_v10 }
 0x12a   : >> { %1098 = vrot.lane.b32.xlu1 %v4577_v12, %s4137_s29  ;;  %v4718_v22 = vsel %vm811_vm10, %v794_v30, %v4653_v62  ;;  %v4733_v30 = vunpack.c.h.b16 %v7532_v15 }
 0x12b   : >> { %1358 = vrot.lane.b32.xlu2 %v4565_v7, %s4139_s3  ;;  %7683 = vst [vmem:[#allocation39_spill] sm:$0xff] %v4718_v22 }
 0x12c   : >> { %vm1578_vm0 = vcmp.ne.s32.totalorder %v1574_v44, %v4733_v30 }
 0x12d   : >> { %vm4745_vm3 = vmpackc.low %vm1578_vm0, %vm1577_vm15  ;;  %vm1021_vm0 = vcmp.eq.s32.totalorder %v7732_v61, 0 }
 0x12f   : >> { %v4649_v55 = vpop.permute.xlu0 %781 }
 0x131   : >> { %1344 = vrot.lane.b32.xlu0 %v4489_v26, %s4139_s3  ;;  %v4673_v5 = vpop.permute.xlu1 %783 }
 0x132   : >> { %1372 = vrot.lane.b32.xlu1 %v4577_v12, %s4139_s3 }
 0x133   : >> { %1058 = vrot.lane.b32.xlu2 %v4593_v32, %s4137_s29 }
 0x137   : >> { %v4667_v46 = vpop.permute.xlu0 %767 }
 0x139   : >> { %1290 = vrot.lane.b32.xlu0 %v4605_v49, %s4138_s30  ;;  %v4696_v45 = vpop.permute.xlu1 %769 }
 0x13a   : >> { %1056 = vrot.lane.b32.xlu1 %v4603_v47, %s4137_s29 }
 0x13b   : >> { %1042 = vrot.lane.b32.xlu2 %v4607_v14, %s4137_s29 }
 0x13f   : >> { %v4688_v50 = vpop.permute.xlu0 %1070 }
 0x141   : >> { %1044 = vrot.lane.b32.xlu0 %v4623_v17, %s4137_s29  ;;  %v4725_v24 = vpop.permute.xlu1 %1072 }
 0x142   : >> { %1330 = vrot.lane.b32.xlu1 %v4603_v47, %s4139_s3 }
 0x143   : >> { %1316 = vrot.lane.b32.xlu2 %v4607_v14, %s4139_s3 }
 0x149   : >> { %1028 = vrot.lane.b32.xlu0 %v4637_v39, %s4137_s29  ;;  %v1301_v54 = vpop.permute.xlu1 %1300 }
 0x14a   : >> { %1288 = vrot.lane.b32.xlu1 %v4635_v38, %s4138_s30 }
 0x14b   : >> { %1286 = vrot.lane.b32.xlu2 %v4639_v41, %s4138_s30 }
 0x151   : >> { %1302 = vrot.lane.b32.xlu0 %v4637_v39, %s4139_s3 }
 0x152   : >> { %1030 = vrot.lane.b32.xlu1 %v4651_v58, %s4137_s29 }
 0x153   : >> { %1132 = vrot.lane.b32.xlu2 %v4657_v63, %s4137_s29 }
 0x159   : >> { %1134 = vrot.lane.b32.xlu0 %v4671_v3, %s4137_s29 }
 0x15a   : >> { %1130 = vrot.lane.b32.xlu1 %v4678_v16, %s4137_s29  ;;  %v4686_v9 = vpop.permute.xlu2 %1298 }
 0x15b   : >> { %1404 = vrot.lane.b32.xlu2 %v4678_v16, %s4139_s3  ;;  %v502_v16 = vld [vmem:[%s4363_s26 + $0x1a0] sm:$0xff] }
 0x161   : >> { %1406 = vrot.lane.b32.xlu0 %v4657_v63, %s4139_s3  ;;  %v4822_v63 = vsel %vm811_vm10, %v4667_v46, %v4696_v45 }
 0x162   : >> { %1402 = vrot.lane.b32.xlu1 %v4517_v48, %s4139_s3  ;;  %v4709_v20 = vpop.permute.xlu0 %1296  ;;  %7694 = vst [vmem:[#allocation48_spill] sm:$0xff] %v4822_v63  ;;  %v4841_v48 = vsel %vm811_vm10, %v4696_v45, %v4641_v42  ;;  %v503_v45 = vld [vmem:[%s4363_s26 + $0x1a8] sm:$0xff] }
 0x163   : >> { %1118 = vrot.lane.b32.xlu2 %v4692_v10, %s4137_s29  ;;  %7695 = vst [vmem:[#allocation49_spill] sm:$0xff] %v4841_v48 }
 0x165   : >> { %v4704_v13 = vpop.permute.xlu2 %1100 }
 0x169   : >> { %1120 = vrot.lane.b32.xlu0 %v4718_v22, %s4137_s29 }
 0x16a   : >> { %1116 = vrot.lane.b32.xlu1 %v4714_v21, %s4137_s29  ;;  %v4741_v36 = vpop.permute.xlu0 %1128 }
 0x16b   : >> { %1390 = vrot.lane.b32.xlu2 %v4714_v21, %s4139_s3  ;;  %v495_v21 = vld [vmem:[%s4363_s26 + $0x168] sm:$0xff] }
 0x16d   : >> { %v1127_v25 = vpop.permute.xlu2 %1126 }
 0x16e   : >> { %v1183_v1 = vsel %vm1140_vm1, %v1127_v25, %v4741_v36  ;;  %v4771_v25 = vsel %vm811_vm10, %v4525_v51, %v4625_v19  ;;  %v4789_v51 = vsel %vm811_vm10, %v4625_v19, %v4649_v55  ;;  %v4809_v19 = vsel %vm811_vm10, %v4539_v34, %v4667_v46  ;;  %v494_v34 = vld [vmem:[%s4363_s26 + $0x160] sm:$0xff]  ;;  %v501_v46 = vld [vmem:[%s4363_s26 + $0x198] sm:$0xff] }
 0x16f   : >> { %7688 = vst [vmem:[#allocation42_spill] sm:$0xff] %v4771_v25 }
 0x170   : >> { %7690 = vst [vmem:[#allocation44_spill] sm:$0xff] %v4789_v51 }
 0x171   : >> { %1392 = vrot.lane.b32.xlu0 %v4692_v10, %s4139_s3  ;;  %v4766_v10 = vsel %vm811_vm10, %v4633_v37, %v4497_v29  ;;  %7692 = vst [vmem:[#allocation46_spill] sm:$0xff] %v4809_v19 }
 0x172   : >> { %1388 = vrot.lane.b32.xlu1 %v4557_v6, %s4139_s3  ;;  %7687 = vst [vmem:[#allocation41_spill] sm:$0xff] %v4766_v10  ;;  %v591_v6 = vpack.c.bf16 %v502_v16, %v501_v46  ;;  %v504_v46 = vld [vmem:[%s4363_s26 + $0x1b0] sm:$0xff] }
 0x173   : >> { %1408 = vrot.lane.b32.xlu2 %v4671_v3, %s4139_s3  ;;  %v4873_v41 = vpack.c.bf16 %v504_v46, %v503_v45 }
 0x175   : >> { %v4749_v23 = vpop.permute.xlu2 %1400 }
 0x176   : >> { %v1542_v44 = vsel %vm1414_vm2, %v1301_v54, %v4749_v23  ;;  %v4778_v54 = vsel %vm811_vm10, %v4649_v55, %v4673_v5 }
 0x177   : >> { %v4757_v15 = vsel %vm4745_vm3, %v1183_v1, %v1542_v44  ;;  %7689 = vst [vmem:[#allocation43_spill] sm:$0xff] %v4778_v54  ;;  %v4802_v44 = vsel %vm811_vm10, %v4653_v62, %v4521_v11 }
 0x178   : >> { %7686 = vst [vmem:[#allocation40_spill] sm:$0xff] %v4757_v15  ;;  %2353 = vmatpush.bf16.msra.mxu0 %v4757_v15  ;;  %3968 = vmatpush.bf16.msra.mxu1 %v4757_v15 }
 0x179   : >> { %3969 = vmatpush.bf16.msra.mxu2 %v4757_v15  ;;  %3970 = vmatpush.bf16.msra.mxu3 %v4757_v15  ;;  %7691 = vst [vmem:[#allocation45_spill] sm:$0xff] %v4802_v44 }
 0x17a   : >> { %1136 = vrot.lane.b32.xlu1 %v4766_v10, %s4137_s29  ;;  %1102 = vrot.lane.b32.xlu0 %v4771_v25, %s4137_s29 }
 0x17b   : >> { %1106 = vrot.lane.b32.xlu2 %v4778_v54, %s4137_s29 }
 0x17d   : >> { %v4784_v37 = vpop.permute.xlu2 %1084 }
 0x182   : >> { %1104 = vrot.lane.b32.xlu1 %v4789_v51, %s4137_s29  ;;  %1374 = vrot.lane.b32.xlu0 %v4529_v53, %s4139_s3 }
 0x183   : >> { %1378 = vrot.lane.b32.xlu2 %v4789_v51, %s4139_s3 }
 0x185   : >> { %v4797_v1 = vpop.permute.xlu2 %1358 }
 0x18a   : >> { %1376 = vrot.lane.b32.xlu1 %v4771_v25, %s4139_s3  ;;  %1122 = vrot.lane.b32.xlu0 %v4802_v44, %s4137_s29 }
 0x18b   : >> { %1088 = vrot.lane.b32.xlu2 %v4809_v19, %s4137_s29  ;;  %v4815_v51 = vpop.permute.xlu0 %1086 }
 0x18c   : >> { %v1295_v55 = vpop.permute.xlu1 %1294 }
 0x18d   : >> { %v4817_v62 = vpop.permute.xlu2 %1058 }
 0x18e   : >> { %7693 = vst [vmem:[#allocation47_spill] sm:$0xff] %v4817_v62 }
 0x192   : >> { %1394 = vrot.lane.b32.xlu1 %v4718_v22, %s4139_s3  ;;  %1090 = vrot.lane.b32.xlu0 %v4822_v63, %s4137_s29  ;;  %v587_v22 = vpack.c.bf16 %v495_v21, %v494_v34  ;;  %v957_v21 = vunpack.c.h.b16 %v591_v6  ;;  %v497_v34 = vld [vmem:[%s4363_s26 + $0x178] sm:$0xff] }
 0x193   : >> { %1360 = vrot.lane.b32.xlu2 %v4545_v28, %s4139_s3  ;;  %v1113_v25 = vpop.permute.xlu0 %1112  ;;  %v4848_v28 = vsel %vm811_vm10, %v4673_v5, %v4509_v2  ;;  %v4871_v14 = vpack.c.bf16 %v497_v34, %v496_v57 }
 0x194   : >> { %v4831_v3 = vpop.permute.xlu1 %1114  ;;  %7696 = vst [vmem:[#allocation50_spill] sm:$0xff] %v4848_v28  ;;  %v950_v16 = vunpack.c.h.b16 %v587_v22  ;;  %v949_v57 = vunpack.c.l.b16 %v587_v22 }
 0x195   : >> { %v4836_v53 = vpop.permute.xlu2 %1042  ;;  %v1177_v39 = vsel %vm1140_vm1, %v1113_v25, %v4831_v3  ;;  %v958_v25 = vunpack.c.l.b16 %v4873_v41 }
 0x196   : >> { %v4877_v47 = vpack.c.b16 %v957_v21, %v950_v16 }
 0x198   : >> { %7699 = vst [vmem:[#allocation53_spill] sm:$0xff] %v4877_v47 }
 0x19a   : >> { %1092 = vrot.lane.b32.xlu1 %v4841_v48, %s4137_s29  ;;  %1362 = vrot.lane.b32.xlu0 %v4809_v19, %s4139_s3 }
 0x19b   : >> { %1108 = vrot.lane.b32.xlu2 %v4848_v28, %s4137_s29  ;;  %v4858_v52 = vpop.permute.xlu0 %1386 }
 0x19c   : >> { %v1099_v56 = vpop.permute.xlu1 %1098  ;;  %v1538_v5 = vsel %vm1414_vm2, %v4686_v9, %v4858_v52  ;;  %v951_v9 = vunpack.c.l.b16 %v4871_v14 }
 0x19d   : >> { %v4865_v19 = vpop.permute.xlu2 %1316  ;;  %v4869_v15 = vsel %vm4745_vm3, %v1177_v39, %v1538_v5  ;;  %v956_v39 = vunpack.c.l.b16 %v591_v6  ;;  %v1171_v34 = vsel %vm1140_vm1, %v1099_v56, %v4704_v13  ;;  %v1530_v56 = vsel %vm1414_vm2, %v1295_v55, %v4797_v1 }
 0x19e   : >> { %7697 = vst [vmem:[#allocation51_spill] sm:$0xff] %v4865_v19  ;;  %2354 = vmatpush.bf16.msra.mxu0 %v4869_v15  ;;  %3971 = vmatpush.bf16.msra.mxu1 %v4869_v15  ;;  %v4906_v5 = vpack.c.b16 %v958_v25, %v951_v9  ;;  %v487_v9 = vld [vmem:[%s4363_s26 + $0x128] sm:$0xff]  ;;  %v488_v25 = vld [vmem:[%s4363_s26 + $0x130] sm:$0xff] }
 0x19f   : >> { %7698 = vst [vmem:[#allocation52_spill] sm:$0xff] %v4869_v15  ;;  %3972 = vmatpush.bf16.msra.mxu2 %v4869_v15  ;;  %3973 = vmatpush.bf16.msra.mxu3 %v4869_v15  ;;  %v4904_v46 = vpack.c.b16 %v956_v39, %v949_v57  ;;  %v481_v39 = vld [vmem:[%s4363_s26 + $0xf8] sm:$0xff]  ;;  %v583_v38 = vpack.c.bf16 %v488_v25, %v487_v9 }
 0x1a0   : >> { %7702 = vst [vmem:[#allocation56_spill] sm:$0xff] %v4906_v5  ;;  %v489_v15 = vld [vmem:[%s4363_s26 + $0x138] sm:$0xff] }
 0x1a1   : >> { %7701 = vst [vmem:[#allocation55_spill] sm:$0xff] %v4904_v46 }
 0x1a2   : >> { %1364 = vrot.lane.b32.xlu1 %v4822_v63, %s4139_s3  ;;  %1380 = vrot.lane.b32.xlu0 %v4778_v54, %s4139_s3  ;;  %v483_v54 = vld [vmem:[%s4363_s26 + $0x108] sm:$0xff] }
 0x1a3   : >> { %1076 = vrot.lane.b32.xlu2 %v4877_v47, %s4137_s29  ;;  %v4891_v21 = vpop.permute.xlu0 %1344 }
 0x1a4   : >> { %v4889_v16 = vpop.permute.xlu1 %1372  ;;  %v1526_v55 = vsel %vm1414_vm2, %v4659_v0, %v4891_v21 }
 0x1a5   : >> { %v1534_v22 = vsel %vm1414_vm2, %v4709_v20, %v4889_v16  ;;  %v4898_v6 = vpop.permute.xlu2 %1286  ;;  %v1165_v20 = vsel %vm1140_vm1, %v4784_v37, %v4815_v51  ;;  %v480_v37 = vld [vmem:[%s4363_s26 + $0xf0] sm:$0xff] }
 0x1a6   : >> { %v4902_v45 = vsel %vm4745_vm3, %v1171_v34, %v1534_v22  ;;  %v4921_v57 = vsel %vm4745_vm3, %v1165_v20, %v1530_v56  ;;  %v1159_v56 = vsel %vm1140_vm1, %v4688_v50, %v4725_v24  ;;  %v482_v20 = vld [vmem:[%s4363_s26 + $0x100] sm:$0xff] }
 0x1a7   : >> { %7700 = vst [vmem:[#allocation54_spill] sm:$0xff] %v4902_v45  ;;  %2355 = vmatpush.bf16.msra.mxu0 %v4902_v45  ;;  %3974 = vmatpush.bf16.msra.mxu1 %v4902_v45  ;;  %v4946_v63 = vsel %vm4745_vm3, %v1159_v56, %v1526_v55  ;;  %v4955_v50 = vpack.c.bf16 %v483_v54, %v482_v20  ;;  %v942_v55 = vunpack.c.l.b16 %v583_v38 }
 0x1a8   : >> { %3975 = vmatpush.bf16.msra.mxu2 %v4902_v45  ;;  %3976 = vmatpush.bf16.msra.mxu3 %v4902_v45  ;;  %7703 = vst [vmem:[#allocation57_spill] sm:$0xff] %v4921_v57  ;;  %v490_v45 = vld [vmem:[%s4363_s26 + $0x140] sm:$0xff] }
 0x1a9   : >> { %7704 = vst [vmem:[#allocation58_spill] sm:$0xff] %v4946_v63 }
 0x1aa   : >> { %1074 = vrot.lane.b32.xlu1 %v4904_v46, %s4137_s29  ;;  %1078 = vrot.lane.b32.xlu0 %v4906_v5, %s4137_s29 }
 0x1ab   : >> { %2356 = vmatpush.bf16.msra.mxu0 %v4921_v57  ;;  %3977 = vmatpush.bf16.msra.mxu1 %v4921_v57  ;;  %v1291_v22 = vpop.permute.xlu0 %1290 }
 0x1ac   : >> { %3978 = vmatpush.bf16.msra.mxu2 %v4921_v57  ;;  %3979 = vmatpush.bf16.msra.mxu3 %v4921_v57  ;;  %v1057_v34 = vpop.permute.xlu1 %1056  ;;  %v579_v57 = vpack.c.bf16 %v481_v39, %v480_v37 }
 0x1ad   : >> { %1348 = vrot.lane.b32.xlu2 %v4904_v46, %s4139_s3  ;;  %v4941_v0 = vpop.permute.xlu2 %1132  ;;  %v4957_v46 = vpack.c.bf16 %v490_v45, %v489_v15  ;;  %v1153_v25 = vsel %vm1140_vm1, %v1057_v34, %v4817_v62  ;;  %v937_v45 = vunpack.c.l.b16 %v4955_v50  ;;  %v4990_v34 = vsel %vm811_vm10, %v4641_v42, %v4541_v4 }
 0x1ae   : >> { %v935_v37 = vunpack.c.l.b16 %v579_v57  ;;  %7709 = vst [vmem:[#allocation63_spill] sm:$0xff] %v4990_v34 }
 0x1af   : >> { %2357 = vmatpush.bf16.msra.mxu0 %v4946_v63  ;;  %3980 = vmatpush.bf16.msra.mxu1 %v4946_v63  ;;  %v944_v56 = vunpack.c.l.b16 %v4957_v46 }
 0x1b0   : >> { %3981 = vmatpush.bf16.msra.mxu2 %v4946_v63  ;;  %3982 = vmatpush.bf16.msra.mxu3 %v4946_v63  ;;  %v1563_v63 = vsel %vm1559_vm6, 65537, %v7717_v60 }
 0x1b1   : >> { %v1569_v43 = vperm.slane %v1563_v63, 4 }
 0x1b2   : >> { %1346 = vrot.lane.b32.xlu1 %v4491_v27, %s4139_s3  ;;  %1350 = vrot.lane.b32.xlu0 %v4877_v47, %s4139_s3  ;;  %v4981_v47 = vpack.c.b16 %v942_v55, %v935_v37  ;;  %v936_v37 = vunpack.c.h.b16 %v579_v57  ;;  %v943_v55 = vunpack.c.h.b16 %v583_v38  ;;  %v467_v57 = vld [vmem:[%s4363_s26 + $0x88] sm:$0xff] }
 0x1b3   : >> { %v4965_v9 = vpop.permute.xlu0 %1044 }
 0x1b4   : >> { %v4963_v39 = vpop.permute.xlu1 %1330  ;;  %7706 = vst [vmem:[#allocation60_spill] sm:$0xff] %v4965_v9  ;;  %v5012_v38 = vpack.c.b16 %v943_v55, %v936_v37  ;;  %v952_v37 = vunpack.c.h.b16 %v4871_v14  ;;  %v959_v55 = vunpack.c.h.b16 %v4873_v41 }
 0x1b5   : >> { %7705 = vst [vmem:[#allocation59_spill] sm:$0xff] %v4963_v39  ;;  %1366 = vrot.lane.b32.xlu2 %v4841_v48, %s4139_s3  ;;  %v1522_v15 = vsel %vm1414_vm2, %v1291_v22, %v4963_v39  ;;  %v4973_v54 = vpop.permute.xlu2 %1404  ;;  %v4992_v22 = vpack.c.b16 %v944_v56, %v937_v45  ;;  %v466_v56 = vld [vmem:[%s4363_s26 + $0x80] sm:$0xff] }
 0x1b6   : >> { %v4979_v20 = vsel %vm4745_vm3, %v1153_v25, %v1522_v15  ;;  %7708 = vst [vmem:[#allocation62_spill] sm:$0xff] %v4981_v47  ;;  %v1147_v25 = vsel %vm1140_vm1, %v4836_v53, %v4965_v9  ;;  %v474_v53 = vld [vmem:[%s4363_s26 + $0xc0] sm:$0xff]  ;;  %v475_v9 = vld [vmem:[%s4363_s26 + $0xc8] sm:$0xff] }
 0x1b7   : >> { %7707 = vst [vmem:[#allocation61_spill] sm:$0xff] %v4979_v20  ;;  %2358 = vmatpush.bf16.msra.mxu0 %v4979_v20  ;;  %3983 = vmatpush.bf16.msra.mxu1 %v4979_v20 }
 0x1b8   : >> { %3984 = vmatpush.bf16.msra.mxu2 %v4979_v20  ;;  %3985 = vmatpush.bf16.msra.mxu3 %v4979_v20  ;;  %7710 = vst [vmem:[#allocation64_spill] sm:$0xff] %v4992_v22  ;;  %v473_v20 = vld [vmem:[%s4363_s26 + $0xb8] sm:$0xff] }
 0x1b9   : >> { %7712 = vst [vmem:[#allocation66_spill] sm:$0xff] %v5012_v38 }
 0x1ba   : >> { %1094 = vrot.lane.b32.xlu1 %v4990_v34, %s4137_s29  ;;  %1060 = vrot.lane.b32.xlu0 %v4981_v47, %s4137_s29 }
 0x1bb   : >> { %v1029_v48 = vpop.permute.xlu0 %1028 }
 0x1bc   : >> { %v1289_v15 = vpop.permute.xlu1 %1288 }
 0x1bd   : >> { %1064 = vrot.lane.b32.xlu2 %v4992_v22, %s4137_s29  ;;  %v1518_v42 = vsel %vm1414_vm2, %v1289_v15, %v4865_v19  ;;  %v5005_v45 = vpop.permute.xlu2 %1118  ;;  %v571_v15 = vpack.c.bf16 %v467_v57, %v466_v56  ;;  %v476_v19 = vld [vmem:[%s4363_s26 + $0xd0] sm:$0xff] }
 0x1be   : >> { %v5010_v27 = vsel %vm4745_vm3, %v1147_v25, %v1518_v42  ;;  %v575_v25 = vpack.c.bf16 %v474_v53, %v473_v20 }
 0x1bf   : >> { %7711 = vst [vmem:[#allocation65_spill] sm:$0xff] %v5010_v27  ;;  %2359 = vmatpush.bf16.msra.mxu0 %v5010_v27  ;;  %3986 = vmatpush.bf16.msra.mxu1 %v5010_v27  ;;  %v921_v57 = vunpack.c.l.b16 %v571_v15 }
 0x1c0   : >> { %3987 = vmatpush.bf16.msra.mxu2 %v5010_v27  ;;  %3988 = vmatpush.bf16.msra.mxu3 %v5010_v27  ;;  %v928_v41 = vunpack.c.l.b16 %v575_v25 }
 0x1c2   : >> { %1062 = vrot.lane.b32.xlu1 %v5012_v38, %s4137_s29  ;;  %1332 = vrot.lane.b32.xlu0 %v4593_v32, %s4139_s3  ;;  %v5047_v32 = vpack.c.b16 %v959_v55, %v952_v37  ;;  %v929_v37 = vunpack.c.h.b16 %v575_v25 }
 0x1c3   : >> { %v5031_v33 = vpop.permute.xlu0 %1302 }
 0x1c4   : >> { %v5029_v42 = vpop.permute.xlu1 %1030  ;;  %7716 = vst [vmem:[#allocation68_spill] sm:$0xff] %v5031_v33  ;;  %v1514_v14 = vsel %vm1414_vm2, %v4898_v6, %v5031_v33  ;;  %v5054_v6 = vpack.c.b16 %v928_v41, %v921_v57  ;;  %v1594_v57 = vunpack.c.l.b16 %v1569_v43 }
 0x1c5   : >> { %7715 = vst [vmem:[#allocation67_spill] sm:$0xff] %v5029_v42  ;;  %1336 = vrot.lane.b32.xlu2 %v5012_v38, %s4139_s3  ;;  %v1141_v20 = vsel %vm1140_vm1, %v1029_v48, %v5029_v42  ;;  %v5038_v56 = vpop.permute.xlu2 %1390  ;;  %v1567_v38 = vperm.slane %v4707_v18, 4  ;;  %v1568_v48 = vperm.slane %v1563_v63, 0  ;;  %v469_v42 = vld [vmem:[%s4363_s26 + $0x98] sm:$0xff] }
 0x1c6   : >> { %v5045_v53 = vsel %vm4745_vm3, %v1141_v20, %v1514_v14  ;;  %7719 = vst [vmem:[#allocation70_spill] sm:$0xff] %v5047_v32  ;;  %v922_v20 = vunpack.c.h.b16 %v571_v15  ;;  %v468_v14 = vld [vmem:[%s4363_s26 + $0x90] sm:$0xff]  ;;  %v1595_v15 = vunpack.c.h.b16 %v1569_v43  ;;  %vm1598_vm11 = vcmp.ne.s32.totalorder %v1594_v57, %v4730_v35 }
 0x1c7   : >> { %7718 = vst [vmem:[#allocation69_spill] sm:$0xff] %v5045_v53  ;;  %2360 = vmatpush.bf16.msra.mxu0 %v5045_v53  ;;  %3989 = vmatpush.bf16.msra.mxu1 %v5045_v53  ;;  %v1580_v18 = vunpack.c.l.b16 %v1567_v38  ;;  %v1581_v55 = vunpack.c.h.b16 %v1567_v38  ;;  %v1587_v27 = vunpack.c.l.b16 %v1568_v48  ;;  %v1588_v33 = vunpack.c.h.b16 %v1568_v48 }
 0x1c8   : >> { %3990 = vmatpush.bf16.msra.mxu2 %v5045_v53  ;;  %3991 = vmatpush.bf16.msra.mxu3 %v5045_v53  ;;  %7720 = vst [vmem:[#allocation71_spill] sm:$0xff] %v5054_v6  ;;  %v5070_v41 = vpack.c.b16 %v929_v37, %v922_v20  ;;  %v5074_v38 = vpack.c.bf16 %v469_v42, %v468_v14  ;;  %v945_v14 = vunpack.c.h.b16 %v4957_v46  ;;  %v452_v46 = vld [vmem:[%s4363_s26 + $0x10] sm:$0xff]  ;;  %vm1022_vm3 = vcmp.eq.s32.totalorder %v7733_v31, 0 }
 0x1c9   : >> { %vm1584_vm7 = vcmp.ne.s32.totalorder %v1580_v18, %v4730_v35  ;;  %vm1585_vm8 = vcmp.ne.s32.totalorder %v1581_v55, %v4733_v30  ;;  %v5076_v48 = vpack.c.bf16 %v476_v19, %v475_v9  ;;  %vm1591_vm9 = vcmp.ne.s32.totalorder %v1587_v27, %v4730_v35  ;;  %vm1560_vm4 = vmpackc.low %vm1022_vm3, %vm1021_vm0 }
 0x1ca   : >> { %1334 = vrot.lane.b32.xlu1 %v4981_v47, %s4139_s3  ;;  %1080 = vrot.lane.b32.xlu0 %v5047_v32, %s4137_s29  ;;  %7721 = vst [vmem:[#allocation72_spill] sm:$0xff] %v5070_v41  ;;  %vm1592_vm10 = vcmp.ne.s32.totalorder %v1588_v33, %v4733_v30  ;;  %vm1599_vm12 = vcmp.ne.s32.totalorder %v1595_v15, %v4733_v30  ;;  %vm5082_vm13 = vmpackc.low %vm1585_vm8, %vm1584_vm7  ;;  %v923_v33 = vunpack.c.l.b16 %v5074_v38  ;;  %v938_v55 = vunpack.c.h.b16 %v4955_v50 }
 0x1cb   : >> { %v5064_v63 = vpop.permute.xlu0 %1134  ;;  %vm5090_vm14 = vmpackc.low %vm1592_vm10, %vm1591_vm9  ;;  %v930_v27 = vunpack.c.l.b16 %v5076_v48 }
 0x1cc   : >> { %v1131_v53 = vpop.permute.xlu1 %1130  ;;  %vm5096_vm15 = vmpackc.low %vm1599_vm12, %vm1598_vm11 }
 0x1cd   : >> { %1046 = vrot.lane.b32.xlu2 %v5054_v6, %s4137_s29  ;;  %v5068_v25 = vpop.permute.xlu2 %1408  ;;  %v1184_v37 = vsel %vm1140_vm1, %v4741_v36, %v1131_v53  ;;  %v1185_v18 = vsel %vm1140_vm1, %v1131_v53, %v4941_v0  ;;  %v1186_v53 = vsel %vm1140_vm1, %v4941_v0, %v5064_v63  ;;  %v453_v0 = vld [vmem:[%s4363_s26 + $0x18] sm:$0xff] }
 0x1d2   : >> { %1352 = vrot.lane.b32.xlu1 %v4906_v5, %s4139_s3  ;;  %1048 = vrot.lane.b32.xlu0 %v5070_v41, %s4137_s29 }
 0x1d3   : >> { %v5100_v20 = vpop.permute.xlu0 %1406 }
 0x1d4   : >> { %v1403_v42 = vpop.permute.xlu1 %1402  ;;  %v1459_v50 = vsel %vm1414_vm2, %v4973_v54, %v5100_v20 }
 0x1d5   : >> { %1318 = vrot.lane.b32.xlu2 %v4623_v17, %s4139_s3  ;;  %v5110_v57 = vpop.permute.xlu2 %1106  ;;  %v1457_v15 = vsel %vm1414_vm2, %v4749_v23, %v1403_v42  ;;  %v1458_v36 = vsel %vm1414_vm2, %v1403_v42, %v4973_v54  ;;  %v5133_v23 = vsel %vm5096_vm15, %v1186_v53, %v1459_v50  ;;  %v5135_v42 = vpack.c.b16 %v930_v27, %v923_v33  ;;  %v459_v54 = vld [vmem:[%s4363_s26 + $0x48] sm:$0xff]  ;;  %v460_v17 = vld [vmem:[%s4363_s26 + $0x50] sm:$0xff]  ;;  %v462_v53 = vld [vmem:[%s4363_s26 + $0x60] sm:$0xff] }
 0x1d6   : >> { %v5125_v5 = vsel %vm5082_vm13, %v1184_v37, %v1457_v15  ;;  %v5129_v47 = vsel %vm5090_vm14, %v1185_v18, %v1458_v36  ;;  %7730 = vst [vmem:[#allocation75_spill] sm:$0xff] %v5133_v23  ;;  %2500 = vmatpush.bf16.msrb.mxu3 %v5133_v23  ;;  %v5145_v37 = vpack.c.b16 %v945_v14, %v938_v55  ;;  %v454_v18 = vld [vmem:[%s4363_s26 + $0x20] sm:$0xff]  ;;  %v455_v15 = vld [vmem:[%s4363_s26 + $0x28] sm:$0xff]  ;;  %v461_v36 = vld [vmem:[%s4363_s26 + $0x58] sm:$0xff] }
 0x1d7   : >> { %7728 = vst [vmem:[#allocation73_spill] sm:$0xff] %v5125_v5  ;;  %2402 = vmatpush.bf16.msrb.mxu1 %v5125_v5  ;;  %2451 = vmatpush.bf16.msrb.mxu2 %v5129_v47  ;;  %v563_v33 = vpack.c.bf16 %v453_v0, %v452_v46  ;;  %v567_v27 = vpack.c.bf16 %v460_v17, %v459_v54  ;;  %v5162_v46 = vsel %vm1560_vm4, 65537, %v7717_v60 }
 0x1d8   : >> { %7729 = vst [vmem:[#allocation74_spill] sm:$0xff] %v5129_v47  ;;  %v564_v0 = vpack.c.bf16 %v455_v15, %v454_v18  ;;  %v568_v54 = vpack.c.bf16 %v462_v53, %v461_v36  ;;  %v1570_v47 = vperm.slane %v5162_v46, 0 }
 0x1d9   : >> { %7731 = vst [vmem:[#allocation76_spill] sm:$0xff] %v5135_v42  ;;  %v908_v17 = vunpack.c.h.b16 %v563_v33  ;;  %v915_v14 = vunpack.c.h.b16 %v567_v27  ;;  %v914_v31 = vunpack.c.l.b16 %v567_v27 }
 0x1da   : >> { %7734 = vst [vmem:[#allocation77_spill] sm:$0xff] %v5145_v37  ;;  %1050 = vrot.lane.b32.xlu1 %v5135_v42, %s4137_s29  ;;  %1320 = vrot.lane.b32.xlu0 %v5054_v6, %s4139_s3  ;;  %v907_v6 = vunpack.c.l.b16 %v563_v33  ;;  %v909_v5 = vunpack.c.l.b16 %v564_v0  ;;  %v916_v39 = vunpack.c.l.b16 %v568_v54  ;;  %v1601_v18 = vunpack.c.l.b16 %v1570_v47 }
 0x1db   : >> { %v5155_v61 = vpop.permute.xlu0 %1120  ;;  %v5165_v23 = vpack.c.b16 %v915_v14, %v908_v17  ;;  %v1602_v15 = vunpack.c.h.b16 %v1570_v47  ;;  %v1460_v14 = vsel %vm1414_vm2, %v5100_v20, %v5068_v25 }
 0x1dc   : >> { %v1117_v50 = vpop.permute.xlu1 %1116  ;;  %v5171_v62 = vpack.c.b16 %v914_v31, %v907_v6  ;;  %vm1605_vm5 = vcmp.ne.s32.totalorder %v1601_v18, %v4730_v35  ;;  %v910_v18 = vunpack.c.h.b16 %v564_v0 }
 0x1dd   : >> { %1066 = vrot.lane.b32.xlu2 %v5145_v37, %s4137_s29  ;;  %v5159_v55 = vpop.permute.xlu2 %1378  ;;  %7735 = vst [vmem:[#allocation78_spill] sm:$0xff] %v5165_v23  ;;  %v1178_v33 = vsel %vm1140_vm1, %v4831_v3, %v1117_v50  ;;  %v1179_v27 = vsel %vm1140_vm1, %v1117_v50, %v5005_v45  ;;  %v1180_v3 = vsel %vm1140_vm1, %v5005_v45, %v5155_v61 }
 0x1de   : >> { %7736 = vst [vmem:[#allocation79_spill] sm:$0xff] %v5171_v62  ;;  %vm1606_vm6 = vcmp.ne.s32.totalorder %v1602_v15, %v4733_v30  ;;  %v917_v15 = vunpack.c.h.b16 %v568_v54 }
 0x1df   : >> { %vm5216_vm7 = vmpackc.low %vm1606_vm6, %vm1605_vm5 }
 0x1e0   : >> { %v5255_v0 = vpack.c.b16 %v917_v15, %v910_v18 }
 0x1e2   : >> { %1322 = vrot.lane.b32.xlu1 %v5070_v41, %s4139_s3  ;;  %1338 = vrot.lane.b32.xlu0 %v4992_v22, %s4139_s3  ;;  %7741 = vst [vmem:[#allocation82_spill] sm:$0xff] %v5255_v0 }
 0x1e3   : >> { %v5173_v26 = vpop.permute.xlu0 %1392 }
 0x1e4   : >> { %v1389_v60 = vpop.permute.xlu1 %1388  ;;  %v1453_v53 = vsel %vm1414_vm2, %v5038_v56, %v5173_v26 }
 0x1e5   : >> { %1034 = vrot.lane.b32.xlu2 %v5165_v23, %s4137_s29  ;;  %v5181_v36 = vpop.permute.xlu2 %1088  ;;  %v1451_v31 = vsel %vm1414_vm2, %v4858_v52, %v1389_v60  ;;  %v1452_v6 = vsel %vm1414_vm2, %v1389_v60, %v5038_v56  ;;  %v5203_v52 = vsel %vm5096_vm15, %v1180_v3, %v1453_v53  ;;  %v5205_v60 = vpack.c.b16 %v916_v39, %v909_v5 }
 0x1e6   : >> { %v5195_v47 = vsel %vm5082_vm13, %v1178_v33, %v1451_v31  ;;  %v5199_v50 = vsel %vm5090_vm14, %v1179_v27, %v1452_v6  ;;  %2501 = vmatpush.bf16.msrb.mxu3 %v5203_v52  ;;  %v924_v27 = vunpack.c.h.b16 %v5074_v38 }
 0x1e7   : >> { %7737 = vst [vmem:[#allocation80_spill] sm:$0xff] %v5205_v60  ;;  %2403 = vmatpush.bf16.msrb.mxu1 %v5195_v47  ;;  %2452 = vmatpush.bf16.msrb.mxu2 %v5199_v50 }
 0x1ea   : >> { %1032 = vrot.lane.b32.xlu1 %v5171_v62, %s4137_s29  ;;  %1036 = vrot.lane.b32.xlu0 %v5205_v60, %s4137_s29 }
 0x1ec   : >> { %v5220_v5 = vpop.permute.xlu1 %1136  ;;  %v1103_v39 = vpop.permute.xlu0 %1102 }
 0x1ed   : >> { %1306 = vrot.lane.b32.xlu2 %v5171_v62, %s4139_s3  ;;  %v1361_v56 = vpop.permute.xlu2 %1360  ;;  %v1187_v17 = vsel %vm1140_vm1, %v5064_v63, %v5220_v5  ;;  %v931_v63 = vunpack.c.h.b16 %v5076_v48  ;;  %v1172_v6 = vsel %vm1140_vm1, %v4704_v13, %v1103_v39  ;;  %v1166_v13 = vsel %vm1140_vm1, %v4815_v51, %v5181_v36  ;;  %v7748_v62 = vld [vmem:[#allocation47_spill] sm:$0xff] }
 0x1ee   : >> { %v5232_v33 = vsel %vm5216_vm7, %v1187_v17, %v1460_v14  ;;  %v1439_v54 = vsel %vm1414_vm2, %v4797_v1, %v1361_v56 }
 0x1ef   : >> { %2549 = vmatpush.bf16.msrb.mxu0 %v5232_v33  ;;  %v5253_v48 = vpack.c.b16 %v931_v63, %v924_v27 }
 0x1f1   : >> { %7740 = vst [vmem:[#allocation81_spill] sm:$0xff] %v5253_v48 }
 0x1f2   : >> { %1304 = vrot.lane.b32.xlu1 %v4651_v58, %s4139_s3  ;;  %1308 = vrot.lane.b32.xlu0 %v5165_v23, %s4139_s3  ;;  %v7753_v58 = vld [vmem:[#allocation32_spill] sm:$0xff] }
 0x1f4   : >> { %v1105_v31 = vpop.permute.xlu1 %1104  ;;  %v1375_v20 = vpop.permute.xlu0 %1374 }
 0x1f5   : >> { %1324 = vrot.lane.b32.xlu2 %v5135_v42, %s4139_s3  ;;  %v5245_v3 = vpop.permute.xlu2 %1108  ;;  %v1445_v53 = vsel %vm1414_vm2, %v4889_v16, %v1375_v20  ;;  %v5269_v16 = vsel %vm5082_vm13, %v1166_v13, %v1439_v54  ;;  %v1173_v14 = vsel %vm1140_vm1, %v1103_v39, %v1105_v31  ;;  %v1174_v51 = vsel %vm1140_vm1, %v1105_v31, %v5110_v57 }
 0x1f6   : >> { %v5251_v38 = vsel %vm5082_vm13, %v1172_v6, %v1445_v53 }
 0x1f7   : >> { %2404 = vmatpush.bf16.msrb.mxu1 %v5251_v38 }
 0x1fa   : >> { %1052 = vrot.lane.b32.xlu1 %v5253_v48, %s4137_s29  ;;  %1038 = vrot.lane.b32.xlu0 %v5255_v0, %s4137_s29 }
 0x1fb   : >> { %2405 = vmatpush.bf16.msrb.mxu1 %v5269_v16 }
 0x1fc   : >> { %v1377_v17 = vpop.permute.xlu1 %1376  ;;  %v5272_v1 = vpop.permute.xlu0 %1122 }
 0x1fd   : >> { %1410 = vrot.lane.b32.xlu2 %v4766_v10, %s4139_s3  ;;  %v1446_v27 = vsel %vm1414_vm2, %v1375_v20, %v1377_v17  ;;  %v1447_v63 = vsel %vm1414_vm2, %v1377_v17, %v5159_v55  ;;  %v1077_v18 = vpop.permute.xlu2 %1076  ;;  %v1181_v20 = vsel %vm1140_vm1, %v5155_v61, %v5272_v1  ;;  %v7752_v10 = vld [vmem:[#allocation60_spill] sm:$0xff] }
 0x1fe   : >> { %v5284_v15 = vsel %vm5090_vm14, %v1173_v14, %v1446_v27  ;;  %v5288_v6 = vsel %vm5096_vm15, %v1174_v51, %v1447_v63 }
 0x1ff   : >> { %2453 = vmatpush.bf16.msrb.mxu2 %v5284_v15  ;;  %2502 = vmatpush.bf16.msrb.mxu3 %v5288_v6 }
 0x202   : >> { %1310 = vrot.lane.b32.xlu1 %v5205_v60, %s4139_s3  ;;  %1412 = vrot.lane.b32.xlu0 %v4497_v29, %s4139_s3 }
 0x204   : >> { %v5296_v39 = vpop.permute.xlu1 %1394  ;;  %v1091_v31 = vpop.permute.xlu0 %1090 }
 0x205   : >> { %1396 = vrot.lane.b32.xlu2 %v4802_v44, %s4139_s3  ;;  %v1454_v53 = vsel %vm1414_vm2, %v5173_v26, %v5296_v39  ;;  %v1167_v14 = vsel %vm1140_vm1, %v5181_v36, %v1091_v31 }
 0x206   : >> { %v5308_v54 = vsel %vm5216_vm7, %v1181_v20, %v1454_v53 }
 0x207   : >> { %v1349_v13 = vpop.permute.xlu2 %1348  ;;  %2550 = vmatpush.bf16.msrb.mxu0 %v5308_v54 }
 0x20a   : >> { %1243 = vrot.lane.b32.xlu1 %v4535_v59, %s4141_s4  ;;  %1398 = vrot.lane.b32.xlu0 %v4521_v11, %s4139_s3 }
 0x20c   : >> { %v1093_v61 = vpop.permute.xlu1 %1092  ;;  %v1363_v17 = vpop.permute.xlu0 %1362 }
 0x20d   : >> { %1382 = vrot.lane.b32.xlu2 %v4848_v28, %s4139_s3  ;;  %v1440_v26 = vsel %vm1414_vm2, %v1361_v56, %v1363_v17  ;;  %v1175_v56 = vsel %vm1140_vm1, %v5110_v57, %v5245_v3  ;;  %v1168_v20 = vsel %vm1140_vm1, %v1091_v31, %v1093_v61 }
 0x20e   : >> { %v5322_v51 = vsel %vm5090_vm14, %v1167_v14, %v1440_v26 }
 0x20f   : >> { %v5324_v27 = vpop.permute.xlu2 %1366  ;;  %2454 = vmatpush.bf16.msrb.mxu2 %v5322_v51 }
 0x210   : >> { %7742 = vst [vmem:[#allocation83_spill] sm:$0xff] %v5324_v27 }
 0x212   : >> { %1241 = vrot.lane.b32.xlu1 %v4560_v8, %s4141_s4  ;;  %1384 = vrot.lane.b32.xlu0 %v4509_v2, %s4139_s3 }
 0x214   : >> { %v1365_v36 = vpop.permute.xlu1 %1364  ;;  %v5331_v63 = vpop.permute.xlu0 %1380 }
 0x215   : >> { %1368 = vrot.lane.b32.xlu2 %v4990_v34, %s4139_s3  ;;  %v1441_v53 = vsel %vm1414_vm2, %v1363_v17, %v1365_v36  ;;  %v1448_v14 = vsel %vm1414_vm2, %v5159_v55, %v5331_v63  ;;  %v7750_v34 = vld [vmem:[#allocation51_spill] sm:$0xff] }
 0x216   : >> { %v5345_v26 = vsel %vm5096_vm15, %v1168_v20, %v1441_v53  ;;  %v5349_v23 = vsel %vm5216_vm7, %v1175_v56, %v1448_v14 }
 0x217   : >> { %v5351_v57 = vpop.permute.xlu2 %1064  ;;  %2503 = vmatpush.bf16.msrb.mxu3 %v5345_v26  ;;  %2551 = vmatpush.bf16.msrb.mxu0 %v5349_v23 }
 0x21a   : >> { %1239 = vrot.lane.b32.xlu1 %v4577_v12, %s4141_s4  ;;  %1370 = vrot.lane.b32.xlu0 %v4541_v4, %s4139_s3 }
 0x21c   : >> { %v1075_v55 = vpop.permute.xlu1 %1074  ;;  %v5359_v31 = vpop.permute.xlu0 %1078 }
 0x21d   : >> { %1354 = vrot.lane.b32.xlu2 %v5047_v32, %s4139_s3  ;;  %v1160_v56 = vsel %vm1140_vm1, %v4725_v24, %v1075_v55  ;;  %v1161_v20 = vsel %vm1140_vm1, %v1075_v55, %v1077_v18  ;;  %v1162_v41 = vsel %vm1140_vm1, %v1077_v18, %v5359_v31 }
 0x21f   : >> { %v5363_v17 = vpop.permute.xlu2 %1336 }
 0x222   : >> { %1237 = vrot.lane.b32.xlu1 %v4565_v7, %s4141_s4  ;;  %1356 = vrot.lane.b32.xlu0 %v4503_v40, %s4139_s3 }
 0x224   : >> { %v1347_v53 = vpop.permute.xlu1 %1346  ;;  %v1351_v14 = vpop.permute.xlu0 %1350 }
 0x225   : >> { %1340 = vrot.lane.b32.xlu2 %v5145_v37, %s4139_s3  ;;  %v1433_v32 = vsel %vm1414_vm2, %v4891_v21, %v1347_v53  ;;  %v1434_v60 = vsel %vm1414_vm2, %v1347_v53, %v1349_v13  ;;  %v1435_v42 = vsel %vm1414_vm2, %v1349_v13, %v1351_v14  ;;  %v7747_v53 = vld [vmem:[#allocation27_spill] sm:$0xff] }
 0x226   : >> { %v5382_v24 = vsel %vm5082_vm13, %v1160_v56, %v1433_v32  ;;  %v5386_v55 = vsel %vm5090_vm14, %v1161_v20, %v1434_v60  ;;  %v5390_v18 = vsel %vm5096_vm15, %v1162_v41, %v1435_v42  ;;  %v7744_v32 = vld [vmem:[#allocation12_spill] sm:$0xff]  ;;  %v1442_v41 = vsel %vm1414_vm2, %v1365_v36, %v5324_v27  ;;  %v7746_v20 = vld [vmem:[#allocation30_spill] sm:$0xff] }
 0x227   : >> { %7743 = vst [vmem:[#allocation84_spill] sm:$0xff] %v5390_v18  ;;  %v1047_v37 = vpop.permute.xlu2 %1046  ;;  %2406 = vmatpush.bf16.msrb.mxu1 %v5382_v24  ;;  %2455 = vmatpush.bf16.msrb.mxu2 %v5386_v55 }
 0x228   : >> { %2504 = vmatpush.bf16.msrb.mxu3 %v5390_v18 }
 0x22a   : >> { %1342 = vrot.lane.b32.xlu0 %v4605_v49, %s4139_s3  ;;  %1235 = vrot.lane.b32.xlu1 %v7744_v32, %s4141_s4 }
 0x22c   : >> { %v5399_v21 = vpop.permute.xlu1 %1094  ;;  %v1061_v60 = vpop.permute.xlu0 %1060 }
 0x22d   : >> { %7745 = vst [vmem:[#allocation85_spill] sm:$0xff] %v5399_v21  ;;  %1326 = vrot.lane.b32.xlu2 %v5253_v48, %s4139_s3  ;;  %v1169_v42 = vsel %vm1140_vm1, %v1093_v61, %v5399_v21  ;;  %v1154_v48 = vsel %vm1140_vm1, %v7748_v62, %v1061_v60  ;;  %v7749_v61 = vld [vmem:[#allocation59_spill] sm:$0xff]  ;;  %v1148_v62 = vsel %vm1140_vm1, %v7752_v10, %v1047_v37 }
 0x22e   : >> { %v5409_v13 = vsel %vm5216_vm7, %v1169_v42, %v1442_v41 }
 0x22f   : >> { %v1319_v56 = vpop.permute.xlu2 %1318  ;;  %2552 = vmatpush.bf16.msrb.mxu0 %v5409_v13 }
 0x230   : >> { %v1421_v28 = vsel %vm1414_vm2, %v7750_v34, %v1319_v56 }
 0x232   : >> { %1328 = vrot.lane.b32.xlu0 %v7746_v20, %s4139_s3  ;;  %1233 = vrot.lane.b32.xlu1 %v7747_v53, %s4141_s4 }
 0x234   : >> { %v1063_v36 = vpop.permute.xlu1 %1062  ;;  %v1333_v22 = vpop.permute.xlu0 %1332 }
 0x235   : >> { %1312 = vrot.lane.b32.xlu2 %v5255_v0, %s4139_s3  ;;  %v1427_v41 = vsel %vm1414_vm2, %v7749_v61, %v1333_v22  ;;  %v5437_v61 = vsel %vm5082_vm13, %v1148_v62, %v1421_v28  ;;  %v1155_v0 = vsel %vm1140_vm1, %v1061_v60, %v1063_v36  ;;  %v1156_v10 = vsel %vm1140_vm1, %v1063_v36, %v5351_v57  ;;  %v7757_v60 = vld [vmem:[#allocation40_spill] sm:$0xff] }
 0x236   : >> { %v5424_v42 = vsel %vm5082_vm13, %v1154_v48, %v1427_v41  ;;  %v7754_v48 = vld [vmem:[#allocation28_spill] sm:$0xff] }
 0x237   : >> { %v5428_v44 = vpop.permute.xlu2 %1066  ;;  %2407 = vmatpush.bf16.msrb.mxu1 %v5424_v42 }
 0x238   : >> { %7751 = vst [vmem:[#allocation30_spill] sm:$0xff] %v5428_v44 }
 0x23a   : >> { %1314 = vrot.lane.b32.xlu0 %v7753_v58, %s4139_s3  ;;  %1231 = vrot.lane.b32.xlu1 %v7754_v48, %s4141_s4 }
 0x23b   : >> { %2408 = vmatpush.bf16.msrb.mxu1 %v5437_v61 }
 0x23c   : >> { %v1335_v34 = vpop.permute.xlu1 %1334  ;;  %v5442_v41 = vpop.permute.xlu0 %1080 }
 0x23d   : >> { %7755 = vst [vmem:[#allocation47_spill] sm:$0xff] %v5442_v41  ;;  %v1428_v53 = vsel %vm1414_vm2, %v1333_v22, %v1335_v34  ;;  %v1429_v32 = vsel %vm1414_vm2, %v1335_v34, %v5363_v17  ;;  %v7758_v22 = vld [vmem:[#allocation31_spill] sm:$0xff] }
 0x23e   : >> { %v5452_v28 = vsel %vm5090_vm14, %v1155_v0, %v1428_v53  ;;  %v5456_v62 = vsel %vm5096_vm15, %v1156_v10, %v1429_v32  ;;  %v1163_v0 = vsel %vm1140_vm1, %v5359_v31, %v5442_v41 }
 0x23f   : >> { %7756 = vst [vmem:[#allocation59_spill] sm:$0xff] %v5452_v28  ;;  %v1035_v48 = vpop.permute.xlu2 %1034  ;;  %2456 = vmatpush.bf16.msrb.mxu2 %v5452_v28  ;;  %2505 = vmatpush.bf16.msrb.mxu3 %v5456_v62 }
 0x242   : >> { %1855 = vrot.lane.b32.xlu0 %v7757_v60, %s4139_s3  ;;  %1229 = vrot.lane.b32.xlu1 %v7758_v22, %s4141_s4 }
 0x244   : >> { %v5464_v36 = vpop.permute.xlu1 %1352  ;;  %v1049_v34 = vpop.permute.xlu0 %1048 }
 0x245   : >> { %v1436_v32 = vsel %vm1414_vm2, %v1351_v14, %v5464_v36  ;;  %v1149_v7 = vsel %vm1140_vm1, %v1047_v37, %v1049_v34  ;;  %v1157_v37 = vsel %vm1140_vm1, %v5351_v57, %v5428_v44 }
 0x246   : >> { %v5473_v53 = vsel %vm5216_vm7, %v1163_v0, %v1436_v32  ;;  %v7759_v0 = vld [vmem:[#allocation54_spill] sm:$0xff] }
 0x247   : >> { %v1307_v10 = vpop.permute.xlu2 %1306  ;;  %2553 = vmatpush.bf16.msrb.mxu0 %v5473_v53 }
 0x24a   : >> { %1138 = vrot.lane.b32.xlu0 %v4497_v29, %s4137_s29 }
 0x24c   : >> { %v1051_v60 = vpop.permute.xlu1 %1050  ;;  %v1321_v22 = vpop.permute.xlu0 %1320 }
 0x24d   : >> { %v1422_v12 = vsel %vm1414_vm2, %v1319_v56, %v1321_v22  ;;  %v1150_v56 = vsel %vm1140_vm1, %v1049_v34, %v1051_v60 }
 0x24e   : >> { %v5482_v31 = vsel %vm5090_vm14, %v1149_v7, %v1422_v12 }
 0x24f   : >> { %v5484_v14 = vpop.permute.xlu2 %1324  ;;  %2457 = vmatpush.bf16.msrb.mxu2 %v5482_v31 }
 0x252   : >> { %1827 = vrot.lane.b32.xlu0 %v7759_v0, %s4139_s3 }
 0x254   : >> { %v1323_v32 = vpop.permute.xlu1 %1322  ;;  %v5489_v8 = vpop.permute.xlu0 %1338 }
 0x255   : >> { %v1423_v29 = vsel %vm1414_vm2, %v1321_v22, %v1323_v32  ;;  %v1430_v7 = vsel %vm1414_vm2, %v5363_v17, %v5489_v8  ;;  %v5514_v17 = vld [vmem:[%s7530_s1 + $0x60] sm:$0xff]  ;;  %v1424_v9 = vsel %vm1414_vm2, %v1323_v32, %v5484_v14 }
 0x256   : >> { %v5501_v12 = vsel %vm5096_vm15, %v1150_v56, %v1423_v29  ;;  %v5505_v0 = vsel %vm5216_vm7, %v1157_v37, %v1430_v7  ;;  %2381 = vmatmul.bf16.vlgmr.msra.gmra.mxu2 %v5514_v17  ;;  %v7762_v29 = vld [vmem:[#allocation67_spill] sm:$0xff] }
 0x257   : >> { %7760 = vst [vmem:[#allocation51_spill] sm:$0xff] %v5501_v12  ;;  %v5507_v59 = vpop.permute.xlu2 %1410  ;;  %2506 = vmatpush.bf16.msrb.mxu3 %v5501_v12  ;;  %2554 = vmatpush.bf16.msrb.mxu0 %v5505_v0 }
 0x258   : >> { %7761 = vst [vmem:[#allocation60_spill] sm:$0xff] %v5505_v0  ;;  %v7763_v0 = vld [vmem:[#allocation68_spill] sm:$0xff] }
 0x25c   : >> { %v1033_v57 = vpop.permute.xlu1 %1032  ;;  %v1037_v22 = vpop.permute.xlu0 %1036 }
 0x25d   : >> { %v1142_v37 = vsel %vm1140_vm1, %v7762_v29, %v1033_v57  ;;  %v1143_v56 = vsel %vm1140_vm1, %v1033_v57, %v1035_v48  ;;  %v1144_v41 = vsel %vm1140_vm1, %v1035_v48, %v1037_v22  ;;  %v7766_v48 = vld [vmem:[#allocation11_spill] sm:$0xff] }
 0x25e   : >> { %vm1023_vm8 = vcmp.eq.s32.totalorder %v7766_v48, 0 }
 0x25f   : >> { %v5516_v34 = vpop.permute.xlu2 %1396  ;;  %vm1561_vm9 = vmpackc.low %vm1023_vm8, %vm1023_vm8 }
 0x264   : >> { %v1305_v7 = vpop.permute.xlu1 %1304  ;;  %v1309_v12 = vpop.permute.xlu0 %1308 }
 0x265   : >> { %v1415_v28 = vsel %vm1414_vm2, %v7763_v0, %v1305_v7  ;;  %v1416_v18 = vsel %vm1414_vm2, %v1305_v7, %v1307_v10  ;;  %v1417_v27 = vsel %vm1414_vm2, %v1307_v10, %v1309_v12 }
 0x266   : >> { %v5529_v21 = vsel %vm5082_vm13, %v1142_v37, %v1415_v28  ;;  %v5533_v29 = vsel %vm5090_vm14, %v1143_v56, %v1416_v18  ;;  %v5537_v57 = vsel %vm5096_vm15, %v1144_v41, %v1417_v27  ;;  %v7769_v18 = vmov 0  }
 0x267   : >> { %7764 = vst [vmem:[#allocation32_spill] sm:$0xff] %v5533_v29  ;;  %v5540_v44 = vpop.permute.xlu2 %1382  ;;  %2409 = vmatpush.bf16.msrb.mxu1 %v5529_v21  ;;  %2458 = vmatpush.bf16.msrb.mxu2 %v5533_v29  ;;  %v1565_v28 = vsel %vm1561_vm9, 65537, %v7769_v18  ;;  %vm1253_vm15 = vcmask 957440  }
 0x268   : >> { %7765 = vst [vmem:[#allocation40_spill] sm:$0xff] %v5537_v57  ;;  %2507 = vmatpush.bf16.msrb.mxu3 %v5537_v57  ;;  %v1572_v0 = vperm.slane %v1565_v28, 0  ;;  %v5577_v28 = vld [vmem:[%s7530_s1 + $0x68] sm:$0xff] }
 0x269   : >> { %2386 = vmatmul.bf16.gmra.mxu2 %v5577_v28 }
 0x26a   : >> { %v1615_v37 = vunpack.c.l.b16 %v1572_v0  ;;  %v1616_v56 = vunpack.c.h.b16 %v1572_v0 }
 0x26c   : >> { %v5545_v43 = vpop.permute.xlu1 %1052  ;;  %v5547_v19 = vpop.permute.xlu0 %1038  ;;  %vm1619_vm10 = vcmp.ne.s32.totalorder %v1615_v37, %v4730_v35  ;;  %vm1620_vm11 = vcmp.ne.s32.totalorder %v1616_v56, %v4733_v30  ;;  %v5595_v56 = vld [vmem:[%s7530_s1 + $0x70] sm:$0xff] }
 0x26d   : >> { %7767 = vst [vmem:[#allocation54_spill] sm:$0xff] %v5545_v43  ;;  %v1151_v27 = vsel %vm1140_vm1, %v1051_v60, %v5545_v43  ;;  %v1145_v32 = vsel %vm1140_vm1, %v1037_v22, %v5547_v19  ;;  %vm5584_vm12 = vmpackc.low %vm1620_vm11, %vm1619_vm10  ;;  %2391 = vmatmul.bf16.vlgmr.msra.gmra.mxu3 %v5595_v56  ;;  %v7779_v43 = vld [vmem:[#allocation52_spill] sm:$0xff] }
 0x26e   : >> { %7768 = vst [vmem:[#allocation67_spill] sm:$0xff] %v5547_v19  ;;  %v5556_v41 = vsel %vm5216_vm7, %v1151_v27, %v1424_v9 }
 0x26f   : >> { %7770 = vst [vmem:[#allocation68_spill] sm:$0xff] %v5556_v41  ;;  %v5558_v10 = vpop.permute.xlu2 %1368  ;;  %2555 = vmatpush.bf16.msrb.mxu0 %v5556_v41 }
 0x274   : >> { %v5561_v7 = vpop.permute.xlu1 %1310  ;;  %v1413_v48 = vpop.permute.xlu0 %1412 }
 0x275   : >> { %7771 = vst [vmem:[#allocation86_spill] sm:$0xff] %v5561_v7  ;;  %v1418_v60 = vsel %vm1414_vm2, %v1309_v12, %v5561_v7  ;;  %v1462_v12 = vsel %vm1414_vm2, %v5507_v59, %v1413_v48  ;;  %v5609_v48 = vld [vmem:[%s7530_s1 + $0x50] sm:$0xff] }
 0x276   : >> { %v5569_v9 = vsel %vm5216_vm7, %v1145_v32, %v1418_v60  ;;  %2371 = vmatmul.bf16.vlgmr.msra.gmra.mxu1 %v5609_v48 }
 0x277   : >> { %7772 = vst [vmem:[#allocation87_spill] sm:$0xff] %v5569_v9  ;;  %v1355_v27 = vpop.permute.xlu2 %1354  ;;  %2556 = vmatpush.bf16.msrb.mxu0 %v5569_v9 }
 0x278   : >> { %v5581_v22 = vsel %vm1414_vm2, %v5464_v36, %v1355_v27 }
 0x279   : >> { %7773 = vst [vmem:[#allocation88_spill] sm:$0xff] %v5581_v22 }
 0x27c   : >> { %v5590_v0 = vpop.permute.xlu1 %1243  ;;  %v1399_v37 = vpop.permute.xlu0 %1398 }
 0x27d   : >> { %v5600_v36 = vsel %vm5584_vm12, %v5590_v0, %v1462_v12  ;;  %v5619_v12 = vld [vmem:[%s7530_s1 + $0x40] sm:$0xff]  ;;  %v1456_v7 = vsel %vm1414_vm2, %v5516_v34, %v1399_v37 }
 0x27e   : >> { %7776 = vst [vmem:[#allocation89_spill] sm:$0xff] %v5600_v36  ;;  %1707 = vrot.lane.b32.xlu2 %v5600_v36, %s4138_s30  ;;  %2647 = vmatpush.bf16.msra.mxu2 %v5600_v36 }
 0x27f   : >> { %v1341_v32 = vpop.permute.xlu2 %1340  ;;  %2361 = vmatmul.bf16.vlgmr.msra.gmra.mxu0 %v5619_v12  ;;  %2459 = vmatmul.bf16.vlgmr.msrb.gmra.mxu2 %v5619_v12 }
 0x280   : >> { %v5613_v60 = vsel %vm1414_vm2, %v5489_v8, %v1341_v32 }
 0x281   : >> { %7777 = vst [vmem:[#allocation90_spill] sm:$0xff] %v5613_v60 }
 0x284   : >> { %v5623_v57 = vpop.permute.xlu1 %1241  ;;  %v1385_v19 = vpop.permute.xlu0 %1384 }
 0x285   : >> { %v5629_v8 = vsel %vm5584_vm12, %v5623_v57, %v1456_v7  ;;  %v1450_v41 = vsel %vm1414_vm2, %v5540_v44, %v1385_v19  ;;  %v5664_v19 = vld [vmem:[%s7530_s1 + $0x58] sm:$0xff] }
 0x286   : >> { %7778 = vst [vmem:[#allocation91_spill] sm:$0xff] %v5629_v8  ;;  %1841 = vrot.lane.b32.xlu2 %v7779_v43, %s4139_s3  ;;  %1705 = vrot.lane.b32.xlu1 %v5629_v8, %s4138_s30  ;;  %v5648_v43 = vld [vmem:[%s7530_s1 + $0x78] sm:$0xff] }
 0x287   : >> { %v1327_v29 = vpop.permute.xlu2 %1326  ;;  %2648 = vmatpush.bf16.msra.mxu2 %v5629_v8  ;;  %2396 = vmatmul.bf16.gmra.mxu3 %v5648_v43 }
 0x288   : >> { %v5638_v37 = vsel %vm1414_vm2, %v5484_v14, %v1327_v29  ;;  %v7782_v14 = vld [vmem:[#allocation73_spill] sm:$0xff]  ;;  %2376 = vmatmul.bf16.gmra.mxu1 %v5664_v19 }
 0x289   : >> { %7780 = vst [vmem:[#allocation52_spill] sm:$0xff] %v5638_v37 }
 0x28c   : >> { %v5643_v7 = vpop.permute.xlu1 %1239  ;;  %v1371_v36 = vpop.permute.xlu0 %1370 }
 0x28d   : >> { %v5653_v8 = vsel %vm5584_vm12, %v5643_v7, %v1450_v41  ;;  %v5670_v41 = vld [vmem:[%s7530_s1 + $0x48] sm:$0xff]  ;;  %v7845_v45 = vld [vmem:[#allocation91_spill] sm:$0xff] }
 0x28e   : >> { %7781 = vst [vmem:[#allocation92_spill] sm:$0xff] %v5653_v8  ;;  %1857 = vrot.lane.b32.xlu1 %v7782_v14, %s4139_s3  ;;  %1703 = vrot.lane.b32.xlu2 %v5653_v8, %s4138_s30  ;;  %v1444_v14 = vsel %vm1414_vm2, %v5558_v10, %v1371_v36 }
 0x28f   : >> { %2649 = vmatpush.bf16.msra.mxu2 %v5653_v8  ;;  %2366 = vmatmul.bf16.gmra.mxu0 %v5670_v41 }
 0x290   : >> { %2464 = vmatmul.bf16.gmra.mxu2 %v5670_v41 }
 0x294   : >> { %v5674_v37 = vpop.permute.xlu1 %1237  ;;  %v1357_v8 = vpop.permute.xlu0 %1356 }
 0x295   : >> { %v5680_v22 = vsel %vm5584_vm12, %v5674_v37, %v1444_v14  ;;  %v1438_v36 = vsel %vm1414_vm2, %v1355_v27, %v1357_v8 }
 0x296   : >> { %1124 = vrot.lane.b32.xlu1 %v4521_v11, %s4137_s29  ;;  %1843 = vrot.lane.b32.xlu2 %v5195_v47, %s4139_s3  ;;  %v7783_v11 = vld [vmem:[#allocation57_spill] sm:$0xff] }
 0x297   : >> { %1701 = vrot.lane.b32.xlu0 %v5680_v22, %s4138_s30  ;;  %2650 = vmatpush.bf16.msra.mxu2 %v5680_v22 }
 0x298   : >> { %2508 = vmatmul.bf16.vlgmr.msrb.gmra.mxu3 %v5619_v12  ;;  %2410 = vmatmul.bf16.vlgmr.msrb.gmra.mxu1 %v5619_v12 }
 0x29c   : >> { %v1343_v9 = vpop.permute.xlu0 %1342  ;;  %v5691_v60 = vpop.permute.xlu1 %1235 }
 0x29d   : >> { %v5696_v14 = vsel %vm5584_vm12, %v5691_v60, %v1438_v36  ;;  %v1432_v47 = vsel %vm1414_vm2, %v1341_v32, %v1343_v9 }
 0x29e   : >> { %1813 = vrot.lane.b32.xlu1 %v7783_v11, %s4139_s3  ;;  %1110 = vrot.lane.b32.xlu2 %v4509_v2, %s4137_s29  ;;  %v7784_v11 = vld [vmem:[#allocation58_spill] sm:$0xff] }
 0x29f   : >> { %1829 = vrot.lane.b32.xlu0 %v5251_v38, %s4139_s3  ;;  %2651 = vmatpush.bf16.msra.mxu2 %v5696_v14 }
 0x2a0   : >> { %2557 = vmatmul.bf16.vlgmr.msrb.gmra.mxu0 %v5619_v12  ;;  %2469 = vmatmul.bf16.gmra.mxu2 %v5609_v48 }
 0x2a4   : >> { %v1329_v27 = vpop.permute.xlu0 %1328  ;;  %v5708_v8 = vpop.permute.xlu1 %1233 }
 0x2a5   : >> { %v5718_v38 = vsel %vm5584_vm12, %v5708_v8, %v1432_v47  ;;  %v1426_v9 = vsel %vm1414_vm2, %v1327_v29, %v1329_v27  ;;  %v1571_v29 = vperm.slane %v5162_v46, 4  ;;  %v5741_v27 = vpop.permute.xlu2 %1312 }
 0x2a6   : >> { %1799 = vrot.lane.b32.xlu2 %v7784_v11, %s4139_s3  ;;  %1699 = vrot.lane.b32.xlu1 %v5696_v14, %s4138_s30  ;;  %7785 = vst [vmem:[#allocation73_spill] sm:$0xff] %v5718_v38  ;;  %v7786_v11 = vld [vmem:[#allocation61_spill] sm:$0xff] }
 0x2a7   : >> { %1096 = vrot.lane.b32.xlu0 %v4541_v4, %s4137_s29  ;;  %2652 = vmatpush.bf16.msra.mxu2 %v5718_v38  ;;  %v1609_v2 = vunpack.c.h.b16 %v1571_v29 }
 0x2a8   : >> { %2513 = vmatmul.bf16.gmra.mxu3 %v5670_v41  ;;  %2415 = vmatmul.bf16.gmra.mxu1 %v5670_v41 }
 0x2a9   : >> { %vm1613_vm14 = vcmp.ne.s32.totalorder %v1609_v2, %v4733_v30  ;;  %v7789_v2 = vld [vmem:[#allocation65_spill] sm:$0xff] }
 0x2ac   : >> { %v1315_v32 = vpop.permute.xlu0 %1314  ;;  %v5725_v36 = vpop.permute.xlu1 %1231 }
 0x2ad   : >> { %v5734_v47 = vsel %vm5584_vm12, %v5725_v36, %v1426_v9 }
 0x2ae   : >> { %1815 = vrot.lane.b32.xlu1 %v5269_v16, %s4139_s3  ;;  %1697 = vrot.lane.b32.xlu2 %v5718_v38, %s4138_s30  ;;  %v1420_v16 = vsel %vm1414_vm2, %v5741_v27, %v1315_v32  ;;  %v1461_v32 = vsel %vm1414_vm2, %v5068_v25, %v5507_v59  ;;  %v7790_v59 = vld [vmem:[#allocation5_spill] sm:$0xff]  ;;  %v7791_v25 = vld [vmem:[#allocation6_spill] sm:$0xff] }
 0x2af   : >> { %1785 = vrot.lane.b32.xlu0 %v7786_v11, %s4139_s3  ;;  %2653 = vmatpush.bf16.msra.mxu2 %v5734_v47  ;;  %v1608_v11 = vunpack.c.l.b16 %v1571_v29  ;;  %vm1678_vm3 = vcmp.ge.s32.totalorder %v7790_v59, 1  ;;  %vm1679_vm4 = vcmp.ge.s32.totalorder %v7791_v25, 1 }
 0x2b0   : >> { %2562 = vmatmul.bf16.gmra.mxu0 %v5670_v41  ;;  %2474 = vmatmul.bf16.gmra.mxu2 %v5664_v19  ;;  %vm2011_vm5 = vmpackc.low %vm1679_vm4, %vm1678_vm3 }
 0x2b1   : >> { %vm1612_vm13 = vcmp.ne.s32.totalorder %v1608_v11, %v4730_v35 }
 0x2b2   : >> { %vm5766_vm0 = vmpackc.low %vm1613_vm14, %vm1612_vm13 }
 0x2b4   : >> { %v5746_v4 = vpop.permute.xlu0 %1855  ;;  %v5748_v9 = vpop.permute.xlu1 %1229 }
 0x2b5   : >> { %v5754_v38 = vsel %vm5584_vm12, %v5748_v9, %v1420_v16 }
 0x2b6   : >> { %1082 = vrot.lane.b32.xlu1 %v4503_v40, %s4137_s29  ;;  %1801 = vrot.lane.b32.xlu2 %v5382_v24, %s4139_s3 }
 0x2b7   : >> { %1695 = vrot.lane.b32.xlu0 %v5734_v47, %s4138_s30  ;;  %2654 = vmatpush.bf16.msra.mxu2 %v5754_v38 }
 0x2b8   : >> { %2518 = vmatmul.bf16.gmra.mxu3 %v5609_v48  ;;  %2420 = vmatmul.bf16.gmra.mxu1 %v5609_v48 }
 0x2bc   : >> { %v1139_v46 = vpop.permute.xlu0 %1138 }
 0x2bd   : >> { %v1188_v24 = vsel %vm1140_vm1, %v5220_v5, %v1139_v46  ;;  %v7792_v5 = vld [vmem:[#allocation69_spill] sm:$0xff] }
 0x2be   : >> { %v1284_v29 = vsel %vm1253_vm15, %v1188_v24, %v5590_v0  ;;  %1771 = vrot.lane.b32.xlu1 %v7789_v2, %s4139_s3  ;;  %1068 = vrot.lane.b32.xlu2 %v4605_v49, %s4137_s29  ;;  %v7793_v24 = vld [vmem:[#allocation75_spill] sm:$0xff] }
 0x2bf   : >> { %1787 = vrot.lane.b32.xlu0 %v5424_v42, %s4139_s3  ;;  %v1676_v16 = vsel %vm5766_vm0, %v1284_v29, %v1461_v32  ;;  %v2015_v42 = vsel %vm2011_vm5, 65537, %v7769_v18 }
 0x2c0   : >> { %2598 = vmatpush.bf16.msra.mxu1 %v1676_v16  ;;  %2567 = vmatmul.bf16.gmra.mxu0 %v5609_v48  ;;  %v2019_v0 = vperm.slane %v2015_v42, 0 }
 0x2c1   : >> { %2479 = vmatmul.bf16.gmra.mxu2 %v5514_v17 }
 0x2c2   : >> { %v2026_v11 = vunpack.c.l.b16 %v2019_v0  ;;  %v2027_v46 = vunpack.c.h.b16 %v2019_v0 }
 0x2c4   : >> { %vm2030_vm6 = vcmp.ne.s32.totalorder %v2026_v11, %v4730_v35  ;;  %vm2031_vm7 = vcmp.ne.s32.totalorder %v2027_v46, %v4733_v30  ;;  %v1828_v11 = vpop.permute.xlu0 %1827 }
 0x2c5   : >> { %vm5815_vm8 = vmpackc.low %vm2031_vm7, %vm2030_vm6 }
 0x2c6   : >> { %1757 = vrot.lane.b32.xlu2 %v7792_v5, %s4139_s3  ;;  %1693 = vrot.lane.b32.xlu1 %v5754_v38, %s4138_s30 }
 0x2c7   : >> { %1054 = vrot.lane.b32.xlu0 %v7746_v20, %s4137_s29 }
 0x2c8   : >> { %2523 = vmatmul.bf16.gmra.mxu3 %v5664_v19  ;;  %2425 = vmatmul.bf16.gmra.mxu1 %v5664_v19 }
 0x2ce   : >> { %1040 = vrot.lane.b32.xlu2 %v7753_v58, %s4137_s29  ;;  %1773 = vrot.lane.b32.xlu1 %v5437_v61, %s4139_s3  ;;  %v7794_v61 = vld [vmem:[#allocation74_spill] sm:$0xff] }
 0x2cf   : >> { %1759 = vrot.lane.b32.xlu0 %v5529_v21, %s4139_s3  ;;  %v7838_v21 = vld [vmem:[#allocation40_spill] sm:$0xff] }
 0x2d0   : >> { %2572 = vmatmul.bf16.gmra.mxu0 %v5664_v19 }
 0x2d1   : >> { %2484 = vmatmul.bf16.gmra.mxu2 %v5577_v28 }
 0x2d6   : >> { %1861 = vrot.lane.b32.xlu2 %v7793_v24, %s4139_s3  ;;  %1859 = vrot.lane.b32.xlu1 %v7794_v61, %s4139_s3 }
 0x2d7   : >> { %1863 = vrot.lane.b32.xlu0 %v5232_v33, %s4139_s3 }
 0x2d8   : >> { %v1708_v32 = vpop.permute.xlu2 %1707  ;;  %2528 = vmatmul.bf16.gmra.mxu3 %v5514_v17  ;;  %2430 = vmatmul.bf16.gmra.mxu1 %v5514_v17 }
 0x2d9   : >> { %v1995_v29 = vsel %vm1414_vm2, %v1708_v32, %v5746_v4 }
 0x2da   : >> { %v2124_v2 = vsel %vm5815_vm8, %v1995_v29, 0 }
 0x2db   : >> { %2744 = vmatpush.bf16.msra.mxu3 %v2124_v2 }
 0x2de   : >> { %1847 = vrot.lane.b32.xlu2 %v5203_v52, %s4139_s3  ;;  %1845 = vrot.lane.b32.xlu1 %v5199_v50, %s4139_s3  ;;  %v5839_v50 = vpop.f32.mrf.mxu2 }
 0x2df   : >> { %1849 = vrot.lane.b32.xlu0 %v5308_v54, %s4139_s3  ;;  %7797 = vst [vmem:[#allocation57_spill] sm:$0xff] %v5839_v50  ;;  %v6073_v50 = vld [vmem:[%s7530_s1] sm:$0xff] }
 0x2e0   : >> { %v1842_v33 = vpop.permute.xlu2 %1841  ;;  %2577 = vmatmul.bf16.gmra.mxu0 %v5514_v17 }
 0x2e1   : >> { %2489 = vmatmul.bf16.gmra.mxu2 %v5595_v56 }
 0x2e6   : >> { %1831 = vrot.lane.b32.xlu2 %v5284_v15, %s4139_s3  ;;  %1865 = vrot.lane.b32.xlu1 %v1676_v16, %s4139_s3  ;;  %v5850_v15 = vpop.f32.mrf.mxu2 }
 0x2e7   : >> { %1833 = vrot.lane.b32.xlu0 %v5288_v6, %s4139_s3  ;;  %7798 = vst [vmem:[#allocation58_spill] sm:$0xff] %v5850_v15  ;;  %v2020_v6 = vperm.slane %v2015_v42, 4 }
 0x2e8   : >> { %v1704_v52 = vpop.permute.xlu2 %1703  ;;  %2533 = vmatmul.bf16.gmra.mxu3 %v5577_v28  ;;  %2435 = vmatmul.bf16.gmra.mxu1 %v5577_v28 }
 0x2e9   : >> { %v2033_v42 = vunpack.c.l.b16 %v2020_v6  ;;  %v2034_v24 = vunpack.c.h.b16 %v2020_v6  ;;  %v1987_v61 = vsel %vm1414_vm2, %v1704_v52, %v1828_v11 }
 0x2eb   : >> { %vm2037_vm9 = vcmp.ne.s32.totalorder %v2033_v42, %v4730_v35  ;;  %vm2038_vm10 = vcmp.ne.s32.totalorder %v2034_v24, %v4733_v30 }
 0x2ec   : >> { %vm5884_vm11 = vmpackc.low %vm2038_vm10, %vm2037_vm9 }
 0x2ee   : >> { %1835 = vrot.lane.b32.xlu1 %v5349_v23, %s4139_s3  ;;  %v1449_v23 = vsel %vm1414_vm2, %v5331_v63, %v5540_v44  ;;  %v5875_v63 = vpop.f32.mrf.mxu2 }
 0x2ef   : >> { %1817 = vrot.lane.b32.xlu0 %v5322_v51, %s4139_s3  ;;  %7799 = vst [vmem:[#allocation61_spill] sm:$0xff] %v5875_v63 }
 0x2f0   : >> { %v5845_v54 = vpop.permute.xlu2 %1843  ;;  %2582 = vmatmul.bf16.gmra.mxu0 %v5577_v28 }
 0x2f1   : >> { %2494 = vmatmul.bf16.gmra.mxu2 %v5648_v43 }
 0x2f6   : >> { %1819 = vrot.lane.b32.xlu1 %v5345_v26, %s4139_s3 }
 0x2f8   : >> { %v1706_v16 = vpop.permute.xlu1 %1705  ;;  %v1111_v5 = vpop.permute.xlu2 %1110  ;;  %2538 = vmatmul.bf16.gmra.mxu3 %v5595_v56  ;;  %2440 = vmatmul.bf16.gmra.mxu1 %v5595_v56 }
 0x2f9   : >> { %v1991_v51 = vsel %vm1414_vm2, %v1706_v16, %v1842_v33  ;;  %v1176_v0 = vsel %vm1140_vm1, %v5245_v3, %v1111_v5  ;;  %v2110_v3 = vsel %vm5815_vm8, %v1987_v61, 0  ;;  %v5896_v16 = vpop.f32.mrf.mxu3  ;;  %v1905_v5 = vsel %vm1414_vm2, %v1842_v33, %v5845_v54 }
 0x2fa   : >> { %v1276_v46 = vsel %vm1253_vm15, %v1176_v0, %v5643_v7  ;;  %v2117_v26 = vsel %vm5815_vm8, %v1991_v51, 0  ;;  %v5877_v7 = vpop.f32.mrf.mxu1  ;;  %7802 = vst [vmem:[#allocation65_spill] sm:$0xff] %v5896_v16  ;;  %v7830_v16 = vld [vmem:[#allocation10_spill] sm:$0xff] }
 0x2fb   : >> { %2745 = vmatpush.bf16.msra.mxu3 %v2117_v26  ;;  %v1662_v44 = vsel %vm5766_vm0, %v1276_v46, %v1449_v23  ;;  %v5905_v23 = vpop.f32.mrf.mxu2  ;;  %vm1683_vm13 = vcmp.ge.s32.totalorder %v7830_v16, 1 }
 0x2fc   : >> { %1837 = vrot.lane.b32.xlu0 %v1662_v44, %s4139_s3  ;;  %v5892_v52 = vpop.f32.mrf.mxu0  ;;  %7803 = vst [vmem:[#allocation69_spill] sm:$0xff] %v5905_v23 }
 0x2fe   : >> { %1803 = vrot.lane.b32.xlu1 %v5386_v55, %s4139_s3 }
 0x2ff   : >> { %2746 = vmatpush.bf16.msra.mxu3 %v2110_v3 }
 0x300   : >> { %v5879_v32 = vpop.permute.xlu1 %1857  ;;  %v5881_v29 = vpop.permute.xlu2 %1799  ;;  %2587 = vmatmul.bf16.gmra.mxu0 %v5595_v56 }
 0x301   : >> { %v1911_v2 = vsel %vm1414_vm2, %v5746_v4, %v5879_v32  ;;  %v2118_v4 = vsel %vm5884_vm11, %v1905_v5, 0  ;;  %2655 = vmatmul.bf16.vlgmr.msra.gmra.mxu2 %v5619_v12  ;;  %v5917_v24 = vpop.f32.mrf.mxu3 }
 0x302   : >> { %v2125_v6 = vsel %vm5884_vm11, %v1911_v2, 0  ;;  %v5907_v51 = vpop.f32.mrf.mxu1  ;;  %7805 = vst [vmem:[#allocation74_spill] sm:$0xff] %v5917_v24  ;;  %v7812_v24 = vld [vmem:[#allocation83_spill] sm:$0xff] }
 0x303   : >> { %2793 = vmatpush.bf16.msra.mxu0 %v2125_v6  ;;  %7804 = vst [vmem:[#allocation75_spill] sm:$0xff] %v5907_v51 }
 0x304   : >> { %1807 = vrot.lane.b32.xlu0 %v5473_v53, %s4139_s3  ;;  %v1455_v53 = vsel %vm1414_vm2, %v5296_v39, %v5516_v34  ;;  %v5921_v3 = vpop.f32.mrf.mxu0 }
 0x307   : >> { %2794 = vmatpush.bf16.msra.mxu0 %v2118_v4 }
 0x308   : >> { %v1125_v0 = vpop.permute.xlu1 %1124  ;;  %v1698_v46 = vpop.permute.xlu2 %1697  ;;  %2543 = vmatmul.bf16.gmra.mxu3 %v5648_v43  ;;  %2445 = vmatmul.bf16.gmra.mxu1 %v5648_v43 }
 0x309   : >> { %v1182_v26 = vsel %vm1140_vm1, %v5272_v1, %v1125_v0  ;;  %v1702_v33 = vpop.permute.xlu0 %1701  ;;  %v5926_v1 = vpop.f32.mrf.mxu2 }
 0x30a   : >> { %v1280_v42 = vsel %vm1253_vm15, %v1182_v26, %v5623_v57  ;;  %v5928_v2 = vpop.f32.mrf.mxu1  ;;  %v5940_v4 = vpop.f32.mrf.mxu3 }
 0x30b   : >> { %v1669_v61 = vsel %vm5766_vm0, %v1280_v42, %v1455_v53  ;;  %7806 = vst [vmem:[#allocation93_spill] sm:$0xff] %v5928_v2 }
 0x30c   : >> { %1851 = vrot.lane.b32.xlu2 %v1669_v61, %s4139_s3  ;;  %1791 = vrot.lane.b32.xlu0 %v5456_v62, %s4139_s3  ;;  %7807 = vst [vmem:[#allocation94_spill] sm:$0xff] %v5940_v4 }
 0x30d   : >> { %2599 = vmatpush.bf16.msra.mxu1 %v1669_v61  ;;  %v7809_v61 = vld [vmem:[#allocation30_spill] sm:$0xff] }
 0x310   : >> { %v1814_v39 = vpop.permute.xlu1 %1813  ;;  %v5930_v34 = vpop.permute.xlu2 %1801  ;;  %2592 = vmatmul.bf16.gmra.mxu0 %v5648_v43 }
 0x311   : >> { %v1983_v57 = vsel %vm1414_vm2, %v1702_v33, %v1814_v39  ;;  %2600 = vmatpush.bf16.msra.mxu1 %v1662_v44  ;;  %v5934_v6 = vpop.permute.xlu0 %1829  ;;  %v5949_v44 = vpop.f32.mrf.mxu0  ;;  %2660 = vmatmul.bf16.gmra.mxu2 %v5670_v41 }
 0x312   : >> { %v1899_v5 = vsel %vm1414_vm2, %v1828_v11, %v5934_v6  ;;  %v2103_v62 = vsel %vm5815_vm8, %v1983_v57, 0  ;;  %v5952_v11 = vpop.f32.mrf.mxu2  ;;  %v5954_v26 = vpop.f32.mrf.mxu1 }
 0x313   : >> { %2747 = vmatpush.bf16.msra.mxu3 %v2103_v62  ;;  %v2111_v0 = vsel %vm5884_vm11, %v1899_v5, 0  ;;  %7808 = vst [vmem:[#allocation95_spill] sm:$0xff] %v5954_v26  ;;  %v7810_v5 = vld [vmem:[#allocation85_spill] sm:$0xff]  ;;  %v5967_v4 = vpop.f32.mrf.mxu3 }
 0x314   : >> { %2795 = vmatpush.bf16.msra.mxu0 %v2111_v0  ;;  %1821 = vrot.lane.b32.xlu2 %v5409_v13, %s4139_s3  ;;  %7811 = vst [vmem:[#allocation30_spill] sm:$0xff] %v5967_v4 }
 0x315   : >> { %1775 = vrot.lane.b32.xlu0 %v5482_v31, %s4139_s3 }
 0x318   : >> { %v1700_v33 = vpop.permute.xlu1 %1699  ;;  %v1069_v53 = vpop.permute.xlu2 %1068 }
 0x319   : >> { %v1979_v42 = vsel %vm1414_vm2, %v1700_v33, %v5881_v29  ;;  %v1158_v57 = vsel %vm1140_vm1, %v7809_v61, %v1069_v53  ;;  %v1097_v13 = vpop.permute.xlu0 %1096  ;;  %v1443_v33 = vsel %vm1414_vm2, %v7812_v24, %v5558_v10  ;;  %v7813_v61 = vld [vmem:[#allocation90_spill] sm:$0xff]  ;;  %v5985_v24 = vpop.f32.mrf.mxu0 }
 0x31a   : >> { %v1264_v31 = vsel %vm1253_vm15, %v1158_v57, %v5708_v8  ;;  %v1170_v62 = vsel %vm1140_vm1, %v7810_v5, %v1097_v13  ;;  %v2096_v0 = vsel %vm5815_vm8, %v1979_v42, 0  ;;  %v7814_v57 = vld [vmem:[#allocation84_spill] sm:$0xff]  ;;  %v5983_v10 = vpop.f32.mrf.mxu2  ;;  %v5991_v5 = vpop.f32.mrf.mxu1 }
 0x31b   : >> { %v1272_v53 = vsel %vm1253_vm15, %v1170_v62, %v5674_v37  ;;  %2748 = vmatpush.bf16.msra.mxu3 %v2096_v0  ;;  %v1641_v8 = vsel %vm5766_vm0, %v1264_v31, %v7813_v61  ;;  %v6001_v61 = vpop.f32.mrf.mxu3 }
 0x31c   : >> { %1805 = vrot.lane.b32.xlu2 %v7814_v57, %s4139_s3  ;;  %v1655_v42 = vsel %vm5766_vm0, %v1272_v53, %v1443_v33  ;;  %v1887_v33 = vsel %vm1414_vm2, %v5881_v29, %v5930_v34  ;;  %7815 = vst [vmem:[#allocation85_spill] sm:$0xff] %v6001_v61  ;;  %v7817_v57 = vld [vmem:[#allocation87_spill] sm:$0xff] }
 0x31d   : >> { %1795 = vrot.lane.b32.xlu0 %v1641_v8, %s4139_s3  ;;  %1823 = vrot.lane.b32.xlu1 %v1655_v42, %s4139_s3 }
 0x31e   : >> { %2601 = vmatpush.bf16.msra.mxu1 %v1655_v42  ;;  %v2097_v42 = vsel %vm5884_vm11, %v1887_v33, 0 }
 0x320   : >> { %v5987_v37 = vpop.permute.xlu1 %1815 }
 0x321   : >> { %v1893_v13 = vsel %vm1414_vm2, %v1814_v39, %v5987_v37  ;;  %v1786_v31 = vpop.permute.xlu0 %1785  ;;  %v7816_v39 = vld [vmem:[#allocation59_spill] sm:$0xff]  ;;  %2665 = vmatmul.bf16.gmra.mxu2 %v5609_v48 }
 0x322   : >> { %v1975_v62 = vsel %vm1414_vm2, %v1698_v46, %v1786_v31  ;;  %v2104_v0 = vsel %vm5884_vm11, %v1893_v13, 0  ;;  %v7818_v46 = vld [vmem:[#allocation60_spill] sm:$0xff]  ;;  %v6011_v29 = vpop.f32.mrf.mxu2  ;;  %v6013_v13 = vpop.permute.xlu2 %1757 }
 0x323   : >> { %v2089_v53 = vsel %vm5815_vm8, %v1975_v62, 0  ;;  %2796 = vmatpush.bf16.msra.mxu0 %v2104_v0  ;;  %7819 = vst [vmem:[#allocation83_spill] sm:$0xff] %v6011_v29  ;;  %v7820_v0 = vld [vmem:[#allocation47_spill] sm:$0xff]  ;;  %v6025_v4 = vpop.f32.mrf.mxu1 }
 0x324   : >> { %2749 = vmatpush.bf16.msra.mxu3 %v2089_v53  ;;  %1789 = vrot.lane.b32.xlu2 %v7816_v39, %s4139_s3  ;;  %v6017_v39 = vpop.f32.mrf.mxu0 }
 0x325   : >> { %1765 = vrot.lane.b32.xlu0 %v7817_v57, %s4139_s3  ;;  %1793 = vrot.lane.b32.xlu1 %v7818_v46, %s4139_s3  ;;  %7821 = vst [vmem:[#allocation90_spill] sm:$0xff] %v6017_v39  ;;  %v7822_v46 = vld [vmem:[#allocation88_spill] sm:$0xff] }
 0x327   : >> { %2797 = vmatpush.bf16.msra.mxu0 %v2097_v42  ;;  %v7823_v42 = vld [vmem:[#allocation89_spill] sm:$0xff] }
 0x328   : >> { %v1083_v62 = vpop.permute.xlu1 %1082 }
 0x329   : >> { %v1164_v53 = vsel %vm1140_vm1, %v7820_v0, %v1083_v62  ;;  %v1696_v61 = vpop.permute.xlu0 %1695  ;;  %v7824_v62 = vld [vmem:[#allocation51_spill] sm:$0xff]  ;;  %v6032_v0 = vpop.f32.mrf.mxu3 }
 0x32a   : >> { %v1268_v57 = vsel %vm1253_vm15, %v1164_v53, %v5691_v60  ;;  %7825 = vst [vmem:[#allocation84_spill] sm:$0xff] %v6032_v0  ;;  %v6034_v39 = vpop.f32.mrf.mxu2 }
 0x32b   : >> { %v1648_v33 = vsel %vm5766_vm0, %v1268_v57, %v7822_v46  ;;  %7826 = vst [vmem:[#allocation59_spill] sm:$0xff] %v6034_v39  ;;  %v1041_v46 = vpop.permute.xlu2 %1040 }
 0x32c   : >> { %1809 = vrot.lane.b32.xlu2 %v1648_v33, %s4139_s3  ;;  %2602 = vmatpush.bf16.msra.mxu1 %v1648_v33  ;;  %v6045_v0 = vpop.f32.mrf.mxu0 }
 0x32d   : >> { %1867 = vrot.lane.b32.xlu0 %v7823_v42, %s4139_s3  ;;  %1777 = vrot.lane.b32.xlu1 %v7824_v62, %s4139_s3  ;;  %7827 = vst [vmem:[#allocation87_spill] sm:$0xff] %v6045_v0 }
 0x330   : >> { %v1772_v60 = vpop.permute.xlu1 %1771  ;;  %2603 = vmatpush.bf16.msra.mxu1 %v1641_v8  ;;  %v7828_v8 = vld [vmem:[#allocation68_spill] sm:$0xff] }
 0x331   : >> { %v1971_v53 = vsel %vm1414_vm2, %v1696_v61, %v1772_v60  ;;  %v6037_v57 = vpop.permute.xlu0 %1787  ;;  %v7829_v61 = vld [vmem:[#allocation9_spill] sm:$0xff]  ;;  %2670 = vmatmul.bf16.gmra.mxu2 %v5664_v19 }
 0x332   : >> { %v1881_v33 = vsel %vm1414_vm2, %v1786_v31, %v6037_v57  ;;  %v2082_v42 = vsel %vm5815_vm8, %v1971_v53, 0  ;;  %vm1682_vm12 = vcmp.ge.s32.totalorder %v7829_v61, 1  ;;  %v7831_v31 = vld [vmem:[#allocation32_spill] sm:$0xff]  ;;  %v7832_v53 = vld [vmem:[#allocation7_spill] sm:$0xff] }
 0x333   : >> { %2750 = vmatpush.bf16.msra.mxu3 %v2082_v42  ;;  %v2090_v62 = vsel %vm5884_vm11, %v1881_v33, 0  ;;  %vm1680_vm14 = vcmp.ge.s32.totalorder %v7832_v53, 1  ;;  %v7833_v42 = vld [vmem:[#allocation8_spill] sm:$0xff]  ;;  %v6057_v33 = vpop.f32.mrf.mxu1  ;;  %vm2013_vm4 = vmpackc.low %vm1683_vm13, %vm1682_vm12 }
 0x334   : >> { %2798 = vmatpush.bf16.msra.mxu0 %v2090_v62  ;;  %1779 = vrot.lane.b32.xlu2 %v7828_v8, %s4139_s3  ;;  %vm1681_vm3 = vcmp.ge.s32.totalorder %v7833_v42, 1  ;;  %v6059_v62 = vpop.f32.mrf.mxu2  ;;  %v6061_v8 = vpop.f32.mrf.mxu3 }
 0x335   : >> { %1825 = vrot.lane.b32.xlu0 %v5680_v22, %s4139_s3  ;;  %1761 = vrot.lane.b32.xlu1 %v7831_v31, %s4139_s3  ;;  %7834 = vst [vmem:[#allocation60_spill] sm:$0xff] %v6059_v62  ;;  %vm2012_vm5 = vmpackc.low %vm1681_vm3, %vm1680_vm14  ;;  %v7836_v31 = vld [vmem:[#allocation54_spill] sm:$0xff]  ;;  %v7837_v62 = vld [vmem:[#allocation67_spill] sm:$0xff]  ;;  %vm2131_vm3 = vcmp.le.s32.totalorder %v7790_v59, 26 }
 0x336   : >> { %7835 = vst [vmem:[#allocation47_spill] sm:$0xff] %v6061_v8  ;;  %v6076_v8 = vsel %vm2013_vm4, 65537, %v7769_v18  ;;  %vm2132_vm4 = vcmp.le.s32.totalorder %v7791_v25, 26  ;;  %v7887_v25 = vld [vmem:[#allocation11_spill] sm:$0xff] }
 0x338   : >> { %v1694_v0 = vpop.permute.xlu1 %1693 }
 0x339   : >> { %v1967_v23 = vsel %vm1414_vm2, %v1694_v0, %v6013_v13  ;;  %v1055_v22 = vpop.permute.xlu0 %1054  ;;  %v1146_v0 = vsel %vm1140_vm1, %v7837_v62, %v1041_v46  ;;  %v2023_v46 = vperm.slane %v6076_v8, 0 }
 0x33a   : >> { %v1152_v63 = vsel %vm1140_vm1, %v7836_v31, %v1055_v22  ;;  %v2075_v15 = vsel %vm5815_vm8, %v1967_v23, 0  ;;  %v2016_v22 = vsel %vm2012_vm5, 65537, %v7769_v18  ;;  %v1862_v31 = vpop.permute.xlu2 %1861  ;;  %v7839_v23 = vld [vmem:[#allocation52_spill] sm:$0xff]  ;;  %vm2152_vm5 = vmpackc.low %vm2132_vm4, %vm2131_vm3 }
 0x33b   : >> { %v1260_v26 = vsel %vm1253_vm15, %v1152_v63, %v5725_v36  ;;  %2751 = vmatpush.bf16.msra.mxu3 %v2075_v15  ;;  %v2022_v2 = vperm.slane %v2016_v22, 4  ;;  %v6092_v36 = vpop.f32.mrf.mxu0  ;;  %v1256_v15 = vsel %vm1253_vm15, %v1146_v0, %v5748_v9  ;;  %v2021_v63 = vperm.slane %v2016_v22, 0 }
 0x33c   : >> { %1763 = vrot.lane.b32.xlu2 %v7838_v21, %s4139_s3  ;;  %v1634_v39 = vsel %vm5766_vm0, %v1260_v26, %v7839_v23  ;;  %7840 = vst [vmem:[#allocation88_spill] sm:$0xff] %v6092_v36  ;;  %v6097_v62 = vpop.f32.mrf.mxu2  ;;  %v6099_v26 = vpop.f32.mrf.mxu1  ;;  %v7843_v21 = vld [vmem:[#allocation86_spill] sm:$0xff]  ;;  %v2054_v0 = vunpack.c.l.b16 %v2023_v46  ;;  %v2055_v22 = vunpack.c.h.b16 %v2023_v46 }
 0x33d   : >> { %1783 = vrot.lane.b32.xlu0 %v5734_v47, %s4139_s3  ;;  %1781 = vrot.lane.b32.xlu1 %v1634_v39, %s4139_s3  ;;  %7841 = vst [vmem:[#allocation89_spill] sm:$0xff] %v6097_v62  ;;  %v1419_v47 = vsel %vm1414_vm2, %v7843_v21, %v5741_v27  ;;  %v2047_v29 = vunpack.c.l.b16 %v2022_v2  ;;  %v2048_v51 = vunpack.c.h.b16 %v2022_v2  ;;  %v6112_v62 = vpop.f32.mrf.mxu3  ;;  %v2040_v21 = vunpack.c.l.b16 %v2021_v63 }
 0x33e   : >> { %2604 = vmatpush.bf16.msra.mxu1 %v1634_v39  ;;  %2752 = vmatmul.bf16.vlgmr.msra.gmra.mxu3 %v6073_v50  ;;  %7842 = vst [vmem:[#allocation51_spill] sm:$0xff] %v6099_v26  ;;  %v1627_v36 = vsel %vm5766_vm0, %v1256_v15, %v1419_v47  ;;  %v2041_v26 = vunpack.c.h.b16 %v2021_v63  ;;  %vm2058_vm0 = vcmp.ne.s32.totalorder %v2054_v0, %v4730_v35 }
 0x33f   : >> { %7844 = vst [vmem:[#allocation68_spill] sm:$0xff] %v6112_v62  ;;  %vm2051_vm1 = vcmp.ne.s32.totalorder %v2047_v29, %v4730_v35  ;;  %vm2052_vm15 = vcmp.ne.s32.totalorder %v2048_v51, %v4733_v30  ;;  %vm2059_vm6 = vcmp.ne.s32.totalorder %v2055_v22, %v4733_v30  ;;  %vm2044_vm7 = vcmp.ne.s32.totalorder %v2040_v21, %v4730_v35  ;;  %v7855_v21 = vld [vmem:[#allocation92_spill] sm:$0xff] }
 0x340   : >> { %v6104_v23 = vpop.permute.xlu1 %1773  ;;  %vm2045_vm8 = vcmp.ne.s32.totalorder %v2041_v26, %v4733_v30  ;;  %vm6131_vm9 = vmpackc.low %vm2052_vm15, %vm2051_vm1  ;;  %vm1684_vm1 = vcmp.ge.s32.totalorder %v7887_v25, 1 }
 0x341   : >> { %v1875_v39 = vsel %vm1414_vm2, %v1772_v60, %v6104_v23  ;;  %v6110_v9 = vpop.permute.xlu0 %1759  ;;  %vm6139_vm10 = vmpackc.low %vm2059_vm6, %vm2058_vm0  ;;  %2675 = vmatmul.bf16.gmra.mxu2 %v5514_v17 }
 0x342   : >> { %2605 = vmatpush.bf16.msra.mxu1 %v1627_v36  ;;  %v2083_v27 = vsel %vm5884_vm11, %v1875_v39, 0  ;;  %v1869_v2 = vsel %vm1414_vm2, %v6013_v13, %v6110_v9  ;;  %v1848_v60 = vpop.permute.xlu2 %1847  ;;  %vm6143_vm12 = vmpackc.low %vm2045_vm8, %vm2044_vm7  ;;  %vm2133_vm7 = vcmp.le.s32.totalorder %v7832_v53, 26  ;;  %vm2134_vm8 = vcmp.le.s32.totalorder %v7833_v42, 26  ;;  %v7933_v42 = vld [vmem:[#allocation46_spill] sm:$0xff] }
 0x343   : >> { %2799 = vmatpush.bf16.msra.mxu0 %v2083_v27  ;;  %v2076_v13 = vsel %vm5884_vm11, %v1869_v2, 0  ;;  %vm2014_vm15 = vmpackc.low %vm1684_vm1, %vm1684_vm1 }
 0x344   : >> { %1767 = vrot.lane.b32.xlu2 %v1627_v36, %s4139_s3  ;;  %v6137_v29 = vpop.f32.mrf.mxu2  ;;  %v6150_v47 = vpop.f32.mrf.mxu1 }
 0x345   : >> { %2606 = vmatmul.bf16.vlgmr.msra.gmra.mxu1 %v5619_v12  ;;  %1853 = vrot.lane.b32.xlu1 %v7845_v45, %s4139_s3  ;;  %v6135_v12 = vpop.f32.mrf.mxu0  ;;  %7849 = vst [vmem:[#allocation54_spill] sm:$0xff] %v6137_v29  ;;  %v6166_v17 = vpop.f32.mrf.mxu3 }
 0x346   : >> { %7848 = vst [vmem:[#allocation32_spill] sm:$0xff] %v6135_v12 }
 0x347   : >> { %2800 = vmatpush.bf16.msra.mxu0 %v2076_v13  ;;  %7854 = vst [vmem:[#allocation67_spill] sm:$0xff] %v6166_v17 }
 0x348   : >> { %v1860_v46 = vpop.permute.xlu1 %1859 }
 0x349   : >> { %v1912_v15 = vsel %vm1414_vm2, %v5879_v32, %v1860_v46  ;;  %v1913_v63 = vsel %vm1414_vm2, %v1860_v46, %v1862_v31  ;;  %v1864_v26 = vpop.permute.xlu0 %1863  ;;  %v6162_v32 = vld [vmem:[%s7530_s1 + $0x8] sm:$0xff] }
 0x34a   : >> { %v2126_v39 = vsel %vm6143_vm12, %v1912_v15, 0  ;;  %v2127_v0 = vsel %vm6131_vm9, %v1913_v63, 0  ;;  %v1914_v22 = vsel %vm1414_vm2, %v1862_v31, %v1864_v26  ;;  %2801 = vmatmul.bf16.vlgmr.msra.gmra.mxu0 %v6073_v50  ;;  %v2024_v31 = vperm.slane %v6076_v8, 4  ;;  %v1832_v45 = vpop.permute.xlu2 %1831 }
 0x34b   : >> { %v2128_v27 = vsel %vm6139_vm10, %v1914_v22, 0  ;;  %2842 = vmatpush.bf16.msrb.mxu1 %v2126_v39  ;;  %2891 = vmatpush.bf16.msrb.mxu2 %v2127_v0 }
 0x34c   : >> { %2940 = vmatpush.bf16.msrb.mxu3 %v2128_v27  ;;  %1839 = vrot.lane.b32.xlu2 %v7855_v21, %s4139_s3  ;;  %v6174_v2 = vpop.f32.mrf.mxu2  ;;  %v2061_v46 = vunpack.c.l.b16 %v2024_v31  ;;  %v2062_v15 = vunpack.c.h.b16 %v2024_v31  ;;  %v1900_v21 = vsel %vm1414_vm2, %v5934_v6, %v1832_v45  ;;  %v6190_v31 = vpop.f32.mrf.mxu1 }
 0x34d   : >> { %1811 = vrot.lane.b32.xlu1 %v5696_v14, %s4139_s3  ;;  %7856 = vst [vmem:[#allocation40_spill] sm:$0xff] %v6174_v2  ;;  %v6179_v22 = vpop.f32.mrf.mxu0  ;;  %v6199_v6 = vpop.f32.mrf.mxu3 }
 0x34e   : >> { %2757 = vmatmul.bf16.gmra.mxu3 %v6162_v32  ;;  %7857 = vst [vmem:[#allocation52_spill] sm:$0xff] %v6179_v22  ;;  %vm2065_vm11 = vcmp.ne.s32.totalorder %v2061_v46, %v4730_v35  ;;  %vm2066_vm13 = vcmp.ne.s32.totalorder %v2062_v15, %v4733_v30 }
 0x34f   : >> { %7859 = vst [vmem:[#allocation86_spill] sm:$0xff] %v6199_v6  ;;  %vm6203_vm14 = vmpackc.low %vm2066_vm13, %vm2065_vm11 }
 0x350   : >> { %v1846_v13 = vpop.permute.xlu1 %1845  ;;  %vm2153_vm11 = vmpackc.low %vm2134_vm8, %vm2133_vm7 }
 0x351   : >> { %v1906_v63 = vsel %vm1414_vm2, %v5845_v54, %v1846_v13  ;;  %v1907_v39 = vsel %vm1414_vm2, %v1846_v13, %v1848_v60  ;;  %v1850_v0 = vpop.permute.xlu0 %1849  ;;  %v7858_v13 = vld [vmem:[#allocation73_spill] sm:$0xff]  ;;  %2680 = vmatmul.bf16.gmra.mxu2 %v5577_v28 }
 0x352   : >> { %v1908_v8 = vsel %vm1414_vm2, %v1848_v60, %v1850_v0  ;;  %v2119_v14 = vsel %vm6143_vm12, %v1906_v63, 0  ;;  %v2120_v27 = vsel %vm6131_vm9, %v1907_v39, 0  ;;  %v2112_v60 = vsel %vm6143_vm12, %v1900_v21, 0 }
 0x353   : >> { %2843 = vmatpush.bf16.msrb.mxu1 %v2119_v14  ;;  %2892 = vmatpush.bf16.msrb.mxu2 %v2120_v27  ;;  %v2121_v54 = vsel %vm6139_vm10, %v1908_v8, 0  ;;  %v6221_v14 = vld [vmem:[%s7530_s1 + $0x10] sm:$0xff] }
 0x354   : >> { %2941 = vmatpush.bf16.msrb.mxu3 %v2121_v54  ;;  %1797 = vrot.lane.b32.xlu2 %v7858_v13, %s4139_s3  ;;  %v6207_v39 = vpop.f32.mrf.mxu2  ;;  %v6227_v28 = vpop.f32.mrf.mxu1 }
 0x355   : >> { %2611 = vmatmul.bf16.gmra.mxu1 %v5670_v41  ;;  %1769 = vrot.lane.b32.xlu1 %v5754_v38, %s4139_s3  ;;  %7862 = vst [vmem:[#allocation91_spill] sm:$0xff] %v6207_v39  ;;  %v6230_v21 = vpop.f32.mrf.mxu3  ;;  %s7084_s3 = scalar_lea.vmem %s4258_s23, %s3942_s25 }
 0x356   : >> { %7864 = vst [vmem:[#allocation73_spill] sm:$0xff] %v6230_v21 }
 0x357   : >> { %2844 = vmatpush.bf16.msrb.mxu1 %v2112_v60 }
 0x358   : >> { %v6209_v46 = vpop.permute.xlu1 %1865 }
 0x359   : >> { %v1915_v41 = vsel %vm1414_vm2, %v1864_v26, %v6209_v46  ;;  %v1834_v15 = vpop.permute.xlu0 %1833  ;;  %v6225_v26 = vpop.f32.mrf.mxu0 }
 0x35a   : >> { %v2129_v38 = vsel %vm6203_vm14, %v1915_v41, 0  ;;  %v1901_v8 = vsel %vm1414_vm2, %v1832_v45, %v1834_v15  ;;  %2806 = vmatmul.bf16.gmra.mxu0 %v6162_v32  ;;  %7863 = vst [vmem:[#allocation92_spill] sm:$0xff] %v6225_v26 }
 0x35b   : >> { %v2113_v27 = vsel %vm6131_vm9, %v1901_v8, 0  ;;  %2989 = vmatpush.bf16.msrb.mxu0 %v2129_v38 }
 0x35c   : >> { %2893 = vmatpush.bf16.msrb.mxu2 %v2113_v27  ;;  %v6232_v45 = vpop.f32.mrf.mxu2  ;;  %v6248_v6 = vpop.f32.mrf.mxu1 }
 0x35d   : >> { %7865 = vst [vmem:[#allocation96_spill] sm:$0xff] %v6232_v45  ;;  %v2018_v45 = vsel %vm2014_vm15, 65537, %v7769_v18 }
 0x35e   : >> { %2762 = vmatmul.bf16.gmra.mxu3 %v6221_v14  ;;  %7867 = vst [vmem:[#allocation98_spill] sm:$0xff] %v6248_v6 }
 0x360   : >> { %v1836_v54 = vpop.permute.xlu1 %1835 }
 0x361   : >> { %v1902_v13 = vsel %vm1414_vm2, %v1834_v15, %v1836_v54  ;;  %v1818_v60 = vpop.permute.xlu0 %1817  ;;  %v6242_v27 = vpop.f32.mrf.mxu0  ;;  %2685 = vmatmul.bf16.gmra.mxu2 %v5595_v56 }
 0x362   : >> { %v1894_v41 = vsel %vm1414_vm2, %v5987_v37, %v1818_v60  ;;  %v2114_v38 = vsel %vm6139_vm10, %v1902_v13, 0  ;;  %7866 = vst [vmem:[#allocation97_spill] sm:$0xff] %v6242_v27 }
 0x363   : >> { %v2105_v8 = vsel %vm6143_vm12, %v1894_v41, 0  ;;  %2942 = vmatpush.bf16.msrb.mxu3 %v2114_v38  ;;  %v6255_v38 = vpop.f32.mrf.mxu3 }
 0x364   : >> { %2845 = vmatpush.bf16.msrb.mxu1 %v2105_v8  ;;  %v6252_v17 = vpop.f32.mrf.mxu2  ;;  %7869 = vst [vmem:[#allocation100_spill] sm:$0xff] %v6255_v38 }
 0x365   : >> { %2616 = vmatmul.bf16.gmra.mxu1 %v5609_v48  ;;  %7868 = vst [vmem:[#allocation99_spill] sm:$0xff] %v6252_v17 }
 0x366   : >> { %v6244_v21 = vpop.permute.xlu2 %1851 }
 0x367   : >> { %v1909_v15 = vsel %vm1414_vm2, %v1850_v0, %v6244_v21  ;;  %v6264_v0 = vld [vmem:[%s7530_s1 + $0x18] sm:$0xff] }
 0x368   : >> { %v1820_v37 = vpop.permute.xlu1 %1819  ;;  %v2122_v13 = vsel %vm6203_vm14, %v1909_v15, 0 }
 0x369   : >> { %v1895_v41 = vsel %vm1414_vm2, %v1818_v60, %v1820_v37  ;;  %2990 = vmatpush.bf16.msrb.mxu0 %v2122_v13  ;;  %v6275_v13 = vpop.f32.mrf.mxu0 }
 0x36a   : >> { %2811 = vmatmul.bf16.gmra.mxu0 %v6221_v14  ;;  %v2106_v48 = vsel %vm6131_vm9, %v1895_v41, 0  ;;  %7870 = vst [vmem:[#allocation101_spill] sm:$0xff] %v6275_v13 }
 0x36b   : >> { %2894 = vmatpush.bf16.msrb.mxu2 %v2106_v48  ;;  %v6289_v13 = vpop.f32.mrf.mxu3 }
 0x36c   : >> { %v6281_v27 = vpop.f32.mrf.mxu2  ;;  %7873 = vst [vmem:[#allocation104_spill] sm:$0xff] %v6289_v13 }
 0x36d   : >> { %7871 = vst [vmem:[#allocation102_spill] sm:$0xff] %v6281_v27 }
 0x36e   : >> { %v6266_v8 = vpop.permute.xlu2 %1821  ;;  %2767 = vmatmul.bf16.gmra.mxu3 %v6264_v0  ;;  %v6269_v60 = vpop.permute.xlu0 %1837 }
 0x36f   : >> { %v1896_v56 = vsel %vm1414_vm2, %v1820_v37, %v6266_v8  ;;  %v1903_v15 = vsel %vm1414_vm2, %v1836_v54, %v6269_v60  ;;  %v6285_v37 = vpop.f32.mrf.mxu1 }
 0x370   : >> { %v1804_v41 = vpop.permute.xlu1 %1803  ;;  %v2107_v38 = vsel %vm6139_vm10, %v1896_v56, 0  ;;  %v2115_v48 = vsel %vm6203_vm14, %v1903_v15, 0  ;;  %7872 = vst [vmem:[#allocation103_spill] sm:$0xff] %v6285_v37 }
 0x371   : >> { %v1888_v62 = vsel %vm1414_vm2, %v5930_v34, %v1804_v41  ;;  %2943 = vmatpush.bf16.msrb.mxu3 %v2107_v38  ;;  %2991 = vmatpush.bf16.msrb.mxu0 %v2115_v48 }
 0x372   : >> { %v2098_v54 = vsel %vm6143_vm12, %v1888_v62, 0  ;;  %v6300_v62 = vpop.f32.mrf.mxu0  ;;  %2690 = vmatmul.bf16.gmra.mxu2 %v5648_v43 }
 0x373   : >> { %2846 = vmatpush.bf16.msrb.mxu1 %v2098_v54  ;;  %7875 = vst [vmem:[#allocation106_spill] sm:$0xff] %v6300_v62  ;;  %v6311_v54 = vpop.f32.mrf.mxu3  ;;  %v4053_v62 = vld [vmem:[%s7530_s1 + $0x60] sm:$0xff] }
 0x374   : >> { %v6298_v48 = vpop.f32.mrf.mxu2  ;;  %7877 = vst [vmem:[#allocation108_spill] sm:$0xff] %v6311_v54 }
 0x375   : >> { %2621 = vmatmul.bf16.gmra.mxu1 %v5664_v19  ;;  %7874 = vst [vmem:[#allocation105_spill] sm:$0xff] %v6298_v48  ;;  %v6306_v19 = vld [vmem:[%s7530_s1 + $0x20] sm:$0xff]  ;;  %v2156_v48 = vsel %vm2152_vm5, 65537, %v7769_v18 }
 0x376   : >> { %v1806_v56 = vpop.permute.xlu2 %1805  ;;  %v1808_v26 = vpop.permute.xlu0 %1807  ;;  %v2160_v39 = vperm.slane %v2156_v48, 0 }
 0x377   : >> { %v1889_v15 = vsel %vm1414_vm2, %v1804_v41, %v1806_v56  ;;  %v1890_v22 = vsel %vm1414_vm2, %v1806_v56, %v1808_v26  ;;  %v6309_v41 = vpop.f32.mrf.mxu1 }
 0x378   : >> { %v2099_v34 = vsel %vm6131_vm9, %v1889_v15, 0  ;;  %v2100_v38 = vsel %vm6139_vm10, %v1890_v22, 0  ;;  %7876 = vst [vmem:[#allocation107_spill] sm:$0xff] %v6309_v41  ;;  %v2167_v2 = vunpack.c.l.b16 %v2160_v39  ;;  %v2168_v37 = vunpack.c.h.b16 %v2160_v39 }
 0x379   : >> { %2895 = vmatpush.bf16.msrb.mxu2 %v2099_v34  ;;  %2944 = vmatpush.bf16.msrb.mxu3 %v2100_v38 }
 0x37a   : >> { %2816 = vmatmul.bf16.gmra.mxu0 %v6264_v0  ;;  %v6323_v54 = vpop.f32.mrf.mxu0  ;;  %vm2171_vm5 = vcmp.ne.s32.totalorder %v2167_v2, %v4730_v35  ;;  %vm2172_vm1 = vcmp.ne.s32.totalorder %v2168_v37, %v4733_v30 }
 0x37b   : >> { %7879 = vst [vmem:[#allocation110_spill] sm:$0xff] %v6323_v54  ;;  %v6330_v12 = vpop.f32.mrf.mxu3 }
 0x37c   : >> { %v6321_v43 = vpop.f32.mrf.mxu2  ;;  %7881 = vst [vmem:[#allocation112_spill] sm:$0xff] %v6330_v12 }
 0x37d   : >> { %7878 = vst [vmem:[#allocation109_spill] sm:$0xff] %v6321_v43 }
 0x37e   : >> { %v1790_v22 = vpop.permute.xlu2 %1789  ;;  %2772 = vmatmul.bf16.gmra.mxu3 %v6306_v19  ;;  %v1792_v56 = vpop.permute.xlu0 %1791 }
 0x37f   : >> { %v1882_v15 = vsel %vm1414_vm2, %v6037_v57, %v1790_v22  ;;  %v1883_v34 = vsel %vm1414_vm2, %v1790_v22, %v1792_v56  ;;  %v6328_v57 = vpop.f32.mrf.mxu1 }
 0x380   : >> { %v2091_v38 = vsel %vm6143_vm12, %v1882_v15, 0  ;;  %v2092_v13 = vsel %vm6131_vm9, %v1883_v34, 0  ;;  %7880 = vst [vmem:[#allocation111_spill] sm:$0xff] %v6328_v57  ;;  %v2025_v57 = vperm.slane %v2018_v45, 0 }
 0x381   : >> { %2847 = vmatpush.bf16.msrb.mxu1 %v2091_v38  ;;  %2896 = vmatpush.bf16.msrb.mxu2 %v2092_v13 }
 0x382   : >> { %v6346_v54 = vpop.f32.mrf.mxu0  ;;  %v2069_v45 = vunpack.c.h.b16 %v2025_v57 }
 0x383   : >> { %7883 = vst [vmem:[#allocation114_spill] sm:$0xff] %v6346_v54  ;;  %v6362_v54 = vpop.f32.mrf.mxu3 }
 0x384   : >> { %v6336_v34 = vpop.f32.mrf.mxu2  ;;  %7885 = vst [vmem:[#allocation116_spill] sm:$0xff] %v6362_v54  ;;  %vm2073_vm4 = vcmp.ne.s32.totalorder %v2069_v45, %v4733_v30 }
 0x385   : >> { %2626 = vmatmul.bf16.gmra.mxu1 %v4053_v62  ;;  %7882 = vst [vmem:[#allocation113_spill] sm:$0xff] %v6336_v34  ;;  %v6342_v62 = vld [vmem:[%s7530_s1 + $0x28] sm:$0xff] }
 0x386   : >> { %v6344_v38 = vpop.permute.xlu2 %1809 }
 0x387   : >> { %v1776_v22 = vpop.permute.xlu0 %1775  ;;  %v1891_v59 = vsel %vm1414_vm2, %v1808_v26, %v6344_v38  ;;  %v2161_v26 = vperm.slane %v2156_v48, 4 }
 0x388   : >> { %v1876_v15 = vsel %vm1414_vm2, %v6104_v23, %v1776_v22 }
 0x389   : >> { %v2084_v13 = vsel %vm6143_vm12, %v1876_v15, 0  ;;  %v6353_v15 = vpop.f32.mrf.mxu1 }
 0x38a   : >> { %2848 = vmatpush.bf16.msrb.mxu1 %v2084_v13  ;;  %2821 = vmatmul.bf16.gmra.mxu0 %v6306_v19  ;;  %7884 = vst [vmem:[#allocation115_spill] sm:$0xff] %v6353_v15 }
 0x38c   : >> { %v6364_v43 = vpop.f32.mrf.mxu2 }
 0x38d   : >> { %7886 = vst [vmem:[#allocation117_spill] sm:$0xff] %v6364_v43  ;;  %v6377_v43 = vpop.f32.mrf.mxu0 }
 0x38e   : >> { %2777 = vmatmul.bf16.gmra.mxu3 %v6342_v62  ;;  %v6370_v27 = vpop.permute.xlu2 %1779  ;;  %7888 = vst [vmem:[#allocation118_spill] sm:$0xff] %v6377_v43  ;;  %v2175_v43 = vunpack.c.h.b16 %v2161_v26 }
 0x38f   : >> { %v6351_v23 = vpop.permute.xlu1 %1823  ;;  %v6358_v12 = vpop.permute.xlu0 %1795 }
 0x390   : >> { %v1897_v13 = vsel %vm1414_vm2, %v6266_v8, %v6351_v23  ;;  %v4054_v8 = vld [vmem:[%s7530_s1 + $0x68] sm:$0xff]  ;;  %vm2179_vm6 = vcmp.ne.s32.totalorder %v2175_v43, %v4733_v30 }
 0x391   : >> { %v2108_v34 = vsel %vm6203_vm14, %v1897_v13, 0  ;;  %v2101_v13 = vsel %vm6203_vm14, %v1891_v59, 0  ;;  %v6387_v59 = vpop.f32.mrf.mxu1 }
 0x392   : >> { %2992 = vmatpush.bf16.msrb.mxu0 %v2108_v34  ;;  %7889 = vst [vmem:[#allocation119_spill] sm:$0xff] %v6387_v59 }
 0x395   : >> { %2631 = vmatmul.bf16.gmra.mxu1 %v4054_v8  ;;  %v6413_v41 = vpop.f32.mrf.mxu0 }
 0x396   : >> { %2993 = vmatpush.bf16.msrb.mxu0 %v2101_v13  ;;  %v1764_v59 = vpop.permute.xlu2 %1763  ;;  %7892 = vst [vmem:[#allocation122_spill] sm:$0xff] %v6413_v41 }
 0x397   : >> { %v1794_v54 = vpop.permute.xlu1 %1793  ;;  %v6389_v13 = vpop.permute.xlu0 %1765 }
 0x398   : >> { %v1884_v34 = vsel %vm1414_vm2, %v1792_v56, %v1794_v54  ;;  %v1885_v17 = vsel %vm1414_vm2, %v1794_v54, %v6358_v12  ;;  %v6394_v56 = vld [vmem:[%s7530_s1 + $0x30] sm:$0xff]  ;;  %v6396_v54 = vpop.f32.mrf.mxu2  ;;  %v1872_v53 = vsel %vm1414_vm2, %v1764_v59, %v6389_v13 }
 0x399   : >> { %v2093_v15 = vsel %vm6139_vm10, %v1884_v34, 0  ;;  %v2094_v8 = vsel %vm6203_vm14, %v1885_v17, 0  ;;  %7890 = vst [vmem:[#allocation120_spill] sm:$0xff] %v6396_v54  ;;  %v6399_v34 = vpop.f32.mrf.mxu3  ;;  %v2174_v17 = vunpack.c.l.b16 %v2161_v26  ;;  %v2068_v26 = vunpack.c.l.b16 %v2025_v57  ;;  %v6425_v57 = vpop.f32.mrf.mxu1 }
 0x39a   : >> { %2945 = vmatpush.bf16.msrb.mxu3 %v2093_v15  ;;  %2994 = vmatpush.bf16.msrb.mxu0 %v2094_v8  ;;  %7891 = vst [vmem:[#allocation121_spill] sm:$0xff] %v6399_v34  ;;  %v2079_v43 = vsel %vm6139_vm10, %v1872_v53, 0 }
 0x39b   : >> { %2826 = vmatmul.bf16.gmra.mxu0 %v6342_v62  ;;  %vm2178_vm0 = vcmp.ne.s32.totalorder %v2174_v17, %v4730_v35  ;;  %7895 = vst [vmem:[#allocation123_spill] sm:$0xff] %v6425_v57  ;;  %vm2072_vm3 = vcmp.ne.s32.totalorder %v2068_v26, %v4730_v35  ;;  %v6441_v17 = vsel %vm2153_vm11, 65537, %v7769_v18 }
 0x39c   : >> { %vm6421_vm13 = vmpackc.low %vm2179_vm6, %vm2178_vm0  ;;  %v2162_v53 = vperm.slane %v6441_v17, 0 }
 0x39d   : >> { %vm6446_vm15 = vmpackc.low %vm2073_vm4, %vm2072_vm3 }
 0x39e   : >> { %2782 = vmatmul.bf16.gmra.mxu3 %v6394_v56 }
 0x39f   : >> { %v1778_v15 = vpop.permute.xlu1 %1777  ;;  %v1868_v39 = vpop.permute.xlu0 %1867 }
 0x3a0   : >> { %v1877_v8 = vsel %vm1414_vm2, %v1776_v22, %v1778_v15  ;;  %v1878_v34 = vsel %vm1414_vm2, %v1778_v15, %v6370_v27  ;;  %v6429_v22 = vpop.f32.mrf.mxu2  ;;  %v7898_v15 = vld [vmem:[#allocation16_spill] sm:$0xff]  ;;  %v1916_v36 = vsel %vm1414_vm2, %v6209_v46, %v1868_v39  ;;  %v7904_v39 = vld [vmem:[#allocation22_spill] sm:$0xff] }
 0x3a1   : >> { %v2085_v48 = vsel %vm6131_vm9, %v1877_v8, 0  ;;  %v2086_v54 = vsel %vm6139_vm10, %v1878_v34, 0  ;;  %7896 = vst [vmem:[#allocation124_spill] sm:$0xff] %v6429_v22  ;;  %v6436_v34 = vpop.f32.mrf.mxu3  ;;  %v2266_v8 = vsel %vm6421_vm13, %v7898_v15, 0  ;;  %vm6455_vm10 = vmpackc.low %vm2172_vm1, %vm2171_vm5  ;;  %v2130_v46 = vsel %vm6446_vm15, %v1916_v36, 0  ;;  %v6478_v15 = vpop.f32.mrf.mxu0 }
 0x3a2   : >> { %2897 = vmatpush.bf16.msrb.mxu2 %v2085_v48  ;;  %2946 = vmatpush.bf16.msrb.mxu3 %v2086_v54  ;;  %v4055_v54 = vld [vmem:[%s7530_s1 + $0x70] sm:$0xff]  ;;  %7897 = vst [vmem:[#allocation125_spill] sm:$0xff] %v6436_v34  ;;  %v2259_v51 = vsel %vm6421_vm13, %v7904_v39, 0  ;;  %v2182_v36 = vunpack.c.h.b16 %v2162_v53 }
 0x3a3   : >> { %7905 = vst [vmem:[#allocation16_spill] sm:$0xff] %v6478_v15 }
 0x3a4   : >> { %vm2186_vm6 = vcmp.ne.s32.totalorder %v2182_v36, %v4733_v30 }
 0x3a5   : >> { %2636 = vmatmul.bf16.gmra.mxu1 %v4055_v54 }
 0x3a6   : >> { %2947 = vmatpush.bf16.msrb.mxu3 %v2079_v43 }
 0x3a7   : >> { %v1762_v45 = vpop.permute.xlu1 %1761 }
 0x3a8   : >> { %v1870_v2 = vsel %vm1414_vm2, %v6110_v9, %v1762_v45  ;;  %v1871_v37 = vsel %vm1414_vm2, %v1762_v45, %v1764_v59  ;;  %v6469_v9 = vld [vmem:[%s7530_s1 + $0x38] sm:$0xff]  ;;  %v7903_v59 = vld [vmem:[#allocation19_spill] sm:$0xff]  ;;  %v6480_v45 = vpop.permute.xlu2 %1767 }
 0x3a9   : >> { %v2077_v54 = vsel %vm6143_vm12, %v1870_v2, 0  ;;  %v2078_v43 = vsel %vm6131_vm9, %v1871_v37, 0  ;;  %v2265_v55 = vsel %vm6455_vm10, %v7903_v59, 0  ;;  %v6484_v2 = vpop.f32.mrf.mxu1  ;;  %v6486_v37 = vpop.f32.mrf.mxu2  ;;  %v7909_v59 = vld [vmem:[#allocation18_spill] sm:$0xff]  ;;  %vm2135_vm9 = vcmp.le.s32.totalorder %v7829_v61, 26 }
 0x3aa   : >> { %3201 = vmatpush.bf16.msra.mxu3 %v2266_v8  ;;  %2849 = vmatpush.bf16.msrb.mxu1 %v2077_v54  ;;  %v2181_v8 = vunpack.c.l.b16 %v2162_v53  ;;  %7906 = vst [vmem:[#allocation19_spill] sm:$0xff] %v6484_v2  ;;  %v2252_v53 = vsel %vm6421_vm13, %v7909_v59, 0  ;;  %vm2136_vm12 = vcmp.le.s32.totalorder %v7830_v16, 26  ;;  %v7911_v16 = vld [vmem:[#allocation25_spill] sm:$0xff] }
 0x3ab   : >> { %2898 = vmatpush.bf16.msrb.mxu2 %v2078_v43  ;;  %2831 = vmatmul.bf16.gmra.mxu0 %v6394_v56  ;;  %7907 = vst [vmem:[#allocation22_spill] sm:$0xff] %v6486_v37  ;;  %v7908_v43 = vld [vmem:[#allocation23_spill] sm:$0xff]  ;;  %vm2154_vm7 = vmpackc.low %vm2136_vm12, %vm2135_vm9  ;;  %v2251_v61 = vsel %vm6455_vm10, %v7911_v16, 0  ;;  %v7915_v59 = vld [vmem:[#allocation13_spill] sm:$0xff] }
 0x3ac   : >> { %vm2185_vm0 = vcmp.ne.s32.totalorder %v2181_v8, %v4730_v35  ;;  %v7917_v16 = vld [vmem:[#allocation36_spill] sm:$0xff] }
 0x3ad   : >> { %vm6516_vm8 = vmpackc.low %vm2186_vm6, %vm2185_vm0 }
 0x3ae   : >> { %3038 = vmatpush.bf16.msra.mxu1 %v2130_v46  ;;  %3202 = vmatpush.bf16.msra.mxu3 %v2259_v51  ;;  %v2258_v46 = vsel %vm6455_vm10, %v7908_v43, 0  ;;  %v1873_v43 = vsel %vm1414_vm2, %v6389_v13, %v6480_v45  ;;  %v4056_v13 = vld [vmem:[%s7530_s1 + $0x78] sm:$0xff] }
 0x3af   : >> { %3152 = vmatpush.bf16.msra.mxu2 %v2265_v55  ;;  %2787 = vmatmul.bf16.gmra.mxu3 %v6469_v9  ;;  %v6488_v54 = vpop.permute.xlu1 %1781  ;;  %v6496_v55 = vpop.f32.mrf.mxu3  ;;  %v2080_v36 = vsel %vm6203_vm14, %v1873_v43, 0 }
 0x3b0   : >> { %2899 = vmatmul.bf16.vlgmr.msrb.gmra.mxu2 %v6073_v50  ;;  %7910 = vst [vmem:[#allocation23_spill] sm:$0xff] %v6496_v55  ;;  %v1879_v39 = vsel %vm1414_vm2, %v6370_v27, %v6488_v54  ;;  %v7912_v27 = vld [vmem:[#allocation21_spill] sm:$0xff]  ;;  %v7918_v55 = vld [vmem:[#allocation24_spill] sm:$0xff] }
 0x3b1   : >> { %v2087_v51 = vsel %vm6203_vm14, %v1879_v39, 0  ;;  %v6528_v39 = vpop.f32.mrf.mxu0  ;;  %v2244_v63 = vsel %vm6455_vm10, %v7918_v55, 0  ;;  %vm2137_vm14 = vcmp.le.s32.totalorder %v7887_v25, 26 }
 0x3b2   : >> { %3203 = vmatpush.bf16.msra.mxu3 %v2252_v53  ;;  %2995 = vmatpush.bf16.msrb.mxu0 %v2087_v51  ;;  %v2238_v53 = vsel %vm6421_vm13, %v7915_v59, 0  ;;  %7916 = vst [vmem:[#allocation18_spill] sm:$0xff] %v6528_v39  ;;  %v2158_v51 = vsel %vm2154_vm7, 65537, %v7769_v18  ;;  %v7922_v39 = vld [vmem:[#allocation12_spill] sm:$0xff]  ;;  %vm2155_vm4 = vmpackc.low %vm2137_vm14, %vm2137_vm14 }
 0x3b3   : >> { %3153 = vmatpush.bf16.msra.mxu2 %v2258_v46  ;;  %v2245_v46 = vsel %vm6421_vm13, %v7912_v27, 0  ;;  %v1840_v27 = vpop.permute.xlu2 %1839  ;;  %v2165_v59 = vperm.slane %v2158_v51, 4  ;;  %v2237_v55 = vsel %vm6455_vm10, %v7922_v39, 0 }
 0x3b5   : >> { %2641 = vmatmul.bf16.gmra.mxu1 %v4056_v13  ;;  %v6539_v13 = vpop.f32.mrf.mxu1  ;;  %v2202_v15 = vunpack.c.l.b16 %v2165_v59 }
 0x3b6   : >> { %3204 = vmatpush.bf16.msra.mxu3 %v2245_v46  ;;  %2996 = vmatpush.bf16.msrb.mxu0 %v2080_v36  ;;  %7919 = vst [vmem:[#allocation25_spill] sm:$0xff] %v6539_v13  ;;  %v6541_v36 = vpop.f32.mrf.mxu2 }
 0x3b7   : >> { %3154 = vmatpush.bf16.msra.mxu2 %v2251_v61  ;;  %v2267_v61 = vsel %vm6516_vm8, %v7917_v16, 0  ;;  %v1854_v46 = vpop.permute.xlu1 %1853  ;;  %7920 = vst [vmem:[#allocation21_spill] sm:$0xff] %v6541_v36  ;;  %v6543_v34 = vpop.f32.mrf.mxu3  ;;  %vm2206_vm11 = vcmp.ne.s32.totalorder %v2202_v15, %v4730_v35 }
 0x3b8   : >> { %v1910_v43 = vsel %vm1414_vm2, %v6244_v21, %v1854_v46  ;;  %7921 = vst [vmem:[#allocation13_spill] sm:$0xff] %v6543_v34  ;;  %v2164_v46 = vperm.slane %v2158_v51, 0  ;;  %v7924_v34 = vld [vmem:[#allocation38_spill] sm:$0xff]  ;;  %v7926_v51 = vld [vmem:[#allocation29_spill] sm:$0xff] }
 0x3b9   : >> { %v2123_v16 = vsel %vm6446_vm15, %v1910_v43, 0  ;;  %v2260_v43 = vsel %vm6516_vm8, %v7924_v34, 0 }
 0x3ba   : >> { %3250 = vmatpush.bf16.msra.mxu0 %v2267_v61  ;;  %3205 = vmatpush.bf16.msra.mxu3 %v2238_v53  ;;  %v7923_v61 = vld [vmem:[#allocation26_spill] sm:$0xff]  ;;  %v1904_v53 = vsel %vm1414_vm2, %v6269_v60, %v1840_v27  ;;  %v2224_v27 = vsel %vm6421_vm13, %v7926_v51, 0  ;;  %v2195_v34 = vunpack.c.l.b16 %v2164_v46 }
 0x3bb   : >> { %3155 = vmatpush.bf16.msra.mxu2 %v2244_v63  ;;  %v2231_v21 = vsel %vm6421_vm13, %v7923_v61, 0  ;;  %3039 = vmatpush.bf16.msra.mxu1 %v2123_v16  ;;  %v1826_v63 = vpop.permute.xlu0 %1825  ;;  %v2116_v39 = vsel %vm6446_vm15, %v1904_v53, 0  ;;  %v7925_v61 = vld [vmem:[#allocation27_spill] sm:$0xff]  ;;  %v2203_v16 = vunpack.c.h.b16 %v2165_v59 }
 0x3bc   : >> { %2836 = vmatmul.bf16.gmra.mxu0 %v6469_v9  ;;  %v2230_v60 = vsel %vm6455_vm10, %v7925_v61, 0  ;;  %v7928_v61 = vld [vmem:[#allocation42_spill] sm:$0xff]  ;;  %vm2199_vm5 = vcmp.ne.s32.totalorder %v2195_v34, %v4730_v35  ;;  %v7936_v34 = vld [vmem:[#allocation41_spill] sm:$0xff] }
 0x3bd   : >> { %v2253_v51 = vsel %vm6516_vm8, %v7928_v61, 0  ;;  %vm2207_vm3 = vcmp.ne.s32.totalorder %v2203_v16, %v4733_v30  ;;  %v2246_v16 = vsel %vm6516_vm8, %v7933_v42, 0 }
 0x3be   : >> { %3206 = vmatpush.bf16.msra.mxu3 %v2231_v21  ;;  %3251 = vmatpush.bf16.msra.mxu0 %v2260_v43  ;;  %v2196_v21 = vunpack.c.h.b16 %v2164_v46  ;;  %v6572_v43 = vpop.f32.mrf.mxu0  ;;  %v7929_v46 = vld [vmem:[#allocation28_spill] sm:$0xff] }
 0x3bf   : >> { %3156 = vmatpush.bf16.msra.mxu2 %v2237_v55  ;;  %v1898_v55 = vsel %vm1414_vm2, %v6351_v23, %v1826_v63  ;;  %3040 = vmatpush.bf16.msra.mxu1 %v2116_v39  ;;  %v1812_v53 = vpop.permute.xlu1 %1811  ;;  %7927 = vst [vmem:[#allocation36_spill] sm:$0xff] %v6572_v43  ;;  %v2223_v63 = vsel %vm6455_vm10, %v7929_v46, 0  ;;  %v7930_v39 = vld [vmem:[#allocation33_spill] sm:$0xff]  ;;  %v7937_v46 = vld [vmem:[#allocation31_spill] sm:$0xff] }
 0x3c0   : >> { %2904 = vmatmul.bf16.gmra.mxu2 %v6162_v32  ;;  %2948 = vmatmul.bf16.vlgmr.msrb.gmra.mxu3 %v6073_v50  ;;  %v2109_v59 = vsel %vm6446_vm15, %v1898_v55, 0  ;;  %vm2200_vm1 = vcmp.ne.s32.totalorder %v2196_v21, %v4733_v30  ;;  %v6595_v55 = vpop.f32.mrf.mxu2  ;;  %v2216_v15 = vsel %vm6455_vm10, %v7937_v46, 0  ;;  %v7945_v43 = vld [vmem:[#allocation39_spill] sm:$0xff] }
 0x3c1   : >> { %v6578_v23 = vpop.f32.mrf.mxu3  ;;  %7932 = vst [vmem:[#allocation12_spill] sm:$0xff] %v6595_v55  ;;  %vm6616_vm9 = vmpackc.low %vm2200_vm1, %vm2199_vm5 }
 0x3c2   : >> { %3207 = vmatpush.bf16.msra.mxu3 %v2224_v27  ;;  %3252 = vmatpush.bf16.msra.mxu0 %v2253_v51  ;;  %v1892_v27 = vsel %vm1414_vm2, %v6344_v38, %v1812_v53  ;;  %v6591_v61 = vpop.f32.mrf.mxu1  ;;  %v1798_v51 = vpop.permute.xlu2 %1797  ;;  %v2159_v53 = vsel %vm2155_vm4, 65537, %v7769_v18  ;;  %v2163_v18 = vperm.slane %v6441_v17, 4  ;;  %v7942_v17 = vld [vmem:[#allocation45_spill] sm:$0xff] }
 0x3c3   : >> { %3157 = vmatpush.bf16.msra.mxu2 %v2230_v60  ;;  %v2217_v60 = vsel %vm6421_vm13, %v7930_v39, 0  ;;  %7931 = vst [vmem:[#allocation24_spill] sm:$0xff] %v6591_v61  ;;  %3041 = vmatpush.bf16.msra.mxu1 %v2109_v59  ;;  %vm6602_vm13 = vmpackc.low %vm2207_vm3, %vm2206_vm11  ;;  %v2102_v59 = vsel %vm6446_vm15, %v1892_v27, 0  ;;  %v1886_v39 = vsel %vm1414_vm2, %v6358_v12, %v1798_v51  ;;  %v1784_v48 = vpop.permute.xlu0 %1783 }
 0x3c4   : >> { %v2270_v21 = vsel %vm6602_vm13, %v7936_v34, 0  ;;  %v7941_v34 = vld [vmem:[#allocation35_spill] sm:$0xff]  ;;  %v2263_v12 = vsel %vm6602_vm13, %v7942_v17, 0 }
 0x3c5   : >> { %2850 = vmatmul.bf16.vlgmr.msrb.gmra.mxu1 %v6073_v50  ;;  %v2269_v46 = vsel %vm6616_vm9, %v7941_v34, 0  ;;  %v1880_v34 = vsel %vm1414_vm2, %v6488_v54, %v1784_v48  ;;  %v7948_v54 = vld [vmem:[#allocation71_spill] sm:$0xff] }
 0x3c6   : >> { %3208 = vmatpush.bf16.msra.mxu3 %v2217_v60  ;;  %3253 = vmatpush.bf16.msra.mxu0 %v2246_v16  ;;  %v7940_v60 = vld [vmem:[#allocation55_spill] sm:$0xff]  ;;  %v2166_v16 = vperm.slane %v2159_v53, 0 }
 0x3c7   : >> { %3158 = vmatpush.bf16.msra.mxu2 %v2223_v63  ;;  %3042 = vmatpush.bf16.msra.mxu1 %v2102_v59  ;;  %v2239_v42 = vsel %vm6516_vm8, %v7940_v60, 0  ;;  %v6626_v27 = vpop.f32.mrf.mxu0  ;;  %v2188_v59 = vunpack.c.l.b16 %v2163_v18  ;;  %v2189_v60 = vunpack.c.h.b16 %v2163_v18  ;;  %v1770_v25 = vpop.permute.xlu1 %1769  ;;  %v2262_v18 = vsel %vm6616_vm9, %v7945_v43, 0  ;;  %v8046_v63 = vld [vmem:[#allocation77_spill] sm:$0xff] }
 0x3c8   : >> { %v2210_v17 = vunpack.c.h.b16 %v2166_v16  ;;  %v2225_v43 = vsel %vm6516_vm8, %v7948_v54, 0 }
 0x3c9   : >> { %v6634_v51 = vpop.f32.mrf.mxu3  ;;  %vm2192_vm10 = vcmp.ne.s32.totalorder %v2188_v59, %v4730_v35  ;;  %vm2193_vm12 = vcmp.ne.s32.totalorder %v2189_v60, %v4733_v30  ;;  %v7949_v59 = vld [vmem:[#allocation43_spill] sm:$0xff] }
 0x3ca   : >> { %3397 = vmatpush.bf16.msrb.mxu3 %v2270_v21  ;;  %3254 = vmatpush.bf16.msra.mxu0 %v2239_v42  ;;  %v2095_v21 = vsel %vm6446_vm15, %v1886_v39, 0  ;;  %v6638_v53 = vpop.f32.mrf.mxu1  ;;  %v6649_v39 = vpop.f32.mrf.mxu2  ;;  %vm2214_vm6 = vcmp.ne.s32.totalorder %v2210_v17, %v4733_v30  ;;  %v2255_v60 = vsel %vm6616_vm9, %v7949_v59, 0  ;;  %vm6672_vm7 = vmpackc.low %vm2193_vm12, %vm2192_vm10 }
 0x3cb   : >> { %3159 = vmatpush.bf16.msra.mxu2 %v2216_v15  ;;  %7943 = vst [vmem:[#allocation26_spill] sm:$0xff] %v6638_v53  ;;  %3043 = vmatpush.bf16.msra.mxu1 %v2095_v21  ;;  %v7944_v15 = vld [vmem:[#allocation62_spill] sm:$0xff] }
 0x3cc   : >> { %v2232_v42 = vsel %vm6516_vm8, %v7944_v15, 0  ;;  %2997 = vmatmul.bf16.vlgmr.msrb.gmra.mxu0 %v6073_v50  ;;  %7946 = vst [vmem:[#allocation38_spill] sm:$0xff] %v6649_v39  ;;  %v2088_v50 = vsel %vm6446_vm15, %v1880_v34, 0  ;;  %v7954_v34 = vld [vmem:[#allocation79_spill] sm:$0xff] }
 0x3ce   : >> { %3398 = vmatpush.bf16.msrb.mxu3 %v2263_v12  ;;  %3255 = vmatpush.bf16.msra.mxu0 %v2232_v42  ;;  %v7947_v12 = vld [vmem:[#allocation50_spill] sm:$0xff] }
 0x3cf   : >> { %3348 = vmatpush.bf16.msrb.mxu2 %v2269_v46  ;;  %v2209_v46 = vunpack.c.l.b16 %v2166_v16  ;;  %v2256_v21 = vsel %vm6602_vm13, %v7947_v12, 0  ;;  %v1874_v16 = vsel %vm1414_vm2, %v6480_v45, %v1770_v25  ;;  %3044 = vmatpush.bf16.msra.mxu1 %v2088_v50  ;;  %v6665_v48 = vpop.f32.mrf.mxu0  ;;  %v7952_v25 = vld [vmem:[#allocation63_spill] sm:$0xff]  ;;  %v7959_v50 = vld [vmem:[#allocation14_spill] sm:$0xff] }
 0x3d0   : >> { %2909 = vmatmul.bf16.gmra.mxu2 %v6221_v14  ;;  %2953 = vmatmul.bf16.gmra.mxu3 %v6162_v32  ;;  %v2249_v45 = vsel %vm6602_vm13, %v7952_v25, 0  ;;  %v2081_v30 = vsel %vm6446_vm15, %v1874_v16, 0  ;;  %vm3615_vm15 = vcmask 130048  }
 0x3d1   : >> { %vm2213_vm0 = vcmp.ne.s32.totalorder %v2209_v46, %v4730_v35  ;;  %v6679_v42 = vpop.f32.mrf.mxu3  ;;  %v2218_v46 = vsel %vm6516_vm8, %v7954_v34, 0  ;;  %v7964_v34 = vld [vmem:[#allocation44_spill] sm:$0xff] }
 0x3d2   : >> { %3399 = vmatpush.bf16.msrb.mxu3 %v2256_v21  ;;  %3256 = vmatpush.bf16.msra.mxu0 %v2225_v43  ;;  %v6681_v35 = vpop.f32.mrf.mxu1  ;;  %vm6688_vm2 = vmpackc.low %vm2214_vm6, %vm2213_vm0  ;;  %v7958_v21 = vld [vmem:[#allocation49_spill] sm:$0xff]  ;;  %v6702_v54 = vpop.f32.mrf.mxu2 }
 0x3d3   : >> { %3349 = vmatpush.bf16.msrb.mxu2 %v2262_v18  ;;  %7953 = vst [vmem:[#allocation27_spill] sm:$0xff] %v6681_v35  ;;  %3045 = vmatpush.bf16.msra.mxu1 %v2081_v30  ;;  %v7957_v18 = vld [vmem:[#allocation34_spill] sm:$0xff]  ;;  %v2248_v26 = vsel %vm6616_vm9, %v7958_v21, 0  ;;  %v2271_v8 = vsel %vm6688_vm2, %v7959_v50, 0  ;;  %v7961_v43 = vld [vmem:[#allocation37_spill] sm:$0xff]  ;;  %v7966_v21 = vld [vmem:[#allocation48_spill] sm:$0xff] }
 0x3d4   : >> { %v2268_v12 = vsel %vm6672_vm7, %v7957_v18, 0  ;;  %7960 = vst [vmem:[#allocation29_spill] sm:$0xff] %v6702_v54  ;;  %v2261_v16 = vsel %vm6672_vm7, %v7961_v43, 0  ;;  %v7965_v18 = vld [vmem:[#allocation15_spill] sm:$0xff]  ;;  %v7968_v43 = vld [vmem:[#allocation20_spill] sm:$0xff]  ;;  %v2236_v38 = vsel %vm6688_vm2, %v4605_v49, 0 }
 0x3d5   : >> { %2855 = vmatmul.bf16.gmra.mxu1 %v6162_v32 }
 0x3d6   : >> { %3400 = vmatpush.bf16.msrb.mxu3 %v2249_v45  ;;  %3257 = vmatpush.bf16.msra.mxu0 %v2218_v46  ;;  %v2254_v46 = vsel %vm6672_vm7, %v7964_v34, 0 }
 0x3d7   : >> { %3350 = vmatpush.bf16.msrb.mxu2 %v2255_v60  ;;  %3299 = vmatpush.bf16.msrb.mxu1 %v2268_v12  ;;  %v6707_v59 = vpop.f32.mrf.mxu0  ;;  %v7962_v60 = vld [vmem:[#allocation17_spill] sm:$0xff]  ;;  %v2257_v12 = vsel %vm6688_vm2, %v7965_v18, 0 }
 0x3d8   : >> { %v2264_v25 = vsel %vm6688_vm2, %v7962_v60, 0 }
 0x3d9   : >> { %v6712_v45 = vpop.f32.mrf.mxu3 }
 0x3da   : >> { %3446 = vmatpush.bf16.msrb.mxu0 %v2271_v8  ;;  %v6714_v30 = vpop.f32.mrf.mxu1  ;;  %v6730_v8 = vpop.f32.mrf.mxu2 }
 0x3db   : >> { %3351 = vmatpush.bf16.msrb.mxu2 %v2248_v26  ;;  %3300 = vmatpush.bf16.msrb.mxu1 %v2261_v16  ;;  %7963 = vst [vmem:[#allocation42_spill] sm:$0xff] %v6714_v30  ;;  %v2247_v26 = vsel %vm6672_vm7, %v7966_v21, 0  ;;  %v2250_v16 = vsel %vm6688_vm2, %v7968_v43, 0 }
 0x3dc   : >> { %3002 = vmatmul.bf16.gmra.mxu0 %v6162_v32  ;;  %7967 = vst [vmem:[#allocation28_spill] sm:$0xff] %v6730_v8 }
 0x3de   : >> { %3447 = vmatpush.bf16.msrb.mxu0 %v2264_v25 }
 0x3df   : >> { %3301 = vmatpush.bf16.msrb.mxu1 %v2254_v46  ;;  %v6728_v50 = vpop.f32.mrf.mxu0 }
 0x3e0   : >> { %2914 = vmatmul.bf16.gmra.mxu2 %v6264_v0  ;;  %2958 = vmatmul.bf16.gmra.mxu3 %v6221_v14 }
 0x3e1   : >> { %v6735_v60 = vpop.f32.mrf.mxu3 }
 0x3e2   : >> { %3448 = vmatpush.bf16.msrb.mxu0 %v2257_v12  ;;  %v6737_v25 = vpop.f32.mrf.mxu1  ;;  %v6746_v12 = vpop.f32.mrf.mxu2 }
 0x3e3   : >> { %3302 = vmatpush.bf16.msrb.mxu1 %v2247_v26  ;;  %7969 = vst [vmem:[#allocation33_spill] sm:$0xff] %v6737_v25 }
 0x3e4   : >> { %7971 = vst [vmem:[#allocation41_spill] sm:$0xff] %v6746_v12 }
 0x3e5   : >> { %2860 = vmatmul.bf16.gmra.mxu1 %v6221_v14 }
 0x3e6   : >> { %3449 = vmatpush.bf16.msrb.mxu0 %v2250_v16 }
 0x3e7   : >> { %v6740_v34 = vpop.f32.mrf.mxu0 }
 0x3e9   : >> { %v6742_v46 = vpop.f32.mrf.mxu3 }
 0x3ea   : >> { %v6744_v18 = vpop.f32.mrf.mxu1  ;;  %v6757_v16 = vpop.f32.mrf.mxu2 }
 0x3eb   : >> { %7970 = vst [vmem:[#allocation46_spill] sm:$0xff] %v6744_v18 }
 0x3ec   : >> { %3007 = vmatmul.bf16.gmra.mxu0 %v6221_v14  ;;  %7973 = vst [vmem:[#allocation55_spill] sm:$0xff] %v6757_v16 }
 0x3ef   : >> { %v6751_v21 = vpop.f32.mrf.mxu0 }
 0x3f0   : >> { %2919 = vmatmul.bf16.gmra.mxu2 %v6306_v19  ;;  %2963 = vmatmul.bf16.gmra.mxu3 %v6264_v0 }
 0x3f1   : >> { %v6753_v26 = vpop.f32.mrf.mxu3 }
 0x3f2   : >> { %v6755_v43 = vpop.f32.mrf.mxu1  ;;  %v6768_v54 = vpop.f32.mrf.mxu2 }
 0x3f3   : >> { %7972 = vst [vmem:[#allocation31_spill] sm:$0xff] %v6755_v43 }
 0x3f4   : >> { %7975 = vst [vmem:[#allocation45_spill] sm:$0xff] %v6768_v54 }
 0x3f5   : >> { %2865 = vmatmul.bf16.gmra.mxu1 %v6264_v0 }
 0x3f7   : >> { %v6760_v41 = vpop.f32.mrf.mxu0 }
 0x3f9   : >> { %v6762_v8 = vpop.f32.mrf.mxu3 }
 0x3fa   : >> { %v6764_v12 = vpop.f32.mrf.mxu1  ;;  %v6780_v18 = vpop.f32.mrf.mxu2 }
 0x3fb   : >> { %7974 = vst [vmem:[#allocation35_spill] sm:$0xff] %v6764_v12 }
 0x3fc   : >> { %3012 = vmatmul.bf16.gmra.mxu0 %v6264_v0  ;;  %7979 = vst [vmem:[#allocation71_spill] sm:$0xff] %v6780_v18 }
 0x3ff   : >> { %v6771_v39 = vpop.f32.mrf.mxu0 }
 0x400   : >> { %2924 = vmatmul.bf16.gmra.mxu2 %v6342_v62  ;;  %2968 = vmatmul.bf16.gmra.mxu3 %v6306_v19  ;;  %7976 = vst [vmem:[#allocation62_spill] sm:$0xff] %v6771_v39 }
 0x401   : >> { %v6773_v43 = vpop.f32.mrf.mxu3 }
 0x402   : >> { %v6775_v16 = vpop.f32.mrf.mxu1  ;;  %v6795_v37 = vpop.f32.mrf.mxu2 }
 0x403   : >> { %7977 = vst [vmem:[#allocation39_spill] sm:$0xff] %v6775_v16 }
 0x404   : >> { %7985 = vst [vmem:[#allocation14_spill] sm:$0xff] %v6795_v37 }
 0x405   : >> { %2870 = vmatmul.bf16.gmra.mxu1 %v6306_v19 }
 0x407   : >> { %v6778_v55 = vpop.f32.mrf.mxu0 }
 0x408   : >> { %7978 = vst [vmem:[#allocation50_spill] sm:$0xff] %v6778_v55 }
 0x409   : >> { %v6782_v12 = vpop.f32.mrf.mxu3 }
 0x40a   : >> { %7980 = vst [vmem:[#allocation43_spill] sm:$0xff] %v6782_v12  ;;  %v6784_v36 = vpop.f32.mrf.mxu1  ;;  %v6805_v22 = vpop.f32.mrf.mxu2  ;;  %v8036_v12 = vld [vmem:[#allocation76_spill] sm:$0xff] }
 0x40b   : >> { %7981 = vst [vmem:[#allocation63_spill] sm:$0xff] %v6784_v36 }
 0x40c   : >> { %3017 = vmatmul.bf16.gmra.mxu0 %v6306_v19  ;;  %7989 = vst [vmem:[#allocation15_spill] sm:$0xff] %v6805_v22  ;;  %v6827_v22 = vld [vmem:[%s7530_s1 + $0x80] sm:$0xff] }
 0x40f   : >> { %v6789_v54 = vpop.f32.mrf.mxu0 }
 0x410   : >> { %2929 = vmatmul.bf16.gmra.mxu2 %v6394_v56  ;;  %2973 = vmatmul.bf16.gmra.mxu3 %v6342_v62  ;;  %7982 = vst [vmem:[#allocation79_spill] sm:$0xff] %v6789_v54 }
 0x411   : >> { %v6791_v25 = vpop.f32.mrf.mxu3 }
 0x412   : >> { %7983 = vst [vmem:[#allocation34_spill] sm:$0xff] %v6791_v25  ;;  %v6793_v16 = vpop.f32.mrf.mxu1  ;;  %v6816_v53 = vpop.f32.mrf.mxu2 }
 0x413   : >> { %7984 = vst [vmem:[#allocation49_spill] sm:$0xff] %v6793_v16 }
 0x414   : >> { %7993 = vst [vmem:[#allocation127_spill] sm:$0xff] %v6816_v53 }
 0x415   : >> { %2875 = vmatmul.bf16.gmra.mxu1 %v6342_v62 }
 0x418   : >> { %v6798_v18 = vpop.f32.mrf.mxu0 }
 0x419   : >> { %7986 = vst [vmem:[#allocation37_spill] sm:$0xff] %v6798_v18  ;;  %v6800_v30 = vpop.f32.mrf.mxu3 }
 0x41a   : >> { %7987 = vst [vmem:[#allocation17_spill] sm:$0xff] %v6800_v30  ;;  %v6802_v36 = vpop.f32.mrf.mxu1 }
 0x41b   : >> { %7988 = vst [vmem:[#allocation44_spill] sm:$0xff] %v6802_v36 }
 0x41c   : >> { %3022 = vmatmul.bf16.gmra.mxu0 %v6342_v62 }
 0x420   : >> { %2934 = vmatmul.bf16.gmra.mxu2 %v6469_v9  ;;  %2978 = vmatmul.bf16.gmra.mxu3 %v6394_v56  ;;  %v6809_v35 = vpop.f32.mrf.mxu0 }
 0x421   : >> { %7990 = vst [vmem:[#allocation48_spill] sm:$0xff] %v6809_v35  ;;  %v6811_v16 = vpop.f32.mrf.mxu3 }
 0x422   : >> { %7991 = vst [vmem:[#allocation20_spill] sm:$0xff] %v6811_v16  ;;  %v6813_v37 = vpop.f32.mrf.mxu1 }
 0x423   : >> { %7992 = vst [vmem:[#allocation126_spill] sm:$0xff] %v6813_v37 }
 0x425   : >> { %2880 = vmatmul.bf16.gmra.mxu1 %v6394_v56 }
 0x428   : >> { %v6818_v61 = vpop.f32.mrf.mxu0 }
 0x429   : >> { %7994 = vst [vmem:[#allocation128_spill] sm:$0xff] %v6818_v61  ;;  %v6820_v36 = vpop.f32.mrf.mxu3 }
 0x42a   : >> { %7995 = vst [vmem:[#allocation129_spill] sm:$0xff] %v6820_v36  ;;  %v6822_v13 = vpop.f32.mrf.mxu1 }
 0x42b   : >> { %7996 = vst [vmem:[#allocation130_spill] sm:$0xff] %v6822_v13 }
 0x42c   : >> { %3027 = vmatmul.bf16.gmra.mxu0 %v6394_v56 }
 0x430   : >> { %3160 = vmatmul.bf16.vlgmr.msra.gmra.mxu2 %v6827_v22  ;;  %2983 = vmatmul.bf16.gmra.mxu3 %v6469_v9  ;;  %v6832_v37 = vpop.f32.mrf.mxu0 }
 0x431   : >> { %7997 = vst [vmem:[#allocation131_spill] sm:$0xff] %v6832_v37  ;;  %v6852_v37 = vld [vmem:[%s7530_s1 + $0x88] sm:$0xff] }
 0x432   : >> { %v6836_v2 = vpop.f32.mrf.mxu3  ;;  %v6838_v57 = vpop.f32.mrf.mxu1 }
 0x433   : >> { %v6834_v53 = vpop.f32.mrf.mxu2  ;;  %7999 = vst [vmem:[#allocation133_spill] sm:$0xff] %v6836_v2 }
 0x434   : >> { %7998 = vst [vmem:[#allocation132_spill] sm:$0xff] %v6834_v53 }
 0x435   : >> { %8000 = vst [vmem:[#allocation134_spill] sm:$0xff] %v6838_v57  ;;  %2885 = vmatmul.bf16.gmra.mxu1 %v6469_v9 }
 0x439   : >> { %v6841_v13 = vpop.f32.mrf.mxu0 }
 0x43a   : >> { %8001 = vst [vmem:[#allocation135_spill] sm:$0xff] %v6841_v13  ;;  %v6845_v35 = vpop.f32.mrf.mxu3  ;;  %v6847_v36 = vpop.f32.mrf.mxu1 }
 0x43b   : >> { %v6843_v61 = vpop.f32.mrf.mxu2  ;;  %8003 = vst [vmem:[#allocation137_spill] sm:$0xff] %v6845_v35 }
 0x43c   : >> { %8002 = vst [vmem:[#allocation136_spill] sm:$0xff] %v6843_v61  ;;  %3032 = vmatmul.bf16.gmra.mxu0 %v6469_v9 }
 0x43d   : >> { %8004 = vst [vmem:[#allocation138_spill] sm:$0xff] %v6847_v36  ;;  %v4057_v36 = vld [vmem:[%s7530_s1] sm:$0xff] }
 0x440   : >> { %3165 = vmatmul.bf16.gmra.mxu2 %v6852_v37  ;;  %3209 = vmatmul.bf16.vlgmr.msra.gmra.mxu3 %v6827_v22 }
 0x441   : >> { %v6857_v57 = vpop.f32.mrf.mxu0 }
 0x442   : >> { %8005 = vst [vmem:[#allocation139_spill] sm:$0xff] %v6857_v57  ;;  %v6863_v13 = vpop.f32.mrf.mxu1 }
 0x443   : >> { %v6859_v53 = vpop.f32.mrf.mxu2  ;;  %v6861_v61 = vpop.f32.mrf.mxu3 }
 0x444   : >> { %8006 = vst [vmem:[#allocation140_spill] sm:$0xff] %v6859_v53  ;;  %v6879_v53 = vld [vmem:[%s7530_s1 + $0x90] sm:$0xff] }
 0x445   : >> { %8007 = vst [vmem:[#allocation141_spill] sm:$0xff] %v6861_v61  ;;  %3046 = vmatmul.bf16.vlgmr.msra.gmra.mxu1 %v4057_v36 }
 0x449   : >> { %v6870_v2 = vpop.f32.mrf.mxu0 }
 0x44a   : >> { %8009 = vst [vmem:[#allocation143_spill] sm:$0xff] %v6870_v2  ;;  %v6874_v16 = vpop.f32.mrf.mxu1 }
 0x44b   : >> { %v6868_v35 = vpop.f32.mrf.mxu2  ;;  %v6872_v18 = vpop.f32.mrf.mxu3 }
 0x44c   : >> { %8008 = vst [vmem:[#allocation142_spill] sm:$0xff] %v6868_v35  ;;  %3258 = vmatmul.bf16.vlgmr.msra.gmra.mxu0 %v6827_v22 }
 0x44d   : >> { %8010 = vst [vmem:[#allocation144_spill] sm:$0xff] %v6872_v18 }
 0x450   : >> { %3170 = vmatmul.bf16.gmra.mxu2 %v6879_v53  ;;  %3214 = vmatmul.bf16.gmra.mxu3 %v6852_v37 }
 0x451   : >> { %v6884_v36 = vpop.f32.mrf.mxu0 }
 0x452   : >> { %8011 = vst [vmem:[#allocation145_spill] sm:$0xff] %v6884_v36  ;;  %v6888_v2 = vpop.f32.mrf.mxu1  ;;  %v6904_v36 = vld [vmem:[%s7530_s1 + $0x98] sm:$0xff] }
 0x453   : >> { %v6886_v35 = vpop.f32.mrf.mxu2  ;;  %v6890_v57 = vpop.f32.mrf.mxu3 }
 0x454   : >> { %8012 = vst [vmem:[#allocation146_spill] sm:$0xff] %v6886_v35 }
 0x455   : >> { %8013 = vst [vmem:[#allocation147_spill] sm:$0xff] %v6890_v57  ;;  %3051 = vmatmul.bf16.gmra.mxu1 %v6162_v32 }
 0x459   : >> { %v6893_v18 = vpop.f32.mrf.mxu0 }
 0x45a   : >> { %8014 = vst [vmem:[#allocation148_spill] sm:$0xff] %v6893_v18  ;;  %v6897_v54 = vpop.f32.mrf.mxu1 }
 0x45b   : >> { %v6895_v61 = vpop.f32.mrf.mxu2  ;;  %v6899_v30 = vpop.f32.mrf.mxu3 }
 0x45c   : >> { %8015 = vst [vmem:[#allocation149_spill] sm:$0xff] %v6895_v61  ;;  %3263 = vmatmul.bf16.gmra.mxu0 %v6852_v37 }
 0x45d   : >> { %8016 = vst [vmem:[#allocation150_spill] sm:$0xff] %v6899_v30 }
 0x460   : >> { %3175 = vmatmul.bf16.gmra.mxu2 %v6904_v36  ;;  %3219 = vmatmul.bf16.gmra.mxu3 %v6879_v53 }
 0x461   : >> { %v6909_v32 = vpop.f32.mrf.mxu0 }
 0x462   : >> { %8017 = vst [vmem:[#allocation151_spill] sm:$0xff] %v6909_v32  ;;  %v6913_v61 = vpop.f32.mrf.mxu1  ;;  %v6929_v32 = vld [vmem:[%s7530_s1 + $0xa0] sm:$0xff] }
 0x463   : >> { %v6911_v35 = vpop.f32.mrf.mxu2  ;;  %v6915_v18 = vpop.f32.mrf.mxu3 }
 0x464   : >> { %8018 = vst [vmem:[#allocation152_spill] sm:$0xff] %v6911_v35 }
 0x465   : >> { %8019 = vst [vmem:[#allocation153_spill] sm:$0xff] %v6915_v18  ;;  %3056 = vmatmul.bf16.gmra.mxu1 %v6221_v14 }
 0x469   : >> { %v6918_v30 = vpop.f32.mrf.mxu0 }
 0x46a   : >> { %8020 = vst [vmem:[#allocation154_spill] sm:$0xff] %v6918_v30  ;;  %v6922_v55 = vpop.f32.mrf.mxu1 }
 0x46b   : >> { %v6920_v57 = vpop.f32.mrf.mxu2  ;;  %v6924_v25 = vpop.f32.mrf.mxu3 }
 0x46c   : >> { %8021 = vst [vmem:[#allocation155_spill] sm:$0xff] %v6920_v57  ;;  %3268 = vmatmul.bf16.gmra.mxu0 %v6879_v53 }
 0x46d   : >> { %8022 = vst [vmem:[#allocation156_spill] sm:$0xff] %v6924_v25 }
 0x470   : >> { %3180 = vmatmul.bf16.gmra.mxu2 %v6929_v32  ;;  %3224 = vmatmul.bf16.gmra.mxu3 %v6904_v36 }
 0x471   : >> { %v6934_v14 = vpop.f32.mrf.mxu0 }
 0x472   : >> { %8023 = vst [vmem:[#allocation157_spill] sm:$0xff] %v6934_v14  ;;  %v6938_v57 = vpop.f32.mrf.mxu1  ;;  %v6954_v14 = vld [vmem:[%s7530_s1 + $0xa8] sm:$0xff] }
 0x473   : >> { %v6936_v35 = vpop.f32.mrf.mxu2  ;;  %v6940_v30 = vpop.f32.mrf.mxu3 }
 0x474   : >> { %8024 = vst [vmem:[#allocation158_spill] sm:$0xff] %v6936_v35  ;;  %v8030_v35 = vld [vmem:[#allocation56_spill] sm:$0xff] }
 0x475   : >> { %8025 = vst [vmem:[#allocation159_spill] sm:$0xff] %v6940_v30  ;;  %3061 = vmatmul.bf16.gmra.mxu1 %v6264_v0  ;;  %v2241_v0 = vsel %vm6616_vm9, %v8030_v35, 0  ;;  %v2227_v35 = vsel %vm6616_vm9, %v8036_v12, 0 }
 0x476   : >> { %3352 = vmatpush.bf16.msrb.mxu2 %v2241_v0 }
 0x479   : >> { %v6943_v25 = vpop.f32.mrf.mxu0 }
 0x47a   : >> { %8026 = vst [vmem:[#allocation160_spill] sm:$0xff] %v6943_v25  ;;  %v6947_v29 = vpop.f32.mrf.mxu1 }
 0x47b   : >> { %v6945_v18 = vpop.f32.mrf.mxu2  ;;  %8028 = vst [vmem:[#allocation162_spill] sm:$0xff] %v6947_v29  ;;  %v6949_v39 = vpop.f32.mrf.mxu3  ;;  %v8035_v29 = vld [vmem:[#allocation64_spill] sm:$0xff] }
 0x47c   : >> { %8027 = vst [vmem:[#allocation161_spill] sm:$0xff] %v6945_v18  ;;  %3273 = vmatmul.bf16.gmra.mxu0 %v6904_v36  ;;  %v2234_v6 = vsel %vm6616_vm9, %v8035_v29, 0  ;;  %v6988_v29 = vld [vmem:[%s7530_s1 + $0xb0] sm:$0xff] }
 0x47d   : >> { %8029 = vst [vmem:[#allocation163_spill] sm:$0xff] %v6949_v39  ;;  %3353 = vmatpush.bf16.msrb.mxu2 %v2234_v6  ;;  %v8040_v6 = vld [vmem:[#allocation80_spill] sm:$0xff] }
 0x480   : >> { %3185 = vmatmul.bf16.gmra.mxu2 %v6954_v14  ;;  %3229 = vmatmul.bf16.gmra.mxu3 %v6929_v32 }
 0x481   : >> { %v6962_v18 = vpop.f32.mrf.mxu0  ;;  %3354 = vmatpush.bf16.msrb.mxu2 %v2227_v35 }
 0x482   : >> { %8031 = vst [vmem:[#allocation56_spill] sm:$0xff] %v6962_v18  ;;  %v6966_v39 = vpop.f32.mrf.mxu1 }
 0x483   : >> { %v6964_v25 = vpop.f32.mrf.mxu2  ;;  %8033 = vst [vmem:[#allocation165_spill] sm:$0xff] %v6966_v39  ;;  %v6968_v30 = vpop.f32.mrf.mxu3 }
 0x484   : >> { %8032 = vst [vmem:[#allocation164_spill] sm:$0xff] %v6964_v25 }
 0x485   : >> { %8034 = vst [vmem:[#allocation166_spill] sm:$0xff] %v6968_v30  ;;  %3066 = vmatmul.bf16.gmra.mxu1 %v6306_v19  ;;  %v2220_v19 = vsel %vm6616_vm9, %v8040_v6, 0  ;;  %v2235_v6 = vsel %vm6602_vm13, %v8046_v63, 0  ;;  %v7028_v63 = vld [vmem:[%s7530_s1 + $0xb8] sm:$0xff] }
 0x486   : >> { %3355 = vmatpush.bf16.msrb.mxu2 %v2220_v19  ;;  %v8047_v19 = vld [vmem:[#allocation53_spill] sm:$0xff] }
 0x489   : >> { %v6977_v0 = vpop.f32.mrf.mxu0 }
 0x48a   : >> { %8037 = vst [vmem:[#allocation64_spill] sm:$0xff] %v6977_v0  ;;  %v6981_v25 = vpop.f32.mrf.mxu1 }
 0x48b   : >> { %v6979_v18 = vpop.f32.mrf.mxu2  ;;  %v6983_v39 = vpop.f32.mrf.mxu3 }
 0x48c   : >> { %8038 = vst [vmem:[#allocation76_spill] sm:$0xff] %v6979_v18  ;;  %3278 = vmatmul.bf16.gmra.mxu0 %v6929_v32  ;;  %v8043_v18 = vld [vmem:[#allocation70_spill] sm:$0xff] }
 0x48d   : >> { %8039 = vst [vmem:[#allocation167_spill] sm:$0xff] %v6983_v39  ;;  %v2242_v0 = vsel %vm6602_vm13, %v8043_v18, 0 }
 0x48e   : >> { %3401 = vmatpush.bf16.msrb.mxu3 %v2242_v0 }
 0x490   : >> { %3190 = vmatmul.bf16.gmra.mxu2 %v6988_v29  ;;  %3234 = vmatmul.bf16.gmra.mxu3 %v6954_v14 }
 0x491   : >> { %v6996_v12 = vpop.f32.mrf.mxu0 }
 0x492   : >> { %8041 = vst [vmem:[#allocation80_spill] sm:$0xff] %v6996_v12  ;;  %v7003_v39 = vpop.f32.mrf.mxu1  ;;  %v2240_v12 = vsel %vm6672_vm7, %v8047_v19, 0  ;;  %3402 = vmatpush.bf16.msrb.mxu3 %v2235_v6  ;;  %v8052_v6 = vld [vmem:[#allocation66_spill] sm:$0xff] }
 0x493   : >> { %v6998_v35 = vpop.f32.mrf.mxu2  ;;  %8044 = vst [vmem:[#allocation70_spill] sm:$0xff] %v7003_v39  ;;  %v7005_v30 = vpop.f32.mrf.mxu3  ;;  %3303 = vmatpush.bf16.msrb.mxu1 %v2240_v12  ;;  %v8050_v39 = vld [vmem:[#allocation81_spill] sm:$0xff]  ;;  %v2233_v12 = vsel %vm6672_vm7, %v8052_v6, 0  ;;  %v8053_v19 = vld [vmem:[#allocation82_spill] sm:$0xff] }
 0x494   : >> { %8042 = vst [vmem:[#allocation168_spill] sm:$0xff] %v6998_v35  ;;  %v2228_v0 = vsel %vm6602_vm13, %v8050_v39, 0  ;;  %v2221_v39 = vsel %vm6602_vm13, %v8053_v19, 0 }
 0x495   : >> { %8045 = vst [vmem:[#allocation169_spill] sm:$0xff] %v7005_v30  ;;  %3071 = vmatmul.bf16.gmra.mxu1 %v6342_v62 }
 0x496   : >> { %3403 = vmatpush.bf16.msrb.mxu3 %v2228_v0 }
 0x497   : >> { %3304 = vmatpush.bf16.msrb.mxu1 %v2233_v12 }
 0x499   : >> { %v7014_v35 = vpop.f32.mrf.mxu0 }
 0x49a   : >> { %8048 = vst [vmem:[#allocation77_spill] sm:$0xff] %v7014_v35  ;;  %v7021_v30 = vpop.f32.mrf.mxu1  ;;  %v8054_v35 = vld [vmem:[#allocation72_spill] sm:$0xff]  ;;  %3404 = vmatpush.bf16.msrb.mxu3 %v2221_v39  ;;  %v2222_v39 = vsel %vm6688_vm2, %v7753_v58, 0 }
 0x49b   : >> { %v7016_v18 = vpop.f32.mrf.mxu2  ;;  %v7023_v62 = vpop.f32.mrf.mxu3 }
 0x49c   : >> { %8049 = vst [vmem:[#allocation53_spill] sm:$0xff] %v7016_v18  ;;  %3283 = vmatmul.bf16.gmra.mxu0 %v6954_v14  ;;  %v2243_v18 = vsel %vm6688_vm2, %v4503_v40, 0 }
 0x49d   : >> { %8051 = vst [vmem:[#allocation81_spill] sm:$0xff] %v7023_v62  ;;  %v2226_v62 = vsel %vm6672_vm7, %v8054_v35, 0  ;;  %3450 = vmatpush.bf16.msrb.mxu0 %v2243_v18  ;;  %v8056_v35 = vld [vmem:[#allocation78_spill] sm:$0xff] }
 0x49e   : >> { %3305 = vmatpush.bf16.msrb.mxu1 %v2226_v62  ;;  %v2219_v18 = vsel %vm6672_vm7, %v8056_v35, 0  ;;  %v2229_v62 = vsel %vm6688_vm2, %v7746_v20, 0  ;;  %v2754_v20 = vadd.f32 %v6578_v23, %v5892_v52 }
 0x4a0   : >> { %3195 = vmatmul.bf16.gmra.mxu2 %v7028_v63  ;;  %3239 = vmatmul.bf16.gmra.mxu3 %v6988_v29 }
 0x4a1   : >> { %v7045_v0 = vpop.f32.mrf.mxu0  ;;  %3451 = vmatpush.bf16.msrb.mxu0 %v2236_v38 }
 0x4a2   : >> { %v7052_v40 = vpop.f32.mrf.mxu1  ;;  %3306 = vmatpush.bf16.msrb.mxu1 %v2219_v18 }
 0x4a3   : >> { %v7047_v6 = vpop.f32.mrf.mxu2  ;;  %v7054_v12 = vpop.f32.mrf.mxu3 }
 0x4a4   : >> { %8055 = vst [vmem:[#allocation66_spill] sm:$0xff] %v7047_v6 }
 0x4a5   : >> { %3076 = vmatmul.bf16.gmra.mxu1 %v6394_v56  ;;  %3452 = vmatpush.bf16.msrb.mxu0 %v2229_v62  ;;  %v2756_v62 = vadd.f32 %v6634_v51, %v5921_v3  ;;  %v2759_v3 = vadd.f32 %v6679_v42, %v5949_v44  ;;  %v2803_v51 = vadd.f32 %v6626_v27, %v5991_v5 }
 0x4a6   : >> { %v2852_v44 = vadd.f32 %v6863_v13, %v5926_v1  ;;  %v2761_v42 = vadd.f32 %v6712_v45, %v5985_v24  ;;  %v2805_v27 = vadd.f32 %v6665_v48, %v6025_v4  ;;  %v2854_v1 = vadd.f32 %v6874_v16, %v5952_v11  ;;  %v8058_v11 = vld [vmem:[#allocation75_spill] sm:$0xff] }
 0x4a7   : >> { %v2764_v4 = vadd.f32 %v6735_v60, %v5877_v7  ;;  %v2808_v13 = vadd.f32 %v6707_v59, %v6057_v33  ;;  %v2857_v7 = vadd.f32 %v6888_v2, %v5983_v10  ;;  %v2766_v33 = vadd.f32 %v6742_v46, %v8058_v11  ;;  %v8059_v60 = vld [vmem:[#allocation51_spill] sm:$0xff] }
 0x4a8   : >> { %v2810_v16 = vadd.f32 %v6728_v50, %v8059_v60  ;;  %v8060_v10 = vld [vmem:[#allocation83_spill] sm:$0xff]  ;;  %v8061_v50 = vld [vmem:[#allocation93_spill] sm:$0xff] }
 0x4a9   : >> { %v7063_v49 = vpop.f32.mrf.mxu0  ;;  %3453 = vmatpush.bf16.msrb.mxu0 %v2222_v39  ;;  %v2859_v2 = vadd.f32 %v6897_v54, %v8060_v10  ;;  %v2769_v46 = vadd.f32 %v6753_v26, %v8061_v50  ;;  %v8062_v54 = vld [vmem:[#allocation59_spill] sm:$0xff] }
 0x4aa   : >> { %v7070_v15 = vpop.f32.mrf.mxu1  ;;  %v2862_v26 = vadd.f32 %v6913_v61, %v8062_v54  ;;  %v8064_v61 = vld [vmem:[#allocation60_spill] sm:$0xff] }
 0x4ab   : >> { %v7065_v19 = vpop.f32.mrf.mxu2  ;;  %v7072_v38 = vpop.f32.mrf.mxu3 }
 0x4ac   : >> { %8057 = vst [vmem:[#allocation82_spill] sm:$0xff] %v7065_v19  ;;  %3288 = vmatmul.bf16.gmra.mxu0 %v6988_v29 }
 0x4b0   : >> { %3356 = vmatmul.bf16.vlgmr.msrb.gmra.mxu2 %v6827_v22  ;;  %3244 = vmatmul.bf16.gmra.mxu3 %v7028_v63 }
 0x4b1   : >> { %v7079_v56 = vpop.f32.mrf.mxu0 }
 0x4b2   : >> { %v7086_v17 = vpop.f32.mrf.mxu1 }
 0x4b3   : >> { %v3161_v35 = vpop.f32.mrf.mxu2  ;;  %v7088_v18 = vpop.f32.mrf.mxu3 }
 0x4b4   : >> { %v3495_v58 = vadd.f32 %v3161_v35, %v2754_v20 }
 0x4b5   : >> { %3081 = vmatmul.bf16.gmra.mxu1 %v6469_v9 }
 0x4b6   : >> { %3609 = vst [vmem:[%s7084_s3] sm:$0xff] %v3495_v58 }
 0x4b9   : >> { %v7094_v52 = vpop.f32.mrf.mxu0 }
 0x4ba   : >> { %v7096_v19 = vpop.f32.mrf.mxu1 }
 0x4bb   : >> { %v3163_v23 = vpop.f32.mrf.mxu2  ;;  %v7098_v6 = vpop.f32.mrf.mxu3 }
 0x4bc   : >> { %v3502_v39 = vadd.f32 %v3163_v23, %v2756_v62  ;;  %3293 = vmatmul.bf16.gmra.mxu0 %v7028_v63 }
 0x4be   : >> { %3617 = vst [vmem:[%s7084_s3 + $0x38] sm:$0xff] %v3502_v39 }
 0x4c0   : >> { %3361 = vmatmul.bf16.gmra.mxu2 %v6852_v37  ;;  %3405 = vmatmul.bf16.vlgmr.msrb.gmra.mxu3 %v6827_v22 }
 0x4c1   : >> { %v7106_v9 = vpop.f32.mrf.mxu0 }
 0x4c2   : >> { %v7110_v58 = vpop.f32.mrf.mxu1 }
 0x4c3   : >> { %v3166_v20 = vpop.f32.mrf.mxu2  ;;  %v3210_v62 = vpop.f32.mrf.mxu3 }
 0x4c4   : >> { %v3509_v35 = vadd.f32 %v3166_v20, %v2759_v3  ;;  %v3496_v23 = vadd.f32 %v3210_v62, %v2803_v51 }
 0x4c5   : >> { %3307 = vmatmul.bf16.vlgmr.msrb.gmra.mxu1 %v6827_v22 }
 0x4c6   : >> { %3624 = vst [vmem:[%s7084_s3 + $0x70] sm:$0xff] %v3509_v35 }
 0x4c7   : >> { %3610 = vst [vmem:[%s7084_s3 + $0x8] sm:$0xff] %v3496_v23 }
 0x4c9   : >> { %v3259_v5 = vpop.f32.mrf.mxu0 }
 0x4ca   : >> { %v3497_v3 = vadd.f32 %v3259_v5, %v2852_v44  ;;  %v7121_v51 = vpop.f32.mrf.mxu1 }
 0x4cb   : >> { %v3168_v39 = vpop.f32.mrf.mxu2  ;;  %v3212_v35 = vpop.f32.mrf.mxu3 }
 0x4cc   : >> { %v3516_v20 = vadd.f32 %v3168_v39, %v2761_v42  ;;  %3611 = vst [vmem:[%s7084_s3 + $0x10] sm:$0xff] %v3497_v3  ;;  %v3503_v62 = vadd.f32 %v3212_v35, %v2805_v27  ;;  %3454 = vmatmul.bf16.vlgmr.msrb.gmra.mxu0 %v6827_v22 }
 0x4ce   : >> { %3631 = vst [vmem:[%s7084_s3 + $0xa8] sm:$0xff] %v3516_v20 }
 0x4cf   : >> { %3618 = vst [vmem:[%s7084_s3 + $0x40] sm:$0xff] %v3503_v62 }
 0x4d0   : >> { %3366 = vmatmul.bf16.gmra.mxu2 %v6879_v53  ;;  %3410 = vmatmul.bf16.gmra.mxu3 %v6852_v37 }
 0x4d1   : >> { %v3261_v24 = vpop.f32.mrf.mxu0 }
 0x4d2   : >> { %v3504_v22 = vadd.f32 %v3261_v24, %v2854_v1  ;;  %v7135_v23 = vpop.f32.mrf.mxu1  ;;  %v2813_v1 = vadd.f32 %v6740_v34, %v6150_v47 }
 0x4d3   : >> { %v3171_v48 = vpop.f32.mrf.mxu2  ;;  %v3215_v44 = vpop.f32.mrf.mxu3 }
 0x4d4   : >> { %v3523_v45 = vadd.f32 %v3171_v48, %v2764_v4  ;;  %3619 = vst [vmem:[%s7084_s3 + $0x48] sm:$0xff] %v3504_v22  ;;  %v3510_v42 = vadd.f32 %v3215_v44, %v2808_v13  ;;  %v2815_v44 = vadd.f32 %v6751_v21, %v6190_v31  ;;  %v2864_v31 = vadd.f32 %v6922_v55, %v8064_v61  ;;  %v8066_v55 = vld [vmem:[#allocation89_spill] sm:$0xff] }
 0x4d5   : >> { %3312 = vmatmul.bf16.gmra.mxu1 %v6852_v37 }
 0x4d6   : >> { %3638 = vst [vmem:[%s7084_s3 + $0xe0] sm:$0xff] %v3523_v45  ;;  %v8063_v45 = vld [vmem:[#allocation95_spill] sm:$0xff] }
 0x4d7   : >> { %3625 = vst [vmem:[%s7084_s3 + $0x78] sm:$0xff] %v3510_v42  ;;  %v2771_v47 = vadd.f32 %v6762_v8, %v8063_v45  ;;  %v8065_v8 = vld [vmem:[#allocation57_spill] sm:$0xff] }
 0x4d8   : >> { %v2774_v21 = vadd.f32 %v6773_v43, %v8065_v8  ;;  %v2867_v43 = vadd.f32 %v6938_v57, %v8066_v55  ;;  %v8071_v57 = vld [vmem:[#allocation54_spill] sm:$0xff]  ;;  %v8081_v55 = vld [vmem:[#allocation107_spill] sm:$0xff] }
 0x4d9   : >> { %v3264_v59 = vpop.f32.mrf.mxu0 }
 0x4da   : >> { %v3511_v27 = vadd.f32 %v3264_v59, %v2857_v7  ;;  %v7147_v3 = vpop.f32.mrf.mxu1 }
 0x4db   : >> { %v3173_v5 = vpop.f32.mrf.mxu2  ;;  %v3217_v20 = vpop.f32.mrf.mxu3 }
 0x4dc   : >> { %v3530_v39 = vadd.f32 %v3173_v5, %v2766_v33  ;;  %3626 = vst [vmem:[%s7084_s3 + $0x80] sm:$0xff] %v3511_v27  ;;  %v3517_v35 = vadd.f32 %v3217_v20, %v2810_v16  ;;  %3459 = vmatmul.bf16.gmra.mxu0 %v6852_v37  ;;  %v2818_v5 = vadd.f32 %v6760_v41, %v6227_v28  ;;  %v8068_v28 = vld [vmem:[#allocation43_spill] sm:$0xff] }
 0x4de   : >> { %3645 = vst [vmem:[%s7084_s3 + $0x118] sm:$0xff] %v3530_v39 }
 0x4df   : >> { %3632 = vst [vmem:[%s7084_s3 + $0xb0] sm:$0xff] %v3517_v35 }
 0x4e0   : >> { %3371 = vmatmul.bf16.gmra.mxu2 %v6904_v36  ;;  %3415 = vmatmul.bf16.gmra.mxu3 %v6879_v53 }
 0x4e1   : >> { %v3266_v62 = vpop.f32.mrf.mxu0 }
 0x4e2   : >> { %v3518_v37 = vadd.f32 %v3266_v62, %v2859_v2  ;;  %v7161_v13 = vpop.f32.mrf.mxu1  ;;  %v8067_v2 = vld [vmem:[#allocation58_spill] sm:$0xff] }
 0x4e3   : >> { %v3176_v4 = vpop.f32.mrf.mxu2  ;;  %v3220_v48 = vpop.f32.mrf.mxu3  ;;  %v2776_v41 = vadd.f32 %v8068_v28, %v8067_v2  ;;  %v8070_v62 = vld [vmem:[#allocation62_spill] sm:$0xff] }
 0x4e4   : >> { %v3537_v24 = vadd.f32 %v3176_v4, %v2769_v46  ;;  %3633 = vst [vmem:[%s7084_s3 + $0xb8] sm:$0xff] %v3518_v37  ;;  %v3524_v22 = vadd.f32 %v3220_v48, %v2813_v1  ;;  %v8069_v46 = vld [vmem:[#allocation98_spill] sm:$0xff] }
 0x4e5   : >> { %3317 = vmatmul.bf16.gmra.mxu1 %v6879_v53  ;;  %v2820_v1 = vadd.f32 %v8070_v62, %v8069_v46 }
 0x4e6   : >> { %3652 = vst [vmem:[%s7084_s3 + $0x150] sm:$0xff] %v3537_v24 }
 0x4e7   : >> { %3639 = vst [vmem:[%s7084_s3 + $0xe8] sm:$0xff] %v3524_v22 }
 0x4e9   : >> { %v3269_v34 = vpop.f32.mrf.mxu0 }
 0x4ea   : >> { %v3525_v7 = vadd.f32 %v3269_v34, %v2862_v26  ;;  %v7173_v33 = vpop.f32.mrf.mxu1  ;;  %v8072_v26 = vld [vmem:[#allocation162_spill] sm:$0xff] }
 0x4eb   : >> { %v3178_v42 = vpop.f32.mrf.mxu2  ;;  %v3222_v59 = vpop.f32.mrf.mxu3  ;;  %v2869_v45 = vadd.f32 %v8072_v26, %v8071_v57  ;;  %v8074_v34 = vld [vmem:[#allocation34_spill] sm:$0xff]  ;;  %v8086_v26 = vld [vmem:[#allocation111_spill] sm:$0xff] }
 0x4ec   : >> { %v3544_v11 = vadd.f32 %v3178_v42, %v2771_v47  ;;  %3640 = vst [vmem:[%s7084_s3 + $0xf0] sm:$0xff] %v3525_v7  ;;  %v3531_v60 = vadd.f32 %v3222_v59, %v2815_v44  ;;  %3464 = vmatmul.bf16.gmra.mxu0 %v6879_v53  ;;  %v8073_v47 = vld [vmem:[#allocation61_spill] sm:$0xff]  ;;  %v8075_v7 = vld [vmem:[#allocation103_spill] sm:$0xff] }
 0x4ed   : >> { %v2779_v44 = vadd.f32 %v8074_v34, %v8073_v47 }
 0x4ee   : >> { %3659 = vst [vmem:[%s7084_s3 + $0x188] sm:$0xff] %v3544_v11  ;;  %v8076_v11 = vld [vmem:[#allocation50_spill] sm:$0xff] }
 0x4ef   : >> { %3646 = vst [vmem:[%s7084_s3 + $0x120] sm:$0xff] %v3531_v60  ;;  %v2823_v59 = vadd.f32 %v8076_v11, %v8075_v7 }
 0x4f0   : >> { %3376 = vmatmul.bf16.gmra.mxu2 %v6929_v32  ;;  %3420 = vmatmul.bf16.gmra.mxu3 %v6904_v36 }
 0x4f1   : >> { %v3271_v16 = vpop.f32.mrf.mxu0 }
 0x4f2   : >> { %v3532_v53 = vadd.f32 %v3271_v16, %v2864_v31  ;;  %v7187_v20 = vpop.f32.mrf.mxu1  ;;  %v8077_v16 = vld [vmem:[#allocation40_spill] sm:$0xff] }
 0x4f3   : >> { %v3181_v27 = vpop.f32.mrf.mxu2  ;;  %v3225_v35 = vpop.f32.mrf.mxu3 }
 0x4f4   : >> { %v3551_v39 = vadd.f32 %v3181_v27, %v2774_v21  ;;  %3647 = vst [vmem:[%s7084_s3 + $0x128] sm:$0xff] %v3532_v53  ;;  %v3538_v10 = vadd.f32 %v3225_v35, %v2818_v5  ;;  %v8078_v5 = vld [vmem:[#allocation165_spill] sm:$0xff] }
 0x4f5   : >> { %3322 = vmatmul.bf16.gmra.mxu1 %v6904_v36  ;;  %v2872_v27 = vadd.f32 %v8078_v5, %v8077_v16  ;;  %v8079_v53 = vld [vmem:[#allocation69_spill] sm:$0xff]  ;;  %v8092_v16 = vld [vmem:[#allocation115_spill] sm:$0xff]  ;;  %v8093_v5 = vld [vmem:[#allocation48_spill] sm:$0xff] }
 0x4f6   : >> { %3666 = vst [vmem:[%s7084_s3 + $0x1c0] sm:$0xff] %v3551_v39  ;;  %v8080_v39 = vld [vmem:[#allocation17_spill] sm:$0xff] }
 0x4f7   : >> { %3653 = vst [vmem:[%s7084_s3 + $0x158] sm:$0xff] %v3538_v10  ;;  %v2781_v35 = vadd.f32 %v8080_v39, %v8079_v53 }
 0x4f9   : >> { %v3274_v50 = vpop.f32.mrf.mxu0 }
 0x4fa   : >> { %v3539_v37 = vadd.f32 %v3274_v50, %v2867_v43  ;;  %v7199_v48 = vpop.f32.mrf.mxu1  ;;  %v8082_v43 = vld [vmem:[#allocation79_spill] sm:$0xff] }
 0x4fb   : >> { %v3183_v4 = vpop.f32.mrf.mxu2  ;;  %v3227_v22 = vpop.f32.mrf.mxu3  ;;  %v2825_v2 = vadd.f32 %v8082_v43, %v8081_v55 }
 0x4fc   : >> { %v3558_v24 = vadd.f32 %v3183_v4, %v2776_v41  ;;  %3654 = vst [vmem:[%s7084_s3 + $0x160] sm:$0xff] %v3539_v37  ;;  %v3545_v54 = vadd.f32 %v3227_v22, %v2820_v1  ;;  %3469 = vmatmul.bf16.gmra.mxu0 %v6904_v36  ;;  %v8083_v4 = vld [vmem:[#allocation91_spill] sm:$0xff]  ;;  %v8085_v22 = vld [vmem:[#allocation20_spill] sm:$0xff] }
 0x4fd   : >> { %v2874_v37 = vadd.f32 %v6981_v25, %v8083_v4  ;;  %v8088_v25 = vld [vmem:[#allocation96_spill] sm:$0xff]  ;;  %v8097_v4 = vld [vmem:[#allocation119_spill] sm:$0xff] }
 0x4fe   : >> { %3673 = vst [vmem:[%s7084_s3 + $0x1f8] sm:$0xff] %v3558_v24  ;;  %v8084_v24 = vld [vmem:[#allocation65_spill] sm:$0xff] }
 0x4ff   : >> { %3660 = vst [vmem:[%s7084_s3 + $0x190] sm:$0xff] %v3545_v54  ;;  %v2784_v54 = vadd.f32 %v8085_v22, %v8084_v24 }
 0x500   : >> { %3381 = vmatmul.bf16.gmra.mxu2 %v6954_v14  ;;  %3425 = vmatmul.bf16.gmra.mxu3 %v6929_v32 }
 0x501   : >> { %v3276_v42 = vpop.f32.mrf.mxu0 }
 0x502   : >> { %v3546_v36 = vadd.f32 %v3276_v42, %v2869_v45  ;;  %v7213_v31 = vpop.f32.mrf.mxu1  ;;  %v8087_v45 = vld [vmem:[#allocation37_spill] sm:$0xff] }
 0x503   : >> { %v3186_v60 = vpop.f32.mrf.mxu2  ;;  %v3230_v8 = vpop.f32.mrf.mxu3  ;;  %v2828_v47 = vadd.f32 %v8087_v45, %v8086_v26 }
 0x504   : >> { %v3565_v61 = vadd.f32 %v3186_v60, %v2779_v44  ;;  %3661 = vst [vmem:[%s7084_s3 + $0x198] sm:$0xff] %v3546_v36  ;;  %v3552_v21 = vadd.f32 %v3230_v8, %v2823_v59  ;;  %v8089_v59 = vld [vmem:[#allocation70_spill] sm:$0xff] }
 0x505   : >> { %3327 = vmatmul.bf16.gmra.mxu1 %v6929_v32  ;;  %v2877_v60 = vadd.f32 %v8089_v59, %v8088_v25  ;;  %v8090_v36 = vld [vmem:[#allocation74_spill] sm:$0xff]  ;;  %v8103_v25 = vld [vmem:[#allocation131_spill] sm:$0xff] }
 0x506   : >> { %3680 = vst [vmem:[%s7084_s3 + $0x230] sm:$0xff] %v3565_v61  ;;  %v8091_v61 = vld [vmem:[#allocation129_spill] sm:$0xff] }
 0x507   : >> { %3667 = vst [vmem:[%s7084_s3 + $0x1c8] sm:$0xff] %v3552_v21  ;;  %v2786_v8 = vadd.f32 %v8091_v61, %v8090_v36 }
 0x509   : >> { %v3279_v10 = vpop.f32.mrf.mxu0 }
 0x50a   : >> { %v3553_v41 = vadd.f32 %v3279_v10, %v2872_v27  ;;  %v7225_v46 = vpop.f32.mrf.mxu1  ;;  %v2830_v27 = vadd.f32 %v8093_v5, %v8092_v16 }
 0x50b   : >> { %v3188_v28 = vpop.f32.mrf.mxu2  ;;  %v3232_v62 = vpop.f32.mrf.mxu3 }
 0x50c   : >> { %v3572_v50 = vadd.f32 %v3188_v28, %v2781_v35  ;;  %3668 = vst [vmem:[%s7084_s3 + $0x1d0] sm:$0xff] %v3553_v41  ;;  %v3559_v1 = vadd.f32 %v3232_v62, %v2825_v2  ;;  %3474 = vmatmul.bf16.gmra.mxu0 %v6929_v32  ;;  %v8094_v2 = vld [vmem:[#allocation99_spill] sm:$0xff]  ;;  %v8095_v41 = vld [vmem:[#allocation94_spill] sm:$0xff] }
 0x50d   : >> { %v2879_v28 = vadd.f32 %v7021_v30, %v8094_v2  ;;  %v8099_v30 = vld [vmem:[#allocation102_spill] sm:$0xff] }
 0x50e   : >> { %3687 = vst [vmem:[%s7084_s3 + $0x268] sm:$0xff] %v3572_v50  ;;  %v8096_v50 = vld [vmem:[#allocation133_spill] sm:$0xff] }
 0x50f   : >> { %3674 = vst [vmem:[%s7084_s3 + $0x200] sm:$0xff] %v3559_v1  ;;  %v2789_v62 = vadd.f32 %v8096_v50, %v8095_v41 }
 0x510   : >> { %3386 = vmatmul.bf16.gmra.mxu2 %v6988_v29  ;;  %3430 = vmatmul.bf16.gmra.mxu3 %v6954_v14 }
 0x511   : >> { %v3281_v57 = vpop.f32.mrf.mxu0 }
 0x512   : >> { %v3560_v32 = vadd.f32 %v3281_v57, %v2874_v37  ;;  %v7239_v42 = vpop.f32.mrf.mxu1  ;;  %v8098_v37 = vld [vmem:[#allocation128_spill] sm:$0xff] }
 0x513   : >> { %v3191_v34 = vpop.f32.mrf.mxu2  ;;  %v3235_v7 = vpop.f32.mrf.mxu3  ;;  %v2833_v24 = vadd.f32 %v8098_v37, %v8097_v4  ;;  %v8110_v37 = vld [vmem:[#allocation87_spill] sm:$0xff] }
 0x514   : >> { %v3579_v44 = vadd.f32 %v3191_v34, %v2784_v54  ;;  %3675 = vst [vmem:[%s7084_s3 + $0x208] sm:$0xff] %v3560_v32  ;;  %v3566_v11 = vadd.f32 %v3235_v7, %v2828_v47  ;;  %v2882_v47 = vadd.f32 %v7052_v40, %v8099_v30  ;;  %v8100_v34 = vld [vmem:[#allocation30_spill] sm:$0xff]  ;;  %v8101_v32 = vld [vmem:[#allocation137_spill] sm:$0xff] }
 0x515   : >> { %3332 = vmatmul.bf16.gmra.mxu1 %v6954_v14  ;;  %v8104_v40 = vld [vmem:[#allocation105_spill] sm:$0xff] }
 0x516   : >> { %3694 = vst [vmem:[%s7084_s3 + $0x2a0] sm:$0xff] %v3579_v44  ;;  %v2791_v44 = vadd.f32 %v8101_v32, %v8100_v34  ;;  %v2884_v5 = vadd.f32 %v7070_v15, %v8104_v40  ;;  %v8109_v15 = vld [vmem:[#allocation109_spill] sm:$0xff]  ;;  %v8119_v40 = vld [vmem:[#allocation24_spill] sm:$0xff] }
 0x517   : >> { %3681 = vst [vmem:[%s7084_s3 + $0x238] sm:$0xff] %v3566_v11  ;;  %v8102_v11 = vld [vmem:[#allocation123_spill] sm:$0xff]  ;;  %v2887_v4 = vadd.f32 %v7086_v17, %v8109_v15  ;;  %v8114_v17 = vld [vmem:[#allocation113_spill] sm:$0xff]  ;;  %v8124_v15 = vld [vmem:[#allocation84_spill] sm:$0xff] }
 0x518   : >> { %v2835_v59 = vadd.f32 %v8103_v25, %v8102_v11  ;;  %v2889_v11 = vadd.f32 %v7096_v19, %v8114_v17  ;;  %v8115_v25 = vld [vmem:[#allocation88_spill] sm:$0xff]  ;;  %v8121_v19 = vld [vmem:[#allocation117_spill] sm:$0xff] }
 0x519   : >> { %v3284_v21 = vpop.f32.mrf.mxu0  ;;  %v8129_v17 = vld [vmem:[#allocation52_spill] sm:$0xff] }
 0x51a   : >> { %v3567_v39 = vadd.f32 %v3284_v21, %v2877_v60  ;;  %v7251_v10 = vpop.f32.mrf.mxu1 }
 0x51b   : >> { %v3193_v53 = vpop.f32.mrf.mxu2  ;;  %v3237_v55 = vpop.f32.mrf.mxu3 }
 0x51c   : >> { %v3586_v35 = vadd.f32 %v3193_v53, %v2786_v8  ;;  %3682 = vst [vmem:[%s7084_s3 + $0x240] sm:$0xff] %v3567_v39  ;;  %v3573_v43 = vadd.f32 %v3237_v55, %v2830_v27  ;;  %3479 = vmatmul.bf16.gmra.mxu0 %v6954_v14  ;;  %v8105_v27 = vld [vmem:[#allocation90_spill] sm:$0xff]  ;;  %v8106_v53 = vld [vmem:[#allocation141_spill] sm:$0xff]  ;;  %v8107_v55 = vld [vmem:[#allocation19_spill] sm:$0xff] }
 0x51d   : >> { %v2950_v39 = vadd.f32 %v8106_v53, %v8105_v27 }
 0x51e   : >> { %3701 = vst [vmem:[%s7084_s3 + $0x2d8] sm:$0xff] %v3586_v35 }
 0x51f   : >> { %3688 = vst [vmem:[%s7084_s3 + $0x270] sm:$0xff] %v3573_v43  ;;  %v8108_v43 = vld [vmem:[#allocation135_spill] sm:$0xff] }
 0x520   : >> { %3391 = vmatmul.bf16.gmra.mxu2 %v7028_v63  ;;  %3435 = vmatmul.bf16.gmra.mxu3 %v6988_v29  ;;  %v2838_v2 = vadd.f32 %v8108_v43, %v8107_v55 }
 0x521   : >> { %v3286_v1 = vpop.f32.mrf.mxu0 }
 0x522   : >> { %v3574_v14 = vadd.f32 %v3286_v1, %v2879_v28  ;;  %v7265_v57 = vpop.f32.mrf.mxu1 }
 0x523   : >> { %v3196_v22 = vpop.f32.mrf.mxu2  ;;  %v3240_v26 = vpop.f32.mrf.mxu3 }
 0x524   : >> { %v3593_v54 = vadd.f32 %v3196_v22, %v2789_v62  ;;  %3689 = vst [vmem:[%s7084_s3 + $0x278] sm:$0xff] %v3574_v14  ;;  %v3580_v45 = vadd.f32 %v3240_v26, %v2833_v24  ;;  %v8111_v24 = vld [vmem:[#allocation144_spill] sm:$0xff]  ;;  %v8113_v26 = vld [vmem:[#allocation139_spill] sm:$0xff] }
 0x525   : >> { %3337 = vmatmul.bf16.gmra.mxu1 %v6988_v29  ;;  %v2952_v22 = vadd.f32 %v8111_v24, %v8110_v37  ;;  %v8126_v24 = vld [vmem:[#allocation26_spill] sm:$0xff] }
 0x526   : >> { %3708 = vst [vmem:[%s7084_s3 + $0x310] sm:$0xff] %v3593_v54  ;;  %v8112_v54 = vld [vmem:[#allocation25_spill] sm:$0xff] }
 0x527   : >> { %3695 = vst [vmem:[%s7084_s3 + $0x2a8] sm:$0xff] %v3580_v45  ;;  %v2840_v45 = vadd.f32 %v8113_v26, %v8112_v54 }
 0x529   : >> { %v3289_v7 = vpop.f32.mrf.mxu0 }
 0x52a   : >> { %v3581_v36 = vadd.f32 %v3289_v7, %v2882_v47  ;;  %v7277_v8 = vpop.f32.mrf.mxu1 }
 0x52b   : >> { %v3198_v60 = vpop.f32.mrf.mxu2  ;;  %v3242_v21 = vpop.f32.mrf.mxu3 }
 0x52c   : >> { %v3600_v61 = vadd.f32 %v3198_v60, %v2791_v44  ;;  %3696 = vst [vmem:[%s7084_s3 + $0x2b0] sm:$0xff] %v3581_v36  ;;  %v3587_v16 = vadd.f32 %v3242_v21, %v2835_v59  ;;  %3484 = vmatmul.bf16.gmra.mxu0 %v6988_v29  ;;  %v8116_v59 = vld [vmem:[#allocation147_spill] sm:$0xff]  ;;  %v8118_v21 = vld [vmem:[#allocation132_spill] sm:$0xff] }
 0x52d   : >> { %v2955_v60 = vadd.f32 %v8116_v59, %v8115_v25 }
 0x52e   : >> { %3715 = vst [vmem:[%s7084_s3 + $0x348] sm:$0xff] %v3600_v61  ;;  %v8117_v61 = vld [vmem:[#allocation85_spill] sm:$0xff] }
 0x52f   : >> { %3702 = vst [vmem:[%s7084_s3 + $0x2e0] sm:$0xff] %v3587_v16  ;;  %v2901_v16 = vadd.f32 %v8118_v21, %v8117_v61  ;;  %v8133_v21 = vld [vmem:[#allocation27_spill] sm:$0xff] }
 0x530   : >> { %3440 = vmatmul.bf16.gmra.mxu3 %v7028_v63 }
 0x531   : >> { %v3291_v35 = vpop.f32.mrf.mxu0 }
 0x532   : >> { %v3588_v28 = vadd.f32 %v3291_v35, %v2884_v5  ;;  %v7290_v62 = vpop.f32.mrf.mxu1  ;;  %v8120_v5 = vld [vmem:[#allocation143_spill] sm:$0xff] }
 0x533   : >> { %v3357_v41 = vpop.f32.mrf.mxu2  ;;  %v3245_v29 = vpop.f32.mrf.mxu3  ;;  %v2999_v27 = vadd.f32 %v8120_v5, %v8119_v40 }
 0x534   : >> { %v3499_v50 = vadd.f32 %v3357_v41, %v2950_v39  ;;  %3703 = vst [vmem:[%s7084_s3 + $0x2e8] sm:$0xff] %v3588_v28  ;;  %v3594_v1 = vadd.f32 %v3245_v29, %v2838_v2  ;;  %v3048_v28 = vadd.f32 %v7110_v58, %v8121_v19  ;;  %v8122_v41 = vld [vmem:[#allocation32_spill] sm:$0xff] }
 0x535   : >> { %3342 = vmatmul.bf16.gmra.mxu1 %v7028_v63  ;;  %v8137_v19 = vld [vmem:[#allocation156_spill] sm:$0xff] }
 0x536   : >> { %3613 = vst [vmem:[%s7084_s3 + $0x20] sm:$0xff] %v3499_v50  ;;  %v8123_v50 = vld [vmem:[#allocation150_spill] sm:$0xff] }
 0x537   : >> { %3709 = vst [vmem:[%s7084_s3 + $0x318] sm:$0xff] %v3594_v1  ;;  %v2957_v29 = vadd.f32 %v8123_v50, %v8122_v41  ;;  %v8138_v50 = vld [vmem:[#allocation68_spill] sm:$0xff] }
 0x539   : >> { %v3294_v14 = vpop.f32.mrf.mxu0 }
 0x53a   : >> { %v3595_v30 = vadd.f32 %v3294_v14, %v2887_v4  ;;  %v7302_v32 = vpop.f32.mrf.mxu1  ;;  %v8125_v4 = vld [vmem:[#allocation136_spill] sm:$0xff] }
 0x53b   : >> { %v3359_v47 = vpop.f32.mrf.mxu2  ;;  %v3247_v44 = vpop.f32.mrf.mxu3  ;;  %v2903_v37 = vadd.f32 %v8125_v4, %v8124_v15  ;;  %v8140_v15 = vld [vmem:[#allocation42_spill] sm:$0xff]  ;;  %v8141_v4 = vld [vmem:[#allocation151_spill] sm:$0xff] }
 0x53c   : >> { %v3506_v34 = vadd.f32 %v3359_v47, %v2952_v22  ;;  %3710 = vst [vmem:[%s7084_s3 + $0x320] sm:$0xff] %v3595_v30  ;;  %v3601_v7 = vadd.f32 %v3247_v44, %v2840_v45  ;;  %3489 = vmatmul.bf16.gmra.mxu0 %v7028_v63  ;;  %v8127_v22 = vld [vmem:[#allocation145_spill] sm:$0xff]  ;;  %v8128_v44 = vld [vmem:[#allocation120_spill] sm:$0xff] }
 0x53d   : >> { %v3001_v14 = vadd.f32 %v8127_v22, %v8126_v24 }
 0x53e   : >> { %3621 = vst [vmem:[%s7084_s3 + $0x58] sm:$0xff] %v3506_v34 }
 0x53f   : >> { %3716 = vst [vmem:[%s7084_s3 + $0x350] sm:$0xff] %v3601_v7  ;;  %v3050_v7 = vadd.f32 %v7121_v51, %v8128_v44 }
 0x541   : >> { %v3296_v36 = vpop.f32.mrf.mxu0 }
 0x542   : >> { %v3602_v53 = vadd.f32 %v3296_v36, %v2889_v11  ;;  %v3308_v35 = vpop.f32.mrf.mxu1  ;;  %v8130_v11 = vld [vmem:[#allocation153_spill] sm:$0xff]  ;;  %v8132_v36 = vld [vmem:[#allocation140_spill] sm:$0xff] }
 0x543   : >> { %v3362_v63 = vpop.f32.mrf.mxu2  ;;  %v3406_v55 = vpop.f32.mrf.mxu3  ;;  %v3498_v43 = vadd.f32 %v3308_v35, %v2901_v16  ;;  %v2960_v25 = vadd.f32 %v8130_v11, %v8129_v17  ;;  %v8134_v16 = vld [vmem:[#allocation148_spill] sm:$0xff]  ;;  %v8145_v17 = vld [vmem:[#allocation67_spill] sm:$0xff]  ;;  %v8146_v11 = vld [vmem:[#allocation146_spill] sm:$0xff] }
 0x544   : >> { %v3513_v39 = vadd.f32 %v3362_v63, %v2955_v60  ;;  %3717 = vst [vmem:[%s7084_s3 + $0x358] sm:$0xff] %v3602_v53  ;;  %v3500_v2 = vadd.f32 %v3406_v55, %v2999_v27  ;;  %v8131_v60 = vld [vmem:[#allocation47_spill] sm:$0xff]  ;;  %v3004_v40 = vadd.f32 %v8134_v16, %v8133_v21  ;;  %v8135_v55 = vld [vmem:[#allocation124_spill] sm:$0xff] }
 0x545   : >> { %3612 = vst [vmem:[%s7084_s3 + $0x18] sm:$0xff] %v3498_v43  ;;  %v2906_v61 = vadd.f32 %v8132_v36, %v8131_v60  ;;  %v3053_v43 = vadd.f32 %v7135_v23, %v8135_v55  ;;  %v8148_v60 = vld [vmem:[#allocation154_spill] sm:$0xff] }
 0x546   : >> { %3628 = vst [vmem:[%s7084_s3 + $0x90] sm:$0xff] %v3513_v39 }
 0x547   : >> { %3614 = vst [vmem:[%s7084_s3 + $0x28] sm:$0xff] %v3500_v2  ;;  %v8136_v2 = vld [vmem:[#allocation92_spill] sm:$0xff] }
 0x549   : >> { %v3455_v1 = vpop.f32.mrf.mxu0 }
 0x54a   : >> { %v3501_v26 = vadd.f32 %v3455_v1, %v3048_v28  ;;  %v3310_v30 = vpop.f32.mrf.mxu1  ;;  %v2962_v28 = vadd.f32 %v8137_v19, %v8136_v2  ;;  %v8153_v2 = vld [vmem:[#allocation149_spill] sm:$0xff] }
 0x54b   : >> { %v3364_v54 = vpop.f32.mrf.mxu2  ;;  %v3408_v47 = vpop.f32.mrf.mxu3  ;;  %v3505_v58 = vadd.f32 %v3310_v30, %v2903_v37  ;;  %v3006_v37 = vadd.f32 %v8141_v4, %v8140_v15  ;;  %v8142_v30 = vld [vmem:[#allocation22_spill] sm:$0xff] }
 0x54c   : >> { %v3520_v45 = vadd.f32 %v3364_v54, %v2957_v29  ;;  %3616 = vst.msk [vmem:[%s7084_s3 + $0x30] sm:$0xff] %vm3615_vm15, %v3501_v26  ;;  %v3507_v34 = vadd.f32 %v3408_v47, %v3001_v14  ;;  %v8139_v29 = vld [vmem:[#allocation142_spill] sm:$0xff]  ;;  %v3055_v47 = vadd.f32 %v7147_v3, %v8142_v30  ;;  %v8159_v30 = vld [vmem:[#allocation73_spill] sm:$0xff] }
 0x54d   : >> { %3620 = vst [vmem:[%s7084_s3 + $0x50] sm:$0xff] %v3505_v58  ;;  %v2908_v1 = vadd.f32 %v8139_v29, %v8138_v50  ;;  %v8143_v58 = vld [vmem:[#allocation97_spill] sm:$0xff] }
 0x54e   : >> { %3635 = vst [vmem:[%s7084_s3 + $0xc8] sm:$0xff] %v3520_v45 }
 0x54f   : >> { %3622 = vst [vmem:[%s7084_s3 + $0x60] sm:$0xff] %v3507_v34  ;;  %v8144_v34 = vld [vmem:[#allocation159_spill] sm:$0xff] }
 0x550   : >> { %v2965_v44 = vadd.f32 %v8144_v34, %v8143_v58  ;;  %v8161_v34 = vld [vmem:[#allocation31_spill] sm:$0xff] }
 0x551   : >> { %v3457_v59 = vpop.f32.mrf.mxu0 }
 0x552   : >> { %v3508_v27 = vadd.f32 %v3457_v59, %v3050_v7  ;;  %v3313_v63 = vpop.f32.mrf.mxu1  ;;  %v8147_v59 = vld [vmem:[#allocation33_spill] sm:$0xff] }
 0x553   : >> { %v3367_v5 = vpop.f32.mrf.mxu2  ;;  %v3411_v39 = vpop.f32.mrf.mxu3  ;;  %v3512_v35 = vadd.f32 %v3313_v63, %v2906_v61  ;;  %v3009_v36 = vadd.f32 %v8148_v60, %v8147_v59 }
 0x554   : >> { %v3527_v53 = vadd.f32 %v3367_v5, %v2960_v25  ;;  %3623 = vst.msk [vmem:[%s7084_s3 + $0x68] sm:$0xff] %vm3615_vm15, %v3508_v27  ;;  %v3514_v51 = vadd.f32 %v3411_v39, %v3004_v40  ;;  %v2911_v25 = vadd.f32 %v8146_v11, %v8145_v17  ;;  %v8150_v39 = vld [vmem:[#allocation101_spill] sm:$0xff] }
 0x555   : >> { %3627 = vst [vmem:[%s7084_s3 + $0x88] sm:$0xff] %v3512_v35  ;;  %v8151_v35 = vld [vmem:[#allocation163_spill] sm:$0xff] }
 0x556   : >> { %3642 = vst [vmem:[%s7084_s3 + $0x100] sm:$0xff] %v3527_v53  ;;  %v8149_v53 = vld [vmem:[#allocation21_spill] sm:$0xff] }
 0x557   : >> { %3629 = vst [vmem:[%s7084_s3 + $0x98] sm:$0xff] %v3514_v51  ;;  %v3058_v63 = vadd.f32 %v7161_v13, %v8149_v53  ;;  %v2967_v51 = vadd.f32 %v8151_v35, %v8150_v39  ;;  %v8167_v53 = vld [vmem:[#allocation155_spill] sm:$0xff]  ;;  %v8169_v35 = vld [vmem:[#allocation56_spill] sm:$0xff] }
 0x558   : >> { %v8168_v39 = vld [vmem:[#allocation35_spill] sm:$0xff] }
 0x559   : >> { %v3460_v41 = vpop.f32.mrf.mxu0 }
 0x55a   : >> { %v3515_v22 = vadd.f32 %v3460_v41, %v3053_v43  ;;  %v3315_v54 = vpop.f32.mrf.mxu1  ;;  %v8152_v43 = vld [vmem:[#allocation86_spill] sm:$0xff]  ;;  %v8155_v41 = vld [vmem:[#allocation157_spill] sm:$0xff] }
 0x55b   : >> { %v3369_v24 = vpop.f32.mrf.mxu2  ;;  %v3413_v26 = vpop.f32.mrf.mxu3  ;;  %v3519_v45 = vadd.f32 %v3315_v54, %v2908_v1  ;;  %v2913_v19 = vadd.f32 %v8153_v2, %v8152_v43  ;;  %v8157_v54 = vld [vmem:[#allocation106_spill] sm:$0xff] }
 0x55c   : >> { %v3534_v14 = vadd.f32 %v3369_v24, %v2962_v28  ;;  %3630 = vst.msk [vmem:[%s7084_s3 + $0xa0] sm:$0xff] %vm3615_vm15, %v3515_v22  ;;  %v3521_v23 = vadd.f32 %v3413_v26, %v3006_v37  ;;  %v8154_v28 = vld [vmem:[#allocation46_spill] sm:$0xff]  ;;  %v8156_v22 = vld [vmem:[#allocation12_spill] sm:$0xff] }
 0x55d   : >> { %3634 = vst [vmem:[%s7084_s3 + $0xc0] sm:$0xff] %v3519_v45  ;;  %v3011_v50 = vadd.f32 %v8155_v41, %v8154_v28  ;;  %v8158_v26 = vld [vmem:[#allocation166_spill] sm:$0xff] }
 0x55e   : >> { %3649 = vst [vmem:[%s7084_s3 + $0x138] sm:$0xff] %v3534_v14  ;;  %v3060_v14 = vadd.f32 %v7173_v33, %v8156_v22  ;;  %v2970_v45 = vadd.f32 %v8158_v26, %v8157_v54  ;;  %v8176_v54 = vld [vmem:[#allocation64_spill] sm:$0xff] }
 0x55f   : >> { %3636 = vst [vmem:[%s7084_s3 + $0xd0] sm:$0xff] %v3521_v23 }
 0x561   : >> { %v3462_v7 = vpop.f32.mrf.mxu0 }
 0x562   : >> { %v3522_v21 = vadd.f32 %v3462_v7, %v3055_v47  ;;  %v3318_v40 = vpop.f32.mrf.mxu1  ;;  %v8160_v47 = vld [vmem:[#allocation152_spill] sm:$0xff] }
 0x563   : >> { %v3372_v61 = vpop.f32.mrf.mxu2  ;;  %v3416_v5 = vpop.f32.mrf.mxu3  ;;  %v3526_v27 = vadd.f32 %v3318_v40, %v2911_v25  ;;  %v2916_v58 = vadd.f32 %v8160_v47, %v8159_v30  ;;  %v8165_v40 = vld [vmem:[#allocation167_spill] sm:$0xff] }
 0x564   : >> { %v3541_v16 = vadd.f32 %v3372_v61, %v2965_v44  ;;  %3637 = vst.msk [vmem:[%s7084_s3 + $0xd8] sm:$0xff] %vm3615_vm15, %v3522_v21  ;;  %v3528_v3 = vadd.f32 %v3416_v5, %v3009_v36  ;;  %v8162_v44 = vld [vmem:[#allocation160_spill] sm:$0xff]  ;;  %v8163_v61 = vld [vmem:[#allocation38_spill] sm:$0xff] }
 0x565   : >> { %3641 = vst [vmem:[%s7084_s3 + $0xf8] sm:$0xff] %v3526_v27  ;;  %v3014_v7 = vadd.f32 %v8162_v44, %v8161_v34  ;;  %v3063_v21 = vadd.f32 %v7187_v20, %v8163_v61  ;;  %v8177_v44 = vld [vmem:[#allocation28_spill] sm:$0xff]  ;;  %v8182_v61 = vld [vmem:[#allocation63_spill] sm:$0xff] }
 0x566   : >> { %3656 = vst [vmem:[%s7084_s3 + $0x170] sm:$0xff] %v3541_v16  ;;  %v8164_v16 = vld [vmem:[#allocation110_spill] sm:$0xff] }
 0x567   : >> { %3643 = vst [vmem:[%s7084_s3 + $0x108] sm:$0xff] %v3528_v3  ;;  %v2972_v5 = vadd.f32 %v8165_v40, %v8164_v16  ;;  %v8166_v3 = vld [vmem:[#allocation100_spill] sm:$0xff] }
 0x569   : >> { %v3465_v55 = vpop.f32.mrf.mxu0 }
 0x56a   : >> { %v3529_v1 = vadd.f32 %v3465_v55, %v3058_v63  ;;  %v3320_v4 = vpop.f32.mrf.mxu1  ;;  %v2918_v63 = vadd.f32 %v8167_v53, %v8166_v3 }
 0x56b   : >> { %v3374_v29 = vpop.f32.mrf.mxu2  ;;  %v3418_v37 = vpop.f32.mrf.mxu3  ;;  %v3533_v24 = vadd.f32 %v3320_v4, %v2913_v19 }
 0x56c   : >> { %v3548_v15 = vadd.f32 %v3374_v29, %v2967_v51  ;;  %3644 = vst.msk [vmem:[%s7084_s3 + $0x110] sm:$0xff] %vm3615_vm15, %v3529_v1  ;;  %v3535_v13 = vadd.f32 %v3418_v37, %v3011_v50  ;;  %v3016_v51 = vadd.f32 %v8169_v35, %v8168_v39  ;;  %v8170_v50 = vld [vmem:[#allocation29_spill] sm:$0xff]  ;;  %v8171_v1 = vld [vmem:[#allocation114_spill] sm:$0xff] }
 0x56d   : >> { %3648 = vst [vmem:[%s7084_s3 + $0x130] sm:$0xff] %v3533_v24  ;;  %v3065_v29 = vadd.f32 %v7199_v48, %v8170_v50  ;;  %v8173_v24 = vld [vmem:[#allocation104_spill] sm:$0xff]  ;;  %v8184_v39 = vld [vmem:[#allocation41_spill] sm:$0xff] }
 0x56e   : >> { %3663 = vst [vmem:[%s7084_s3 + $0x1a8] sm:$0xff] %v3548_v15  ;;  %v8172_v15 = vld [vmem:[#allocation169_spill] sm:$0xff]  ;;  %v3070_v35 = vadd.f32 %v7225_v46, %v8184_v39 }
 0x56f   : >> { %3650 = vst [vmem:[%s7084_s3 + $0x140] sm:$0xff] %v3535_v13  ;;  %v2975_v4 = vadd.f32 %v8172_v15, %v8171_v1  ;;  %v8174_v13 = vld [vmem:[#allocation158_spill] sm:$0xff] }
 0x570   : >> { %v2921_v22 = vadd.f32 %v8174_v13, %v8173_v24 }
 0x571   : >> { %v3467_v23 = vpop.f32.mrf.mxu0 }
 0x572   : >> { %v3536_v11 = vadd.f32 %v3467_v23, %v3060_v14  ;;  %v3323_v59 = vpop.f32.mrf.mxu1  ;;  %v8175_v14 = vld [vmem:[#allocation39_spill] sm:$0xff] }
 0x573   : >> { %v3377_v17 = vpop.f32.mrf.mxu2  ;;  %v3421_v60 = vpop.f32.mrf.mxu3  ;;  %v3540_v36 = vadd.f32 %v3323_v59, %v2916_v58  ;;  %v3019_v26 = vadd.f32 %v8176_v54, %v8175_v14 }
 0x574   : >> { %v3555_v25 = vadd.f32 %v3377_v17, %v2970_v45  ;;  %3651 = vst.msk [vmem:[%s7084_s3 + $0x148] sm:$0xff] %vm3615_vm15, %v3536_v11  ;;  %v3542_v33 = vadd.f32 %v3421_v60, %v3014_v7  ;;  %v3068_v7 = vadd.f32 %v7213_v31, %v8177_v44  ;;  %v8178_v17 = vld [vmem:[#allocation118_spill] sm:$0xff]  ;;  %v8179_v11 = vld [vmem:[#allocation81_spill] sm:$0xff]  ;;  %v8180_v60 = vld [vmem:[#allocation108_spill] sm:$0xff] }
 0x575   : >> { %3655 = vst [vmem:[%s7084_s3 + $0x168] sm:$0xff] %v3540_v36  ;;  %v8181_v36 = vld [vmem:[#allocation161_spill] sm:$0xff] }
 0x576   : >> { %3670 = vst [vmem:[%s7084_s3 + $0x1e0] sm:$0xff] %v3555_v25  ;;  %v2977_v25 = vadd.f32 %v8179_v11, %v8178_v17 }
 0x577   : >> { %3657 = vst [vmem:[%s7084_s3 + $0x178] sm:$0xff] %v3542_v33  ;;  %v2923_v33 = vadd.f32 %v8181_v36, %v8180_v60  ;;  %v8197_v60 = vld [vmem:[#allocation121_spill] sm:$0xff]  ;;  %v8198_v36 = vld [vmem:[#allocation168_spill] sm:$0xff] }
 0x579   : >> { %v3470_v27 = vpop.f32.mrf.mxu0 }
 0x57a   : >> { %v3543_v43 = vadd.f32 %v3470_v27, %v3063_v21  ;;  %v3325_v19 = vpop.f32.mrf.mxu1  ;;  %v8183_v21 = vld [vmem:[#allocation80_spill] sm:$0xff] }
 0x57b   : >> { %v3379_v55 = vpop.f32.mrf.mxu2  ;;  %v3423_v28 = vpop.f32.mrf.mxu3  ;;  %v3547_v41 = vadd.f32 %v3325_v19, %v2918_v63  ;;  %v3021_v16 = vadd.f32 %v8183_v21, %v8182_v61  ;;  %v8187_v19 = vld [vmem:[#allocation164_spill] sm:$0xff]  ;;  %v8199_v61 = vld [vmem:[#allocation126_spill] sm:$0xff] }
 0x57c   : >> { %v3562_v2 = vadd.f32 %v3379_v55, %v2972_v5  ;;  %3658 = vst.msk [vmem:[%s7084_s3 + $0x180] sm:$0xff] %vm3615_vm15, %v3543_v43  ;;  %v3549_v20 = vadd.f32 %v3423_v28, %v3016_v51  ;;  %v8185_v51 = vld [vmem:[#allocation122_spill] sm:$0xff]  ;;  %v3029_v21 = vadd.f32 %v7063_v49, %v8199_v61  ;;  %v8201_v49 = vld [vmem:[#allocation36_spill] sm:$0xff] }
 0x57d   : >> { %3662 = vst [vmem:[%s7084_s3 + $0x1a0] sm:$0xff] %v3547_v41  ;;  %v2980_v55 = vadd.f32 %v7054_v12, %v8185_v51  ;;  %v8188_v41 = vld [vmem:[#allocation49_spill] sm:$0xff]  ;;  %v8190_v12 = vld [vmem:[#allocation55_spill] sm:$0xff] }
 0x57e   : >> { %3677 = vst [vmem:[%s7084_s3 + $0x218] sm:$0xff] %v3562_v2  ;;  %v8186_v2 = vld [vmem:[#allocation112_spill] sm:$0xff]  ;;  %v3073_v13 = vadd.f32 %v7239_v42, %v8190_v12  ;;  %v8203_v51 = vld [vmem:[#allocation53_spill] sm:$0xff] }
 0x57f   : >> { %3664 = vst [vmem:[%s7084_s3 + $0x1b0] sm:$0xff] %v3549_v20  ;;  %v2926_v28 = vadd.f32 %v8187_v19, %v8186_v2  ;;  %v8189_v20 = vld [vmem:[#allocation77_spill] sm:$0xff] }
 0x580   : >> { %v3024_v50 = vadd.f32 %v8189_v20, %v8188_v41 }
 0x581   : >> { %v3472_v37 = vpop.f32.mrf.mxu0 }
 0x582   : >> { %v3550_v23 = vadd.f32 %v3472_v37, %v3065_v29  ;;  %v3328_v47 = vpop.f32.mrf.mxu1 }
 0x583   : >> { %v3382_v45 = vpop.f32.mrf.mxu2  ;;  %v3426_v58 = vpop.f32.mrf.mxu3  ;;  %v3554_v34 = vadd.f32 %v3328_v47, %v2921_v22  ;;  %v8191_v22 = vld [vmem:[#allocation16_spill] sm:$0xff] }
 0x584   : >> { %v3569_v30 = vadd.f32 %v3382_v45, %v2975_v4  ;;  %3665 = vst.msk [vmem:[%s7084_s3 + $0x1b8] sm:$0xff] %vm3615_vm15, %v3550_v23  ;;  %v3556_v48 = vadd.f32 %v3426_v58, %v3019_v26  ;;  %v2982_v14 = vadd.f32 %v7072_v38, %v8191_v22  ;;  %v8192_v26 = vld [vmem:[#allocation116_spill] sm:$0xff]  ;;  %v8195_v38 = vld [vmem:[#allocation45_spill] sm:$0xff] }
 0x585   : >> { %3669 = vst [vmem:[%s7084_s3 + $0x1d8] sm:$0xff] %v3554_v34  ;;  %v8193_v45 = vld [vmem:[#allocation76_spill] sm:$0xff]  ;;  %v3075_v11 = vadd.f32 %v7251_v10, %v8195_v38 }
 0x586   : >> { %3684 = vst [vmem:[%s7084_s3 + $0x250] sm:$0xff] %v3569_v30  ;;  %v2928_v23 = vadd.f32 %v8193_v45, %v8192_v26  ;;  %v8194_v30 = vld [vmem:[#allocation44_spill] sm:$0xff] }
 0x587   : >> { %3671 = vst [vmem:[%s7084_s3 + $0x1e8] sm:$0xff] %v3556_v48  ;;  %v3026_v47 = vadd.f32 %v7045_v0, %v8194_v30  ;;  %v8196_v0 = vld [vmem:[#allocation18_spill] sm:$0xff] }
 0x588   : >> { %v8211_v30 = vld [vmem:[#allocation82_spill] sm:$0xff] }
 0x589   : >> { %v3475_v59 = vpop.f32.mrf.mxu0 }
 0x58a   : >> { %v3557_v5 = vadd.f32 %v3475_v59, %v3068_v7  ;;  %v3330_v3 = vpop.f32.mrf.mxu1 }
 0x58b   : >> { %v3384_v40 = vpop.f32.mrf.mxu2  ;;  %v3428_v53 = vpop.f32.mrf.mxu3  ;;  %v3561_v63 = vadd.f32 %v3330_v3, %v2923_v33  ;;  %v2931_v33 = vadd.f32 %v8198_v36, %v8197_v60 }
 0x58c   : >> { %v3576_v27 = vadd.f32 %v3384_v40, %v2977_v25  ;;  %3672 = vst.msk [vmem:[%s7084_s3 + $0x1f0] sm:$0xff] %vm3615_vm15, %v3557_v5  ;;  %v3563_v31 = vadd.f32 %v3428_v53, %v3021_v16  ;;  %v2985_v25 = vadd.f32 %v7088_v18, %v8196_v0  ;;  %v8200_v18 = vld [vmem:[#allocation71_spill] sm:$0xff] }
 0x58d   : >> { %3676 = vst [vmem:[%s7084_s3 + $0x210] sm:$0xff] %v3561_v63  ;;  %v3078_v63 = vadd.f32 %v7265_v57, %v8200_v18 }
 0x58e   : >> { %3691 = vst [vmem:[%s7084_s3 + $0x288] sm:$0xff] %v3576_v27 }
 0x58f   : >> { %3678 = vst [vmem:[%s7084_s3 + $0x220] sm:$0xff] %v3563_v31  ;;  %v2987_v31 = vadd.f32 %v7098_v6, %v8201_v49  ;;  %v8205_v6 = vld [vmem:[#allocation14_spill] sm:$0xff] }
 0x591   : >> { %v3477_v43 = vpop.f32.mrf.mxu0 }
 0x592   : >> { %v3564_v1 = vadd.f32 %v3477_v43, %v3070_v35  ;;  %v3333_v4 = vpop.f32.mrf.mxu1  ;;  %v8202_v35 = vld [vmem:[#allocation125_spill] sm:$0xff]  ;;  %v8204_v43 = vld [vmem:[#allocation130_spill] sm:$0xff] }
 0x593   : >> { %v3387_v29 = vpop.f32.mrf.mxu2  ;;  %v3431_v37 = vpop.f32.mrf.mxu3  ;;  %v3568_v24 = vadd.f32 %v3333_v4, %v2926_v28  ;;  %v3031_v2 = vadd.f32 %v7079_v56, %v8204_v43  ;;  %v8206_v56 = vld [vmem:[#allocation23_spill] sm:$0xff]  ;;  %v8207_v4 = vld [vmem:[#allocation66_spill] sm:$0xff] }
 0x594   : >> { %v3583_v15 = vadd.f32 %v3387_v29, %v2980_v55  ;;  %3679 = vst.msk [vmem:[%s7084_s3 + $0x228] sm:$0xff] %vm3615_vm15, %v3564_v1  ;;  %v3570_v46 = vadd.f32 %v3431_v37, %v3024_v50  ;;  %v2933_v55 = vadd.f32 %v8203_v51, %v8202_v35  ;;  %v3080_v1 = vadd.f32 %v7277_v8, %v8205_v6  ;;  %v8209_v8 = vld [vmem:[#allocation15_spill] sm:$0xff] }
 0x595   : >> { %3683 = vst [vmem:[%s7084_s3 + $0x248] sm:$0xff] %v3568_v24  ;;  %v2936_v37 = vadd.f32 %v8207_v4, %v8206_v56  ;;  %v8208_v24 = vld [vmem:[#allocation134_spill] sm:$0xff]  ;;  %v3083_v26 = vadd.f32 %v7290_v62, %v8209_v8 }
 0x596   : >> { %3698 = vst [vmem:[%s7084_s3 + $0x2c0] sm:$0xff] %v3583_v15 }
 0x597   : >> { %3685 = vst [vmem:[%s7084_s3 + $0x258] sm:$0xff] %v3570_v46  ;;  %v3034_v46 = vadd.f32 %v7094_v52, %v8208_v24 }
 0x599   : >> { %v3480_v54 = vpop.f32.mrf.mxu0 }
 0x59a   : >> { %v3571_v34 = vadd.f32 %v3480_v54, %v3073_v13  ;;  %v3335_v44 = vpop.f32.mrf.mxu1 }
 0x59b   : >> { %v3389_v58 = vpop.f32.mrf.mxu2  ;;  %v3433_v7 = vpop.f32.mrf.mxu3  ;;  %v3575_v17 = vadd.f32 %v3335_v44, %v2928_v23  ;;  %v8210_v23 = vld [vmem:[#allocation13_spill] sm:$0xff] }
 0x59c   : >> { %v3590_v48 = vadd.f32 %v3389_v58, %v2982_v14  ;;  %3686 = vst.msk [vmem:[%s7084_s3 + $0x260] sm:$0xff] %vm3615_vm15, %v3571_v34  ;;  %v3577_v42 = vadd.f32 %v3433_v7, %v3026_v47  ;;  %v2938_v52 = vadd.f32 %v8211_v30, %v8210_v23  ;;  %v8212_v47 = vld [vmem:[#allocation138_spill] sm:$0xff] }
 0x59d   : >> { %3690 = vst [vmem:[%s7084_s3 + $0x280] sm:$0xff] %v3575_v17  ;;  %v3036_v58 = vadd.f32 %v7106_v9, %v8212_v47 }
 0x59e   : >> { %3705 = vst [vmem:[%s7084_s3 + $0x2f8] sm:$0xff] %v3590_v48 }
 0x59f   : >> { %3692 = vst [vmem:[%s7084_s3 + $0x290] sm:$0xff] %v3577_v42  ;;  %v8213_v42 = vld [vmem:[#allocation127_spill] sm:$0xff] }
 0x5a0   : >> { %v3085_v38 = vadd.f32 %v7302_v32, %v8213_v42 }
 0x5a1   : >> { %v3482_v59 = vpop.f32.mrf.mxu0 }
 0x5a2   : >> { %v3578_v40 = vadd.f32 %v3482_v59, %v3075_v11  ;;  %v3338_v27 = vpop.f32.mrf.mxu1 }
 0x5a3   : >> { %v3392_v16 = vpop.f32.mrf.mxu2  ;;  %v3436_v3 = vpop.f32.mrf.mxu3  ;;  %v3582_v53 = vadd.f32 %v3338_v27, %v2931_v33 }
 0x5a4   : >> { %v3597_v5 = vadd.f32 %v3392_v16, %v2985_v25  ;;  %3693 = vst.msk [vmem:[%s7084_s3 + $0x298] sm:$0xff] %vm3615_vm15, %v3578_v40  ;;  %v3584_v10 = vadd.f32 %v3436_v3, %v3029_v21 }
 0x5a5   : >> { %3697 = vst [vmem:[%s7084_s3 + $0x2b8] sm:$0xff] %v3582_v53 }
 0x5a6   : >> { %3712 = vst [vmem:[%s7084_s3 + $0x330] sm:$0xff] %v3597_v5 }
 0x5a7   : >> { %3699 = vst [vmem:[%s7084_s3 + $0x2c8] sm:$0xff] %v3584_v10 }
 0x5a9   : >> { %v3485_v39 = vpop.f32.mrf.mxu0 }
 0x5aa   : >> { %v3585_v28 = vadd.f32 %v3485_v39, %v3078_v63  ;;  %v3340_v20 = vpop.f32.mrf.mxu1 }
 0x5ab   : >> { %v3394_v19 = vpop.f32.mrf.mxu2  ;;  %v3438_v50 = vpop.f32.mrf.mxu3  ;;  %v3589_v57 = vadd.f32 %v3340_v20, %v2933_v55 }
 0x5ac   : >> { %v3604_v41 = vadd.f32 %v3394_v19, %v2987_v31  ;;  %3700 = vst.msk [vmem:[%s7084_s3 + $0x2d0] sm:$0xff] %vm3615_vm15, %v3585_v28  ;;  %v3591_v29 = vadd.f32 %v3438_v50, %v3031_v2 }
 0x5ad   : >> { %3704 = vst [vmem:[%s7084_s3 + $0x2f0] sm:$0xff] %v3589_v57 }
 0x5ae   : >> { %3719 = vst [vmem:[%s7084_s3 + $0x368] sm:$0xff] %v3604_v41 }
 0x5af   : >> { %3706 = vst [vmem:[%s7084_s3 + $0x300] sm:$0xff] %v3591_v29 }
 0x5b1   : >> { %v3487_v15 = vpop.f32.mrf.mxu0 }
 0x5b2   : >> { %v3592_v12 = vadd.f32 %v3487_v15, %v3080_v1  ;;  %v3343_v13 = vpop.f32.mrf.mxu1 }
 0x5b3   : >> { %v3441_v22 = vpop.f32.mrf.mxu3  ;;  %v3596_v14 = vadd.f32 %v3343_v13, %v2936_v37 }
 0x5b4   : >> { %3707 = vst.msk [vmem:[%s7084_s3 + $0x308] sm:$0xff] %vm3615_vm15, %v3592_v12  ;;  %v3598_v54 = vadd.f32 %v3441_v22, %v3034_v46 }
 0x5b5   : >> { %3711 = vst [vmem:[%s7084_s3 + $0x328] sm:$0xff] %v3596_v14 }
 0x5b6   : >> { %3713 = vst [vmem:[%s7084_s3 + $0x338] sm:$0xff] %v3598_v54 }
 0x5b9   : >> { %v3490_v45 = vpop.f32.mrf.mxu0 }
 0x5ba   : >> { %v3599_v34 = vadd.f32 %v3490_v45, %v3083_v26  ;;  %v3345_v48 = vpop.f32.mrf.mxu1 }
 0x5bb   : >> { %v3443_v44 = vpop.f32.mrf.mxu3  ;;  %v3603_v7 = vadd.f32 %v3345_v48, %v2938_v52 }
 0x5bc   : >> { %3714 = vst.msk [vmem:[%s7084_s3 + $0x340] sm:$0xff] %vm3615_vm15, %v3599_v34  ;;  %v3605_v17 = vadd.f32 %v3443_v44, %v3036_v58 }
 0x5bd   : >> { %3718 = vst [vmem:[%s7084_s3 + $0x360] sm:$0xff] %v3603_v7 }
 0x5be   : >> { %3720 = vst [vmem:[%s7084_s3 + $0x370] sm:$0xff] %v3605_v17 }
 0x5c0   : > { %445 = sbr.rel (!%p443_p7) target bundleno = 106 (0x6a), region = 79 }
 0x5c1   : >> { %v3492_v62 = vpop.f32.mrf.mxu0 }
 0x5c2   : >> { %v3606_v11 = vadd.f32 %v3492_v62, %v3085_v38 }
 0x5c4   : >> { %3721 = vst.msk [vmem:[%s7084_s3 + $0x378] sm:$0xff] %vm3615_vm15, %v3606_v11 }
 0x5c5 PF: > { %p12_p8 = scmp.ge.s32.totalorder %s4177_s14, 18   ;;  %s8214_s9 = smov %s4118_s10 }
 0x5c6   : > { %s8215_s10 = smov %s4122_s11  ;;  %s8216_s11 = smov %s4187_s17 }
 0x5c7   : > { %s8217_s12 = smov %s4177_s14  ;;  %14 = sbr.rel (!%p12_p8) target bundleno = 3 (0x3), region = 90 }
 0x5cc   :  { %3746 = vsyncpa [#allocation3], 1 }
 0x5cd   :  { %3748 = vsyncpa [#allocation3 + $0x1], 1 }

</bundles_post_ra>
